<compile_context>
chip_gen: v7x
topology: tpu7x:2x2x1
jax: 0.10.0
libtpu: 0.0.40
codegen_flags: <defaults>
</compile_context>

<pallas_src>
import math
from functools import partial

import jax
import jax.numpy as jnp
from jax import lax
from jax.experimental import pallas as pl
from jax.experimental.pallas import tpu as pltpu


# ----------------------------------------------------------------------------
# 3D sin-cos positional embedding (setup glue, plain JAX — mirrors torch code)
# ----------------------------------------------------------------------------
def get_1d_sincos_pos_embed_from_grid_new(embed_dim, pos):
    assert embed_dim % 2 == 0
    omega = jnp.arange(embed_dim // 2, dtype=jnp.float32)
    omega = omega / (embed_dim / 2.0)
    omega = 1.0 / (10000.0 ** omega)
    out = jnp.einsum('thw,d->thwd', pos, omega)
    return jnp.concatenate([jnp.sin(out), jnp.cos(out)], axis=-1)


def get_3d_sincos_pos_embed_from_grid(embed_dim, grid):
    assert embed_dim % 8 == 0
    emb_t = get_1d_sincos_pos_embed_from_grid_new(embed_dim // 8 * 2, grid[0])
    emb_h = get_1d_sincos_pos_embed_from_grid_new(embed_dim // 8 * 3, grid[1])
    emb_w = get_1d_sincos_pos_embed_from_grid_new(embed_dim // 8 * 3, grid[2])
    return jnp.concatenate([emb_t, emb_h, emb_w], axis=-1)


def get_3d_sincos_pos_embed(embed_dim, image_size):
    grid_t_size, grid_h_size, grid_w_size = image_size
    grid_t = jnp.arange(grid_t_size, dtype=jnp.float32)
    grid_h = jnp.arange(grid_h_size, dtype=jnp.float32)
    grid_w = jnp.arange(grid_w_size, dtype=jnp.float32)
    # torch.meshgrid default indexing is 'ij'; the (t, w, h) argument order (and
    # the later [t, h, w] slicing) deliberately mirrors the original torch code.
    grid = jnp.meshgrid(grid_t, grid_w, grid_h, indexing='ij')
    grid = jnp.stack(grid, axis=0)
    return get_3d_sincos_pos_embed_from_grid(embed_dim, grid)


# ----------------------------------------------------------------------------
# Shared layernorm helper (module uses eps=1e-06 explicitly)
# ----------------------------------------------------------------------------
def _ln(x, g, b, axis=-1, eps=1e-6):
    mu = jnp.mean(x, axis=axis, keepdims=True)
    var = jnp.mean(jnp.square(x - mu), axis=axis, keepdims=True)
    return (x - mu) * lax.rsqrt(var + eps) * g + b


# ----------------------------------------------------------------------------
# Pallas kernel: full resampler forward for one batch element
# ----------------------------------------------------------------------------
def resampler_kernel(x_ref, posk_ref, qph_ref,
                     wkvT_ref, lnkvg_ref, lnkvb_ref,
                     wkvfT_ref, bvT_ref,
                     woh_ref, bo_ref, lnpg_ref, lnpb_ref, proj_ref,
                     out_ref, *, num_heads, head_dim, embed_dim):
    f32 = jnp.float32
    bf16 = jnp.bfloat16
    D, H, hd = embed_dim, num_heads, head_dim
    L = x_ref.shape[1]

    x = x_ref[0]                                            # (L, Dk) bf16

    # kv_proj computed feature-major:  kvT[d, l] = sum_k Wkv[k, d] * x[l, k]
    kvT = lax.dot_general(wkvT_ref[...], x,
                          (((1,), (1,)), ((), ())),
                          preferred_element_type=f32)        # (D, L) f32

    # ln_kv over the feature axis (= axis 0 in this layout), f32 math
    kvT = _ln(kvT, lnkvg_ref[...], lnkvb_ref[...], axis=0)
    kvT_b = kvT.astype(bf16)

    # fused K/V projection: [Wk^T ; Wv^T] @ kvT  -> (2D, L)
    kvp = jnp.dot(wkvfT_ref[...], kvT_b, preferred_element_type=f32)
    kT = kvp[:D, :] + posk_ref[...]                          # + (pos @ Wk + b_k)^T
    vT = kvp[D:, :] + bvT_ref[...]                           # + b_v^T

    # head split is a free leading-dim reshape in this layout
    kh = kT.astype(bf16).reshape(H, hd, L)
    vh = vT.astype(bf16).reshape(H, hd, L)

    # scores (H, Q, L): query projection is pre-computed, pre-scaled, head-major
    s = lax.dot_general(qph_ref[...], kh,
                        (((2,), (1,)), ((0,), (0,))),
                        preferred_element_type=f32)

    s = s - jnp.max(s, axis=-1, keepdims=True)
    e = jnp.exp(s)
    p = e * pl.reciprocal(jnp.sum(e, axis=-1, keepdims=True), approx=True)

    # attention output per head: (H, Q, hd)
    attn = lax.dot_general(p.astype(bf16), vh,
                           (((2,), (2,)), ((0,), (0,))),
                           preferred_element_type=f32)

    # out_proj, head-batched then summed over heads: (H, Q, D) -> (Q, D)
    oh = lax.dot_general(attn.astype(bf16), woh_ref[...],
                         (((2,), (1,)), ((0,), (0,))),
                         preferred_element_type=f32)
    o = jnp.sum(oh, axis=0) + bo_ref[...]

    o = _ln(o, lnpg_ref[...], lnpb_ref[...], axis=-1)
    out = jnp.dot(o.astype(bf16), proj_ref[...], preferred_element_type=f32)
    out_ref[0] = out.astype(out_ref.dtype)


# ----------------------------------------------------------------------------
# Wrapper
# ----------------------------------------------------------------------------
def _vmem_limit_bytes(D, Dk, L, Q, H, hd):
    bf2, f4 = 2, 4
    weights = bf2 * (D * Dk + 2 * D * D + H * hd * D + D * D + H * Q * hd)
    consts = f4 * (D * L + 3 * D * 128 + 3 * D)
    stream = 2 * (bf2 * L * Dk) + 2 * (f4 * Q * D)
    acts = f4 * (3 * D * L + H * Q * (L + hd + D) + 4 * Q * D)
    need = weights + consts + stream + acts
    return int(min(max(2 * need, 32 * 1024 * 1024), 48 * 1024 * 1024))


def resampler_forward(params, image_features, tgt_size_range, num_heads):
    tgt = [[0, r] if isinstance(r, int) else list(r) for r in tgt_size_range]
    if len(tgt) == 2:
        tgt = [[0, 1], tgt[0], tgt[1]]
        x = image_features
    else:
        x = image_features.reshape(image_features.shape[0], -1,
                                   image_features.shape[-1])

    B, L, Dk = x.shape
    Q, D = params['query'].shape
    H = num_heads
    assert D % H == 0
    hd = D // H

    (t0, t1), (h0, h1), (w0, w1) = tgt
    # Slice order [t, h, w] over a cache built on a (t, w, h) meshgrid — this
    # mirrors the original torch forward literally (its h/w cache axes have the
    # same max extent, so the quirk is shape-safe).
    pos = params['pos_cache'][t0:t1, h0:h1, w0:w1, :].reshape(-1, D)
    assert pos.shape[0] == L, "sequence length must equal t*h*w"

    f32, bf16 = jnp.float32, jnp.bfloat16
    bf = lambda a: a.astype(bf16)
    mm = lambda a, w: jnp.matmul(bf(a), bf(w), preferred_element_type=f32)

    # ---- batch-invariant hoisting (computed once, outside the kernel) -------
    q = _ln(params['query'], params['lnq_g'], params['lnq_b'], axis=-1)
    qp = (mm(q, params['w_q']) + params['b_q']) * (1.0 / math.sqrt(hd))
    qph = bf(jnp.transpose(qp.reshape(Q, H, hd), (1, 0, 2)))           # (H, Q, hd)
    posk_T = jnp.transpose(mm(pos, params['w_k']) + params['b_k'])     # (D, L) f32

    # ---- weights: transposed / fused / bf16 for the kernel ------------------
    wkvT = bf(params['w_kv'].T)                                        # (D, Dk)
    wkvfT = bf(jnp.concatenate([params['w_k'].T, params['w_v'].T], axis=0))
    woh = bf(params['w_o'].reshape(H, hd, D))                          # (H, hd, D)
    projW = bf(params['proj'])                                         # (D, D)
    bvT = params['b_v'].reshape(D, 1)
    lnkv_gT = params['lnkv_g'].reshape(D, 1)
    lnkv_bT = params['lnkv_b'].reshape(D, 1)
    bo, lnp_g, lnp_b = params['b_o'], params['lnp_g'], params['lnp_b']

    x_b = bf(x)                                                        # (B, L, Dk)

    # NOTE: the original module's key_padding_mask is always all-False (one
    # tgt_size_range shared by the whole batch), so it is dropped entirely.

    kernel = partial(resampler_kernel, num_heads=H, head_dim=hd, embed_dim=D)
    vmem_limit = _vmem_limit_bytes(D, Dk, L, Q, H, hd)

    def call(single_buffer_weights):
        def const_spec(shape):
            n = len(shape)

            def idx(b):
                return (0,) * n

            if single_buffer_weights:
                return pl.BlockSpec(shape, idx, pipeline_mode=pl.Buffered(1))
            return pl.BlockSpec(shape, idx)

        return pl.pallas_call(
            kernel,
            out_shape=jax.ShapeDtypeStruct((B, Q, D), f32),
            grid=(B,),
            in_specs=[
                pl.BlockSpec((1, L, Dk), lambda b: (b, 0, 0)),  # x (per batch)
                const_spec((D, L)),        # (pos @ Wk + b_k)^T
                const_spec((H, Q, hd)),    # pre-projected, pre-scaled queries
                const_spec((D, Dk)),       # Wkv^T
                const_spec((D, 1)),        # ln_kv gamma
                const_spec((D, 1)),        # ln_kv beta
                const_spec((2 * D, D)),    # fused [Wk^T ; Wv^T]
                const_spec((D, 1)),        # b_v^T
                const_spec((H, hd, D)),    # Wo split per head
                const_spec((1, D)),        # b_o
                const_spec((1, D)),        # ln_post gamma
                const_spec((1, D)),        # ln_post beta
                const_spec((D, D)),        # final projection
            ],
            out_specs=pl.BlockSpec((1, Q, D), lambda b: (b, 0, 0)),
            compiler_params=pltpu.CompilerParams(
                dimension_semantics=("parallel",),
                vmem_limit_bytes=vmem_limit),
        )(x_b, posk_T, qph, wkvT, lnkv_gT, lnkv_bT, wkvfT, bvT, woh,
          bo, lnp_g, lnp_b, projW)

    try:
        return jax.block_until_ready(call(True))
    except Exception:
        # pl.Buffered pipeline_mode unavailable on this jax build: fall back to
        # the default double-buffered weight pipeline (identical results).
        return jax.block_until_ready(call(False))


# ----------------------------------------------------------------------------
# Deterministic parameter init (shapes follow the PyTorch module's __init__).
# ----------------------------------------------------------------------------
def init_params(key, num_queries, embed_dim, kv_dim, max_size, std=0.02):
    ks = jax.random.split(key, 16)
    p = {}
    # NOTE: weights stored in (in, out) layout so the math is x @ W (+ b).
    p['query'] = std * jax.random.normal(ks[0], (num_queries, embed_dim), jnp.float32)
    p['w_kv'] = std * jax.random.normal(ks[1], (kv_dim, embed_dim), jnp.float32)
    in_proj = std * jax.random.normal(ks[2], (embed_dim, 3 * embed_dim), jnp.float32)
    p['w_q'] = in_proj[:, :embed_dim]
    p['w_k'] = in_proj[:, embed_dim:2 * embed_dim]
    p['w_v'] = in_proj[:, 2 * embed_dim:]
    p['b_q'] = std * jax.random.normal(ks[3], (1, embed_dim), jnp.float32)
    p['b_k'] = std * jax.random.normal(ks[4], (1, embed_dim), jnp.float32)
    p['b_v'] = std * jax.random.normal(ks[5], (1, embed_dim), jnp.float32)
    p['w_o'] = std * jax.random.normal(ks[6], (embed_dim, embed_dim), jnp.float32)
    p['b_o'] = std * jax.random.normal(ks[7], (1, embed_dim), jnp.float32)
    for i, name in enumerate(('lnq', 'lnkv', 'lnp')):
        p[f'{name}_g'] = 1.0 + 0.1 * jax.random.normal(
            ks[8 + 2 * i], (1, embed_dim), jnp.float32)
        p[f'{name}_b'] = 0.1 * jax.random.normal(
            ks[9 + 2 * i], (1, embed_dim), jnp.float32)
    p['proj'] = (embed_dim ** -0.5) * jax.random.normal(
        ks[14], (embed_dim, embed_dim), jnp.float32)
    p['pos_cache'] = get_3d_sincos_pos_embed(embed_dim, max_size)
    return p


# ----------------------------------------------------------------------------
# Pure-JAX reference.  It mirrors the kernel's precision policy (bf16 matmul
# operands, f32 accumulation, f32 layernorm/softmax) so the comparison
# tolerance stays tight, but uses the natural (non-transposed, head-reshape)
# formulation as an independent structural check.
# ----------------------------------------------------------------------------
def reference_forward(params, image_features, tgt_size_range, num_heads):
    tgt = [[0, r] if isinstance(r, int) else list(r) for r in tgt_size_range]
    if len(tgt) == 2:
        tgt = [[0, 1], tgt[0], tgt[1]]
        x = image_features
    else:
        x = image_features.reshape(image_features.shape[0], -1,
                                   image_features.shape[-1])
    B, L, Dk = x.shape
    Q, D = params['query'].shape
    H = num_heads
    hd = D // H
    (t0, t1), (h0, h1), (w0, w1) = tgt
    pos = params['pos_cache'][t0:t1, h0:h1, w0:w1, :].reshape(-1, D)

    bf = lambda a: a.astype(jnp.bfloat16)
    mm = lambda a, w: jnp.matmul(bf(a), bf(w), preferred_element_type=jnp.float32)

    kv = mm(x, params['w_kv'])                                    # (B, L, D)
    kv = _ln(kv, params['lnkv_g'], params['lnkv_b'], axis=-1)
    q = _ln(params['query'], params['lnq_g'], params['lnq_b'], axis=-1)
    qp = (mm(q, params['w_q']) + params['b_q']) * (1.0 / math.sqrt(hd))
    posk = mm(pos, params['w_k']) + params['b_k']                 # (L, D)
    kp = mm(kv, params['w_k']) + posk[None]                       # (B, L, D)
    vp = mm(kv, params['w_v']) + params['b_v']                    # (B, L, D)

    s = jnp.einsum('qhd,blhd->bhql', bf(qp).reshape(Q, H, hd),
                   bf(kp).reshape(B, L, H, hd),
                   preferred_element_type=jnp.float32)
    p = jax.nn.softmax(s, axis=-1)
    attn = jnp.einsum('bhql,blhd->bqhd', bf(p),
                      bf(vp).reshape(B, L, H, hd),
                      preferred_element_type=jnp.float32).reshape(B, Q, D)
    o = mm(attn, params['w_o']) + params['b_o']
    o = _ln(o, params['lnp_g'], params['lnp_b'], axis=-1)
    return mm(o, params['proj'])


if __name__ == "__main__":
    key = jax.random.PRNGKey(0)
    kparam, kx = jax.random.split(key)

    B = 2
    num_queries = 8
    embed_dim = 256          # divisible by 8 (pos embed requirement)
    kv_dim = 128             # != embed_dim -> real kv_proj Linear
    num_heads = 2            # head_dim = 128 (module default: embed_dim // 128)
    max_size = (4, 8, 8)     # small synthetic pos cache
    tgt_size_range = [[0, 2], [1, 5], [2, 6]]   # (t, h, w) = (2, 4, 4) -> L = 32

    params = init_params(kparam, num_queries, embed_dim, kv_dim, max_size)

    # video-style input: (B, T, H*W, kv_dim); forward views it to (B, L, kv_dim)
    image_features = jax.random.normal(kx, (B, 2, 16, kv_dim), jnp.float32)

    out = resampler_forward(params, image_features, tgt_size_range, num_heads)
    out = jax.block_until_ready(out)

    ref = reference_forward(params, image_features, tgt_size_range, num_heads)
    assert out.shape == (B, num_queries, embed_dim)
    err = jnp.max(jnp.abs(out - ref))
    assert jnp.allclose(out, ref, atol=3e-2, rtol=3e-2), f"max abs diff {err}"

    print("KERNEL_OK")
</pallas_src>

<mosaic_0001>
module attributes {stable_mosaic.version = 11 : i64} {
  func.func @resampler_kernel(%arg0: i32, %arg1: memref<1x32x128xbf16, #tpu.memory_space<vmem>>, %arg2: memref<256x32xf32, #tpu.memory_space<vmem>>, %arg3: memref<2x8x128xbf16, #tpu.memory_space<vmem>>, %arg4: memref<256x128xbf16, #tpu.memory_space<vmem>>, %arg5: memref<256x1xf32, #tpu.memory_space<vmem>>, %arg6: memref<256x1xf32, #tpu.memory_space<vmem>>, %arg7: memref<512x256xbf16, #tpu.memory_space<vmem>>, %arg8: memref<256x1xf32, #tpu.memory_space<vmem>>, %arg9: memref<2x128x256xbf16, #tpu.memory_space<vmem>>, %arg10: memref<1x256xf32, #tpu.memory_space<vmem>>, %arg11: memref<1x256xf32, #tpu.memory_space<vmem>>, %arg12: memref<1x256xf32, #tpu.memory_space<vmem>>, %arg13: memref<256x256xbf16, #tpu.memory_space<vmem>>, %arg14: memref<1x8x256xf32, #tpu.memory_space<vmem>>) attributes {dimension_semantics = [#tpu.dimension_semantics<parallel>], iteration_bounds = array<i64: 2>, scalar_prefetch = 0 : i64, scratch_operands = 0 : i64, tpu.core_type = #tpu.core_type<tc>, window_params = [{transform_indices = @transform_0, window_bounds = array<i64: 1, 32, 128>}, {pipeline_mode = #tpu.pipeline_mode<synchronous>, transform_indices = @transform_1, window_bounds = array<i64: 256, 32>}, {pipeline_mode = #tpu.pipeline_mode<synchronous>, transform_indices = @transform_2, window_bounds = array<i64: 2, 8, 128>}, {pipeline_mode = #tpu.pipeline_mode<synchronous>, transform_indices = @transform_3, window_bounds = array<i64: 256, 128>}, {pipeline_mode = #tpu.pipeline_mode<synchronous>, transform_indices = @transform_4, window_bounds = array<i64: 256, 1>}, {pipeline_mode = #tpu.pipeline_mode<synchronous>, transform_indices = @transform_5, window_bounds = array<i64: 256, 1>}, {pipeline_mode = #tpu.pipeline_mode<synchronous>, transform_indices = @transform_6, window_bounds = array<i64: 512, 256>}, {pipeline_mode = #tpu.pipeline_mode<synchronous>, transform_indices = @transform_7, window_bounds = array<i64: 256, 1>}, {pipeline_mode = #tpu.pipeline_mode<synchronous>, transform_indices = @transform_8, window_bounds = array<i64: 2, 128, 256>}, {pipeline_mode = #tpu.pipeline_mode<synchronous>, transform_indices = @transform_9, window_bounds = array<i64: 1, 256>}, {pipeline_mode = #tpu.pipeline_mode<synchronous>, transform_indices = @transform_10, window_bounds = array<i64: 1, 256>}, {pipeline_mode = #tpu.pipeline_mode<synchronous>, transform_indices = @transform_11, window_bounds = array<i64: 1, 256>}, {pipeline_mode = #tpu.pipeline_mode<synchronous>, transform_indices = @transform_12, window_bounds = array<i64: 256, 256>}, {transform_indices = @transform_13, window_bounds = array<i64: 1, 8, 256>}]} {
    %c0 = arith.constant 0 : index
    %c0_0 = arith.constant 0 : index
    %c0_1 = arith.constant 0 : index
    %0 = vector.load %arg1[%c0, %c0_0, %c0_1] : memref<1x32x128xbf16, #tpu.memory_space<vmem>>, vector<1x32x128xbf16>
    %1 = vector.shape_cast %0 : vector<1x32x128xbf16> to vector<32x128xbf16>
    %c0_2 = arith.constant 0 : index
    %c0_3 = arith.constant 0 : index
    %2 = vector.load %arg4[%c0_2, %c0_3] : memref<256x128xbf16, #tpu.memory_space<vmem>>, vector<256x128xbf16>
    %cst = arith.constant dense<0.000000e+00> : vector<256x32xf32>
    %3 = tpu.matmul %2, %1, %cst {dimension_numbers = #tpu.dot_dimension_numbers<[1], [1], [0], [0], [0, 0, 1, 0], [], []>} : vector<256x128xbf16>, vector<32x128xbf16>, vector<256x32xf32> -> vector<256x32xf32>
    %c0_4 = arith.constant 0 : index
    %c0_5 = arith.constant 0 : index
    %4 = vector.load %arg5[%c0_4, %c0_5] : memref<256x1xf32, #tpu.memory_space<vmem>>, vector<256x1xf32>
    %c0_6 = arith.constant 0 : index
    %c0_7 = arith.constant 0 : index
    %5 = vector.load %arg6[%c0_6, %c0_7] : memref<256x1xf32, #tpu.memory_space<vmem>>, vector<256x1xf32>
    %cst_8 = arith.constant dense<0.000000e+00> : vector<32xf32>
    %6 = vector.multi_reduction <add>, %3, %cst_8 [0] : vector<256x32xf32> to vector<32xf32>
    %7 = vector.shape_cast %6 : vector<32xf32> to vector<1x32xf32>
    %cst_9 = arith.constant 2.560000e+02 : f32
    %8 = vector.broadcast %cst_9 : f32 to vector<1x32xf32>
    %9 = arith.divf %7, %8 : vector<1x32xf32>
    %10 = vector.broadcast %9 : vector<1x32xf32> to vector<256x32xf32>
    %11 = arith.subf %3, %10 : vector<256x32xf32>
    %12 = arith.mulf %11, %11 : vector<256x32xf32>
    %cst_10 = arith.constant dense<0.000000e+00> : vector<32xf32>
    %13 = vector.multi_reduction <add>, %12, %cst_10 [0] : vector<256x32xf32> to vector<32xf32>
    %14 = vector.shape_cast %13 : vector<32xf32> to vector<1x32xf32>
    %cst_11 = arith.constant 2.560000e+02 : f32
    %15 = vector.broadcast %cst_11 : f32 to vector<1x32xf32>
    %16 = arith.divf %14, %15 : vector<1x32xf32>
    %17 = vector.broadcast %9 : vector<1x32xf32> to vector<256x32xf32>
    %18 = arith.subf %3, %17 : vector<256x32xf32>
    %cst_12 = arith.constant 9.99999997E-7 : f32
    %19 = vector.broadcast %cst_12 : f32 to vector<1x32xf32>
    %20 = arith.addf %16, %19 : vector<1x32xf32>
    %21 = math.rsqrt %20 : vector<1x32xf32>
    %22 = vector.broadcast %21 : vector<1x32xf32> to vector<256x32xf32>
    %23 = arith.mulf %18, %22 : vector<256x32xf32>
    %24 = vector.broadcast %4 : vector<256x1xf32> to vector<256x32xf32>
    %25 = arith.mulf %23, %24 : vector<256x32xf32>
    %26 = vector.broadcast %5 : vector<256x1xf32> to vector<256x32xf32>
    %27 = arith.addf %25, %26 : vector<256x32xf32>
    %28 = arith.truncf %27 : vector<256x32xf32> to vector<256x32xbf16>
    %c0_13 = arith.constant 0 : index
    %c0_14 = arith.constant 0 : index
    %29 = vector.load %arg7[%c0_13, %c0_14] : memref<512x256xbf16, #tpu.memory_space<vmem>>, vector<512x256xbf16>
    %cst_15 = arith.constant dense<0.000000e+00> : vector<512x32xf32>
    %30 = tpu.matmul %29, %28, %cst_15 {dimension_numbers = #tpu.dot_dimension_numbers<[1], [0], [0], [1], [0, 0, 1, 1], [], []>} : vector<512x256xbf16>, vector<256x32xbf16>, vector<512x32xf32> -> vector<512x32xf32>
    %31 = vector.extract_strided_slice %30 {offsets = [0, 0], sizes = [256, 32], strides = [1, 1]} : vector<512x32xf32> to vector<256x32xf32>
    %c0_16 = arith.constant 0 : index
    %c0_17 = arith.constant 0 : index
    %32 = vector.load %arg2[%c0_16, %c0_17] : memref<256x32xf32, #tpu.memory_space<vmem>>, vector<256x32xf32>
    %33 = arith.addf %31, %32 : vector<256x32xf32>
    %34 = vector.extract_strided_slice %30 {offsets = [256, 0], sizes = [256, 32], strides = [1, 1]} : vector<512x32xf32> to vector<256x32xf32>
    %c0_18 = arith.constant 0 : index
    %c0_19 = arith.constant 0 : index
    %35 = vector.load %arg8[%c0_18, %c0_19] : memref<256x1xf32, #tpu.memory_space<vmem>>, vector<256x1xf32>
    %36 = vector.broadcast %35 : vector<256x1xf32> to vector<256x32xf32>
    %37 = arith.addf %34, %36 : vector<256x32xf32>
    %38 = arith.truncf %33 : vector<256x32xf32> to vector<256x32xbf16>
    %39 = vector.shape_cast %38 : vector<256x32xbf16> to vector<2x128x32xbf16>
    %40 = arith.truncf %37 : vector<256x32xf32> to vector<256x32xbf16>
    %41 = vector.shape_cast %40 : vector<256x32xbf16> to vector<2x128x32xbf16>
    %c0_20 = arith.constant 0 : index
    %c0_21 = arith.constant 0 : index
    %c0_22 = arith.constant 0 : index
    %42 = vector.load %arg3[%c0_20, %c0_21, %c0_22] : memref<2x8x128xbf16, #tpu.memory_space<vmem>>, vector<2x8x128xbf16>
    %cst_23 = arith.constant dense<0.000000e+00> : vector<2x8x32xf32>
    %43 = tpu.matmul %42, %39, %cst_23 {dimension_numbers = #tpu.dot_dimension_numbers<[2], [1], [1], [2], [0, 0, 0, 1, 1, 2], [0], [0]>} : vector<2x8x128xbf16>, vector<2x128x32xbf16>, vector<2x8x32xf32> -> vector<2x8x32xf32>
    %cst_24 = arith.constant dense<0xFF800000> : vector<2x8xf32>
    %44 = vector.multi_reduction <maximumf>, %43, %cst_24 [2] : vector<2x8x32xf32> to vector<2x8xf32>
    %45 = vector.shape_cast %44 : vector<2x8xf32> to vector<2x8x1xf32>
    %46 = vector.broadcast %45 : vector<2x8x1xf32> to vector<2x8x32xf32>
    %47 = arith.subf %43, %46 : vector<2x8x32xf32>
    %48 = math.exp %47 : vector<2x8x32xf32>
    %cst_25 = arith.constant dense<0.000000e+00> : vector<2x8xf32>
    %49 = vector.multi_reduction <add>, %48, %cst_25 [2] : vector<2x8x32xf32> to vector<2x8xf32>
    %50 = vector.shape_cast %49 : vector<2x8xf32> to vector<2x8x1xf32>
    %51 = tpu.reciprocal %50 {approx = true} : vector<2x8x1xf32> -> vector<2x8x1xf32>
    %52 = vector.broadcast %51 : vector<2x8x1xf32> to vector<2x8x32xf32>
    %53 = arith.mulf %48, %52 : vector<2x8x32xf32>
    %54 = arith.truncf %53 : vector<2x8x32xf32> to vector<2x8x32xbf16>
    %cst_26 = arith.constant dense<0.000000e+00> : vector<2x8x128xf32>
    %55 = tpu.matmul %54, %41, %cst_26 {dimension_numbers = #tpu.dot_dimension_numbers<[2], [2], [1], [1], [0, 0, 0, 1, 1, 1], [0], [0]>} : vector<2x8x32xbf16>, vector<2x128x32xbf16>, vector<2x8x128xf32> -> vector<2x8x128xf32>
    %56 = arith.truncf %55 : vector<2x8x128xf32> to vector<2x8x128xbf16>
    %c0_27 = arith.constant 0 : index
    %c0_28 = arith.constant 0 : index
    %c0_29 = arith.constant 0 : index
    %57 = vector.load %arg9[%c0_27, %c0_28, %c0_29] : memref<2x128x256xbf16, #tpu.memory_space<vmem>>, vector<2x128x256xbf16>
    %cst_30 = arith.constant dense<0.000000e+00> : vector<2x8x256xf32>
    %58 = tpu.matmul %56, %57, %cst_30 {dimension_numbers = #tpu.dot_dimension_numbers<[2], [1], [1], [2], [0, 0, 0, 1, 1, 2], [0], [0]>} : vector<2x8x128xbf16>, vector<2x128x256xbf16>, vector<2x8x256xf32> -> vector<2x8x256xf32>
    %cst_31 = arith.constant dense<0.000000e+00> : vector<8x256xf32>
    %59 = vector.multi_reduction <add>, %58, %cst_31 [0] : vector<2x8x256xf32> to vector<8x256xf32>
    %c0_32 = arith.constant 0 : index
    %c0_33 = arith.constant 0 : index
    %60 = vector.load %arg10[%c0_32, %c0_33] : memref<1x256xf32, #tpu.memory_space<vmem>>, vector<1x256xf32>
    %61 = vector.broadcast %60 : vector<1x256xf32> to vector<8x256xf32>
    %62 = arith.addf %59, %61 : vector<8x256xf32>
    %c0_34 = arith.constant 0 : index
    %c0_35 = arith.constant 0 : index
    %63 = vector.load %arg11[%c0_34, %c0_35] : memref<1x256xf32, #tpu.memory_space<vmem>>, vector<1x256xf32>
    %c0_36 = arith.constant 0 : index
    %c0_37 = arith.constant 0 : index
    %64 = vector.load %arg12[%c0_36, %c0_37] : memref<1x256xf32, #tpu.memory_space<vmem>>, vector<1x256xf32>
    %cst_38 = arith.constant dense<0.000000e+00> : vector<8xf32>
    %65 = vector.multi_reduction <add>, %62, %cst_38 [1] : vector<8x256xf32> to vector<8xf32>
    %66 = vector.shape_cast %65 : vector<8xf32> to vector<8x1xf32>
    %cst_39 = arith.constant 2.560000e+02 : f32
    %67 = vector.broadcast %cst_39 : f32 to vector<8x1xf32>
    %68 = arith.divf %66, %67 : vector<8x1xf32>
    %69 = vector.broadcast %68 : vector<8x1xf32> to vector<8x256xf32>
    %70 = arith.subf %62, %69 : vector<8x256xf32>
    %71 = arith.mulf %70, %70 : vector<8x256xf32>
    %cst_40 = arith.constant dense<0.000000e+00> : vector<8xf32>
    %72 = vector.multi_reduction <add>, %71, %cst_40 [1] : vector<8x256xf32> to vector<8xf32>
    %73 = vector.shape_cast %72 : vector<8xf32> to vector<8x1xf32>
    %cst_41 = arith.constant 2.560000e+02 : f32
    %74 = vector.broadcast %cst_41 : f32 to vector<8x1xf32>
    %75 = arith.divf %73, %74 : vector<8x1xf32>
    %76 = vector.broadcast %68 : vector<8x1xf32> to vector<8x256xf32>
    %77 = arith.subf %62, %76 : vector<8x256xf32>
    %cst_42 = arith.constant 9.99999997E-7 : f32
    %78 = vector.broadcast %cst_42 : f32 to vector<8x1xf32>
    %79 = arith.addf %75, %78 : vector<8x1xf32>
    %80 = math.rsqrt %79 : vector<8x1xf32>
    %81 = vector.broadcast %80 : vector<8x1xf32> to vector<8x256xf32>
    %82 = arith.mulf %77, %81 : vector<8x256xf32>
    %83 = vector.broadcast %63 : vector<1x256xf32> to vector<8x256xf32>
    %84 = arith.mulf %82, %83 : vector<8x256xf32>
    %85 = vector.broadcast %64 : vector<1x256xf32> to vector<8x256xf32>
    %86 = arith.addf %84, %85 : vector<8x256xf32>
    %87 = arith.truncf %86 : vector<8x256xf32> to vector<8x256xbf16>
    %c0_43 = arith.constant 0 : index
    %c0_44 = arith.constant 0 : index
    %88 = vector.load %arg13[%c0_43, %c0_44] : memref<256x256xbf16, #tpu.memory_space<vmem>>, vector<256x256xbf16>
    %cst_45 = arith.constant dense<0.000000e+00> : vector<8x256xf32>
    %89 = tpu.matmul %87, %88, %cst_45 {dimension_numbers = #tpu.dot_dimension_numbers<[1], [0], [0], [1], [0, 0, 1, 1], [], []>} : vector<8x256xbf16>, vector<256x256xbf16>, vector<8x256xf32> -> vector<8x256xf32>
    %c0_46 = arith.constant 0 : index
    %c0_47 = arith.constant 0 : index
    %c0_48 = arith.constant 0 : index
    %90 = vector.load %arg14[%c0_46, %c0_47, %c0_48] : memref<1x8x256xf32, #tpu.memory_space<vmem>>, vector<1x8x256xf32>
    %91 = vector.shape_cast %90 : vector<1x8x256xf32> to vector<8x256xf32>
    %92 = vector.shape_cast %89 : vector<8x256xf32> to vector<1x8x256xf32>
    tpu.vector_store %arg14[%c0_46, %c0_47, %c0_48], %92 {strides = array<i32>} : memref<1x8x256xf32, #tpu.memory_space<vmem>>, vector<1x8x256xf32>,
    return
  }
  func.func @transform_0(%arg0: i32) -> (i32, i32, i32) {
    %c0_i32 = arith.constant 0 : i32
    %c0_i32_0 = arith.constant 0 : i32
    %c0_i32_1 = arith.constant 0 : i32
    return %arg0, %c0_i32, %c0_i32_0 : i32, i32, i32
  }
  func.func @transform_1(%arg0: i32) -> (i32, i32) {
    %c0_i32 = arith.constant 0 : i32
    %c0_i32_0 = arith.constant 0 : i32
    %c0_i32_1 = arith.constant 0 : i32
    return %c0_i32, %c0_i32_0 : i32, i32
  }
  func.func @transform_2(%arg0: i32) -> (i32, i32, i32) {
    %c0_i32 = arith.constant 0 : i32
    %c0_i32_0 = arith.constant 0 : i32
    %c0_i32_1 = arith.constant 0 : i32
    %c0_i32_2 = arith.constant 0 : i32
    return %c0_i32, %c0_i32_0, %c0_i32_1 : i32, i32, i32
  }
  func.func @transform_3(%arg0: i32) -> (i32, i32) {
    %c0_i32 = arith.constant 0 : i32
    %c0_i32_0 = arith.constant 0 : i32
    %c0_i32_1 = arith.constant 0 : i32
    return %c0_i32, %c0_i32_0 : i32, i32
  }
  func.func @transform_4(%arg0: i32) -> (i32, i32) {
    %c0_i32 = arith.constant 0 : i32
    %c0_i32_0 = arith.constant 0 : i32
    %c0_i32_1 = arith.constant 0 : i32
    return %c0_i32, %c0_i32_0 : i32, i32
  }
  func.func @transform_5(%arg0: i32) -> (i32, i32) {
    %c0_i32 = arith.constant 0 : i32
    %c0_i32_0 = arith.constant 0 : i32
    %c0_i32_1 = arith.constant 0 : i32
    return %c0_i32, %c0_i32_0 : i32, i32
  }
  func.func @transform_6(%arg0: i32) -> (i32, i32) {
    %c0_i32 = arith.constant 0 : i32
    %c0_i32_0 = arith.constant 0 : i32
    %c0_i32_1 = arith.constant 0 : i32
    return %c0_i32, %c0_i32_0 : i32, i32
  }
  func.func @transform_7(%arg0: i32) -> (i32, i32) {
    %c0_i32 = arith.constant 0 : i32
    %c0_i32_0 = arith.constant 0 : i32
    %c0_i32_1 = arith.constant 0 : i32
    return %c0_i32, %c0_i32_0 : i32, i32
  }
  func.func @transform_8(%arg0: i32) -> (i32, i32, i32) {
    %c0_i32 = arith.constant 0 : i32
    %c0_i32_0 = arith.constant 0 : i32
    %c0_i32_1 = arith.constant 0 : i32
    %c0_i32_2 = arith.constant 0 : i32
    return %c0_i32, %c0_i32_0, %c0_i32_1 : i32, i32, i32
  }
  func.func @transform_9(%arg0: i32) -> (i32, i32) {
    %c0_i32 = arith.constant 0 : i32
    %c0_i32_0 = arith.constant 0 : i32
    %c0_i32_1 = arith.constant 0 : i32
    return %c0_i32, %c0_i32_0 : i32, i32
  }
  func.func @transform_10(%arg0: i32) -> (i32, i32) {
    %c0_i32 = arith.constant 0 : i32
    %c0_i32_0 = arith.constant 0 : i32
    %c0_i32_1 = arith.constant 0 : i32
    return %c0_i32, %c0_i32_0 : i32, i32
  }
  func.func @transform_11(%arg0: i32) -> (i32, i32) {
    %c0_i32 = arith.constant 0 : i32
    %c0_i32_0 = arith.constant 0 : i32
    %c0_i32_1 = arith.constant 0 : i32
    return %c0_i32, %c0_i32_0 : i32, i32
  }
  func.func @transform_12(%arg0: i32) -> (i32, i32) {
    %c0_i32 = arith.constant 0 : i32
    %c0_i32_0 = arith.constant 0 : i32
    %c0_i32_1 = arith.constant 0 : i32
    return %c0_i32, %c0_i32_0 : i32, i32
  }
  func.func @transform_13(%arg0: i32) -> (i32, i32, i32) {
    %c0_i32 = arith.constant 0 : i32
    %c0_i32_0 = arith.constant 0 : i32
    %c0_i32_1 = arith.constant 0 : i32
    return %arg0, %c0_i32, %c0_i32_0 : i32, i32, i32
  }
}

module attributes {stable_mosaic.version = 11 : i64} {
  func.func @resampler_kernel(%arg0: i32, %arg1: memref<1x32x128xbf16, #tpu.memory_space<vmem>>, %arg2: memref<256x32xf32, #tpu.memory_space<vmem>>, %arg3: memref<2x8x128xbf16, #tpu.memory_space<vmem>>, %arg4: memref<256x128xbf16, #tpu.memory_space<vmem>>, %arg5: memref<256x1xf32, #tpu.memory_space<vmem>>, %arg6: memref<256x1xf32, #tpu.memory_space<vmem>>, %arg7: memref<512x256xbf16, #tpu.memory_space<vmem>>, %arg8: memref<256x1xf32, #tpu.memory_space<vmem>>, %arg9: memref<2x128x256xbf16, #tpu.memory_space<vmem>>, %arg10: memref<1x256xf32, #tpu.memory_space<vmem>>, %arg11: memref<1x256xf32, #tpu.memory_space<vmem>>, %arg12: memref<1x256xf32, #tpu.memory_space<vmem>>, %arg13: memref<256x256xbf16, #tpu.memory_space<vmem>>, %arg14: memref<1x8x256xf32, #tpu.memory_space<vmem>>) attributes {dimension_semantics = [#tpu.dimension_semantics<parallel>], iteration_bounds = array<i64: 2>, scalar_prefetch = 0 : i64, scratch_operands = 0 : i64, tpu.core_type = #tpu.core_type<tc>, window_params = [{transform_indices = @transform_0, window_bounds = array<i64: 1, 32, 128>}, {pipeline_mode = #tpu.pipeline_mode<synchronous>, transform_indices = @transform_1, window_bounds = array<i64: 256, 32>}, {pipeline_mode = #tpu.pipeline_mode<synchronous>, transform_indices = @transform_2, window_bounds = array<i64: 2, 8, 128>}, {pipeline_mode = #tpu.pipeline_mode<synchronous>, transform_indices = @transform_3, window_bounds = array<i64: 256, 128>}, {pipeline_mode = #tpu.pipeline_mode<synchronous>, transform_indices = @transform_4, window_bounds = array<i64: 256, 1>}, {pipeline_mode = #tpu.pipeline_mode<synchronous>, transform_indices = @transform_5, window_bounds = array<i64: 256, 1>}, {pipeline_mode = #tpu.pipeline_mode<synchronous>, transform_indices = @transform_6, window_bounds = array<i64: 512, 256>}, {pipeline_mode = #tpu.pipeline_mode<synchronous>, transform_indices = @transform_7, window_bounds = array<i64: 256, 1>}, {pipeline_mode = #tpu.pipeline_mode<synchronous>, transform_indices = @transform_8, window_bounds = array<i64: 2, 128, 256>}, {pipeline_mode = #tpu.pipeline_mode<synchronous>, transform_indices = @transform_9, window_bounds = array<i64: 1, 256>}, {pipeline_mode = #tpu.pipeline_mode<synchronous>, transform_indices = @transform_10, window_bounds = array<i64: 1, 256>}, {pipeline_mode = #tpu.pipeline_mode<synchronous>, transform_indices = @transform_11, window_bounds = array<i64: 1, 256>}, {pipeline_mode = #tpu.pipeline_mode<synchronous>, transform_indices = @transform_12, window_bounds = array<i64: 256, 256>}, {transform_indices = @transform_13, window_bounds = array<i64: 1, 8, 256>}]} {
    %c0 = arith.constant 0 : index
    %c0_0 = arith.constant 0 : index
    %c0_1 = arith.constant 0 : index
    %0 = vector.load %arg1[%c0, %c0_0, %c0_1] : memref<1x32x128xbf16, #tpu.memory_space<vmem>>, vector<1x32x128xbf16>
    %1 = vector.shape_cast %0 : vector<1x32x128xbf16> to vector<32x128xbf16>
    %c0_2 = arith.constant 0 : index
    %c0_3 = arith.constant 0 : index
    %2 = vector.load %arg4[%c0_2, %c0_3] : memref<256x128xbf16, #tpu.memory_space<vmem>>, vector<256x128xbf16>
    %cst = arith.constant dense<0.000000e+00> : vector<256x32xf32>
    %3 = tpu.matmul %2, %1, %cst {dimension_numbers = #tpu.dot_dimension_numbers<[1], [1], [0], [0], [0, 0, 1, 0], [], []>} : vector<256x128xbf16>, vector<32x128xbf16>, vector<256x32xf32> -> vector<256x32xf32>
    %c0_4 = arith.constant 0 : index
    %c0_5 = arith.constant 0 : index
    %4 = vector.load %arg5[%c0_4, %c0_5] : memref<256x1xf32, #tpu.memory_space<vmem>>, vector<256x1xf32>
    %c0_6 = arith.constant 0 : index
    %c0_7 = arith.constant 0 : index
    %5 = vector.load %arg6[%c0_6, %c0_7] : memref<256x1xf32, #tpu.memory_space<vmem>>, vector<256x1xf32>
    %cst_8 = arith.constant dense<0.000000e+00> : vector<32xf32>
    %6 = vector.multi_reduction <add>, %3, %cst_8 [0] : vector<256x32xf32> to vector<32xf32>
    %7 = vector.shape_cast %6 : vector<32xf32> to vector<1x32xf32>
    %cst_9 = arith.constant 2.560000e+02 : f32
    %8 = vector.broadcast %cst_9 : f32 to vector<1x32xf32>
    %9 = arith.divf %7, %8 : vector<1x32xf32>
    %10 = vector.broadcast %9 : vector<1x32xf32> to vector<256x32xf32>
    %11 = arith.subf %3, %10 : vector<256x32xf32>
    %12 = arith.mulf %11, %11 : vector<256x32xf32>
    %cst_10 = arith.constant dense<0.000000e+00> : vector<32xf32>
    %13 = vector.multi_reduction <add>, %12, %cst_10 [0] : vector<256x32xf32> to vector<32xf32>
    %14 = vector.shape_cast %13 : vector<32xf32> to vector<1x32xf32>
    %cst_11 = arith.constant 2.560000e+02 : f32
    %15 = vector.broadcast %cst_11 : f32 to vector<1x32xf32>
    %16 = arith.divf %14, %15 : vector<1x32xf32>
    %17 = vector.broadcast %9 : vector<1x32xf32> to vector<256x32xf32>
    %18 = arith.subf %3, %17 : vector<256x32xf32>
    %cst_12 = arith.constant 9.99999997E-7 : f32
    %19 = vector.broadcast %cst_12 : f32 to vector<1x32xf32>
    %20 = arith.addf %16, %19 : vector<1x32xf32>
    %21 = math.rsqrt %20 : vector<1x32xf32>
    %22 = vector.broadcast %21 : vector<1x32xf32> to vector<256x32xf32>
    %23 = arith.mulf %18, %22 : vector<256x32xf32>
    %24 = vector.broadcast %4 : vector<256x1xf32> to vector<256x32xf32>
    %25 = arith.mulf %23, %24 : vector<256x32xf32>
    %26 = vector.broadcast %5 : vector<256x1xf32> to vector<256x32xf32>
    %27 = arith.addf %25, %26 : vector<256x32xf32>
    %28 = arith.truncf %27 : vector<256x32xf32> to vector<256x32xbf16>
    %c0_13 = arith.constant 0 : index
    %c0_14 = arith.constant 0 : index
    %29 = vector.load %arg7[%c0_13, %c0_14] : memref<512x256xbf16, #tpu.memory_space<vmem>>, vector<512x256xbf16>
    %cst_15 = arith.constant dense<0.000000e+00> : vector<512x32xf32>
    %30 = tpu.matmul %29, %28, %cst_15 {dimension_numbers = #tpu.dot_dimension_numbers<[1], [0], [0], [1], [0, 0, 1, 1], [], []>} : vector<512x256xbf16>, vector<256x32xbf16>, vector<512x32xf32> -> vector<512x32xf32>
    %31 = vector.extract_strided_slice %30 {offsets = [0, 0], sizes = [256, 32], strides = [1, 1]} : vector<512x32xf32> to vector<256x32xf32>
    %c0_16 = arith.constant 0 : index
    %c0_17 = arith.constant 0 : index
    %32 = vector.load %arg2[%c0_16, %c0_17] : memref<256x32xf32, #tpu.memory_space<vmem>>, vector<256x32xf32>
    %33 = arith.addf %31, %32 : vector<256x32xf32>
    %34 = vector.extract_strided_slice %30 {offsets = [256, 0], sizes = [256, 32], strides = [1, 1]} : vector<512x32xf32> to vector<256x32xf32>
    %c0_18 = arith.constant 0 : index
    %c0_19 = arith.constant 0 : index
    %35 = vector.load %arg8[%c0_18, %c0_19] : memref<256x1xf32, #tpu.memory_space<vmem>>, vector<256x1xf32>
    %36 = vector.broadcast %35 : vector<256x1xf32> to vector<256x32xf32>
    %37 = arith.addf %34, %36 : vector<256x32xf32>
    %38 = arith.truncf %33 : vector<256x32xf32> to vector<256x32xbf16>
    %39 = vector.shape_cast %38 : vector<256x32xbf16> to vector<2x128x32xbf16>
    %40 = arith.truncf %37 : vector<256x32xf32> to vector<256x32xbf16>
    %41 = vector.shape_cast %40 : vector<256x32xbf16> to vector<2x128x32xbf16>
    %c0_20 = arith.constant 0 : index
    %c0_21 = arith.constant 0 : index
    %c0_22 = arith.constant 0 : index
    %42 = vector.load %arg3[%c0_20, %c0_21, %c0_22] : memref<2x8x128xbf16, #tpu.memory_space<vmem>>, vector<2x8x128xbf16>
    %cst_23 = arith.constant dense<0.000000e+00> : vector<2x8x32xf32>
    %43 = tpu.matmul %42, %39, %cst_23 {dimension_numbers = #tpu.dot_dimension_numbers<[2], [1], [1], [2], [0, 0, 0, 1, 1, 2], [0], [0]>} : vector<2x8x128xbf16>, vector<2x128x32xbf16>, vector<2x8x32xf32> -> vector<2x8x32xf32>
    %cst_24 = arith.constant dense<0xFF800000> : vector<2x8xf32>
    %44 = vector.multi_reduction <maximumf>, %43, %cst_24 [2] : vector<2x8x32xf32> to vector<2x8xf32>
    %45 = vector.shape_cast %44 : vector<2x8xf32> to vector<2x8x1xf32>
    %46 = vector.broadcast %45 : vector<2x8x1xf32> to vector<2x8x32xf32>
    %47 = arith.subf %43, %46 : vector<2x8x32xf32>
    %48 = math.exp %47 : vector<2x8x32xf32>
    %cst_25 = arith.constant dense<0.000000e+00> : vector<2x8xf32>
    %49 = vector.multi_reduction <add>, %48, %cst_25 [2] : vector<2x8x32xf32> to vector<2x8xf32>
    %50 = vector.shape_cast %49 : vector<2x8xf32> to vector<2x8x1xf32>
    %51 = tpu.reciprocal %50 {approx = true} : vector<2x8x1xf32> -> vector<2x8x1xf32>
    %52 = vector.broadcast %51 : vector<2x8x1xf32> to vector<2x8x32xf32>
    %53 = arith.mulf %48, %52 : vector<2x8x32xf32>
    %54 = arith.truncf %53 : vector<2x8x32xf32> to vector<2x8x32xbf16>
    %cst_26 = arith.constant dense<0.000000e+00> : vector<2x8x128xf32>
    %55 = tpu.matmul %54, %41, %cst_26 {dimension_numbers = #tpu.dot_dimension_numbers<[2], [2], [1], [1], [0, 0, 0, 1, 1, 1], [0], [0]>} : vector<2x8x32xbf16>, vector<2x128x32xbf16>, vector<2x8x128xf32> -> vector<2x8x128xf32>
    %56 = arith.truncf %55 : vector<2x8x128xf32> to vector<2x8x128xbf16>
    %c0_27 = arith.constant 0 : index
    %c0_28 = arith.constant 0 : index
    %c0_29 = arith.constant 0 : index
    %57 = vector.load %arg9[%c0_27, %c0_28, %c0_29] : memref<2x128x256xbf16, #tpu.memory_space<vmem>>, vector<2x128x256xbf16>
    %cst_30 = arith.constant dense<0.000000e+00> : vector<2x8x256xf32>
    %58 = tpu.matmul %56, %57, %cst_30 {dimension_numbers = #tpu.dot_dimension_numbers<[2], [1], [1], [2], [0, 0, 0, 1, 1, 2], [0], [0]>} : vector<2x8x128xbf16>, vector<2x128x256xbf16>, vector<2x8x256xf32> -> vector<2x8x256xf32>
    %cst_31 = arith.constant dense<0.000000e+00> : vector<8x256xf32>
    %59 = vector.multi_reduction <add>, %58, %cst_31 [0] : vector<2x8x256xf32> to vector<8x256xf32>
    %c0_32 = arith.constant 0 : index
    %c0_33 = arith.constant 0 : index
    %60 = vector.load %arg10[%c0_32, %c0_33] : memref<1x256xf32, #tpu.memory_space<vmem>>, vector<1x256xf32>
    %61 = vector.broadcast %60 : vector<1x256xf32> to vector<8x256xf32>
    %62 = arith.addf %59, %61 : vector<8x256xf32>
    %c0_34 = arith.constant 0 : index
    %c0_35 = arith.constant 0 : index
    %63 = vector.load %arg11[%c0_34, %c0_35] : memref<1x256xf32, #tpu.memory_space<vmem>>, vector<1x256xf32>
    %c0_36 = arith.constant 0 : index
    %c0_37 = arith.constant 0 : index
    %64 = vector.load %arg12[%c0_36, %c0_37] : memref<1x256xf32, #tpu.memory_space<vmem>>, vector<1x256xf32>
    %cst_38 = arith.constant dense<0.000000e+00> : vector<8xf32>
    %65 = vector.multi_reduction <add>, %62, %cst_38 [1] : vector<8x256xf32> to vector<8xf32>
    %66 = vector.shape_cast %65 : vector<8xf32> to vector<8x1xf32>
    %cst_39 = arith.constant 2.560000e+02 : f32
    %67 = vector.broadcast %cst_39 : f32 to vector<8x1xf32>
    %68 = arith.divf %66, %67 : vector<8x1xf32>
    %69 = vector.broadcast %68 : vector<8x1xf32> to vector<8x256xf32>
    %70 = arith.subf %62, %69 : vector<8x256xf32>
    %71 = arith.mulf %70, %70 : vector<8x256xf32>
    %cst_40 = arith.constant dense<0.000000e+00> : vector<8xf32>
    %72 = vector.multi_reduction <add>, %71, %cst_40 [1] : vector<8x256xf32> to vector<8xf32>
    %73 = vector.shape_cast %72 : vector<8xf32> to vector<8x1xf32>
    %cst_41 = arith.constant 2.560000e+02 : f32
    %74 = vector.broadcast %cst_41 : f32 to vector<8x1xf32>
    %75 = arith.divf %73, %74 : vector<8x1xf32>
    %76 = vector.broadcast %68 : vector<8x1xf32> to vector<8x256xf32>
    %77 = arith.subf %62, %76 : vector<8x256xf32>
    %cst_42 = arith.constant 9.99999997E-7 : f32
    %78 = vector.broadcast %cst_42 : f32 to vector<8x1xf32>
    %79 = arith.addf %75, %78 : vector<8x1xf32>
    %80 = math.rsqrt %79 : vector<8x1xf32>
    %81 = vector.broadcast %80 : vector<8x1xf32> to vector<8x256xf32>
    %82 = arith.mulf %77, %81 : vector<8x256xf32>
    %83 = vector.broadcast %63 : vector<1x256xf32> to vector<8x256xf32>
    %84 = arith.mulf %82, %83 : vector<8x256xf32>
    %85 = vector.broadcast %64 : vector<1x256xf32> to vector<8x256xf32>
    %86 = arith.addf %84, %85 : vector<8x256xf32>
    %87 = arith.truncf %86 : vector<8x256xf32> to vector<8x256xbf16>
    %c0_43 = arith.constant 0 : index
    %c0_44 = arith.constant 0 : index
    %88 = vector.load %arg13[%c0_43, %c0_44] : memref<256x256xbf16, #tpu.memory_space<vmem>>, vector<256x256xbf16>
    %cst_45 = arith.constant dense<0.000000e+00> : vector<8x256xf32>
    %89 = tpu.matmul %87, %88, %cst_45 {dimension_numbers = #tpu.dot_dimension_numbers<[1], [0], [0], [1], [0, 0, 1, 1], [], []>} : vector<8x256xbf16>, vector<256x256xbf16>, vector<8x256xf32> -> vector<8x256xf32>
    %c0_46 = arith.constant 0 : index
    %c0_47 = arith.constant 0 : index
    %c0_48 = arith.constant 0 : index
    %90 = vector.load %arg14[%c0_46, %c0_47, %c0_48] : memref<1x8x256xf32, #tpu.memory_space<vmem>>, vector<1x8x256xf32>
    %91 = vector.shape_cast %90 : vector<1x8x256xf32> to vector<8x256xf32>
    %92 = vector.shape_cast %89 : vector<8x256xf32> to vector<1x8x256xf32>
    tpu.vector_store %arg14[%c0_46, %c0_47, %c0_48], %92 {strides = array<i32>} : memref<1x8x256xf32, #tpu.memory_space<vmem>>, vector<1x8x256xf32>,
    return
  }
  func.func @transform_0(%arg0: i32) -> (i32, i32, i32) {
    %c0_i32 = arith.constant 0 : i32
    %c0_i32_0 = arith.constant 0 : i32
    %c0_i32_1 = arith.constant 0 : i32
    return %arg0, %c0_i32, %c0_i32_0 : i32, i32, i32
  }
  func.func @transform_1(%arg0: i32) -> (i32, i32) {
    %c0_i32 = arith.constant 0 : i32
    %c0_i32_0 = arith.constant 0 : i32
    %c0_i32_1 = arith.constant 0 : i32
    return %c0_i32, %c0_i32_0 : i32, i32
  }
  func.func @transform_2(%arg0: i32) -> (i32, i32, i32) {
    %c0_i32 = arith.constant 0 : i32
    %c0_i32_0 = arith.constant 0 : i32
    %c0_i32_1 = arith.constant 0 : i32
    %c0_i32_2 = arith.constant 0 : i32
    return %c0_i32, %c0_i32_0, %c0_i32_1 : i32, i32, i32
  }
  func.func @transform_3(%arg0: i32) -> (i32, i32) {
    %c0_i32 = arith.constant 0 : i32
    %c0_i32_0 = arith.constant 0 : i32
    %c0_i32_1 = arith.constant 0 : i32
    return %c0_i32, %c0_i32_0 : i32, i32
  }
  func.func @transform_4(%arg0: i32) -> (i32, i32) {
    %c0_i32 = arith.constant 0 : i32
    %c0_i32_0 = arith.constant 0 : i32
    %c0_i32_1 = arith.constant 0 : i32
    return %c0_i32, %c0_i32_0 : i32, i32
  }
  func.func @transform_5(%arg0: i32) -> (i32, i32) {
    %c0_i32 = arith.constant 0 : i32
    %c0_i32_0 = arith.constant 0 : i32
    %c0_i32_1 = arith.constant 0 : i32
    return %c0_i32, %c0_i32_0 : i32, i32
  }
  func.func @transform_6(%arg0: i32) -> (i32, i32) {
    %c0_i32 = arith.constant 0 : i32
    %c0_i32_0 = arith.constant 0 : i32
    %c0_i32_1 = arith.constant 0 : i32
    return %c0_i32, %c0_i32_0 : i32, i32
  }
  func.func @transform_7(%arg0: i32) -> (i32, i32) {
    %c0_i32 = arith.constant 0 : i32
    %c0_i32_0 = arith.constant 0 : i32
    %c0_i32_1 = arith.constant 0 : i32
    return %c0_i32, %c0_i32_0 : i32, i32
  }
  func.func @transform_8(%arg0: i32) -> (i32, i32, i32) {
    %c0_i32 = arith.constant 0 : i32
    %c0_i32_0 = arith.constant 0 : i32
    %c0_i32_1 = arith.constant 0 : i32
    %c0_i32_2 = arith.constant 0 : i32
    return %c0_i32, %c0_i32_0, %c0_i32_1 : i32, i32, i32
  }
  func.func @transform_9(%arg0: i32) -> (i32, i32) {
    %c0_i32 = arith.constant 0 : i32
    %c0_i32_0 = arith.constant 0 : i32
    %c0_i32_1 = arith.constant 0 : i32
    return %c0_i32, %c0_i32_0 : i32, i32
  }
  func.func @transform_10(%arg0: i32) -> (i32, i32) {
    %c0_i32 = arith.constant 0 : i32
    %c0_i32_0 = arith.constant 0 : i32
    %c0_i32_1 = arith.constant 0 : i32
    return %c0_i32, %c0_i32_0 : i32, i32
  }
  func.func @transform_11(%arg0: i32) -> (i32, i32) {
    %c0_i32 = arith.constant 0 : i32
    %c0_i32_0 = arith.constant 0 : i32
    %c0_i32_1 = arith.constant 0 : i32
    return %c0_i32, %c0_i32_0 : i32, i32
  }
  func.func @transform_12(%arg0: i32) -> (i32, i32) {
    %c0_i32 = arith.constant 0 : i32
    %c0_i32_0 = arith.constant 0 : i32
    %c0_i32_1 = arith.constant 0 : i32
    return %c0_i32, %c0_i32_0 : i32, i32
  }
  func.func @transform_13(%arg0: i32) -> (i32, i32, i32) {
    %c0_i32 = arith.constant 0 : i32
    %c0_i32_0 = arith.constant 0 : i32
    %c0_i32_1 = arith.constant 0 : i32
    return %arg0, %c0_i32, %c0_i32_0 : i32, i32, i32
  }
}

</mosaic_0001>

<bundles_post_ra>
// kernel: tpu_custom_call.1
= control target key start
LH: loop header
LB: loop body
LE: loop exit
PB: predicated region body
PF: predicated region fallthrough
CT: control target
= control target key end

     0   :  { %18 = vsyncpa [#allocation3], 0  ;;  %s5758_s0 = inlined_call_operand.vmem [shape: bf16[2,32,128], index: 0, kind: input, shape index: {}]   ;;  %s5759_s1 = inlined_call_operand.vmem [shape: f32[256,32], index: 1, kind: input, shape index: {}]   ;;  %s5760_s2 = inlined_call_operand.vmem [shape: bf16[2,8,128], index: 2, kind: input, shape index: {}]   ;;  %s5761_s3 = inlined_call_operand.hbm [shape: bf16[256,128], index: 3, kind: input, shape index: {}]   ;;  %s5762_s4 = inlined_call_operand.vmem [shape: f32[256,1], index: 4, kind: input, shape index: {}]   ;;  %s5763_s5 = inlined_call_operand.vmem [shape: f32[256,1], index: 5, kind: input, shape index: {}]   ;;  %s5764_s6 = inlined_call_operand.vmem [shape: bf16[512,256], index: 6, kind: input, shape index: {}]   ;;  %s5765_s7 = inlined_call_operand.vmem [shape: f32[256,1], index: 7, kind: input, shape index: {}]   ;;  %s5766_s8 = inlined_call_operand.vmem [shape: bf16[2,128,256], index: 8, kind: input, shape index: {}]   ;;  %s5767_s9 = inlined_call_operand.vmem [shape: f32[1,256], index: 9, kind: input, shape index: {}]   ;;  %s5768_s10 = inlined_call_operand.vmem [shape: f32[1,256], index: 10, kind: input, shape index: {}]   ;;  %s5769_s11 = inlined_call_operand.vmem [shape: f32[1,256], index: 11, kind: input, shape index: {}]   ;;  %s5770_s12 = inlined_call_operand.vmem [shape: bf16[256,256], index: 12, kind: input, shape index: {}]   ;;  %s5771_s13 = inlined_call_operand.hbm [shape: f32[2,8,256], index: 13, kind: output, shape index: {}]  }
   0x1   :  { %19 = vsyncpa [#allocation4], 0 }
   0x2   :  { %21 = vsyncpa [#allocation4 + $0x1], 0  ;;  %s4142_s25 = smov 0   ;;  %s4144_s26 = smov 0  }
   0x3   :  { %s4146_s27 = smov 0   ;;  %s4148_s28 = smov 0  }
   0x4 LB: > { %5793 = sst [smem:[#allocation8_spill]] %s4059_s27  ;;  %s4163_s29 = sadd.s32 4294967295, %s4063_s28   ;;  %s4063_s28 = sphi %s4148_s28, %s5848_s28   ;;  %s4059_s27 = sphi %s4146_s27, %s5853_s27   ;;  %s4055_s26 = sphi %s4144_s26, %s5852_s26   ;;  %s4051_s25 = sphi %s4142_s25, %s5851_s25  }
   0x5   : > { %s3356_s30 = sadd.s32 4294967294, %s4063_s28   ;;  %s4167_s14 = sadd.s32 1, %s4063_s28  }
   0x6   : > { %5794 = sst [smem:[#allocation9_spill]] %s4167_s14  ;;  %s312_s15 = sadd.s32 1, %s4059_s27 }
   0x7   : > { %s309_s16 = ssub.s32 %s4063_s28, %s4167_s14  ;;  %p322_p0 = scmp.ne.s32.totalorder %s4059_s27, %s4055_s26 }
   0x8   : > { %p310_p1 = scmp.eq.s32.totalorder %s309_s16, 0  ;;  %p323_p2 = scmp.eq.s32.totalorder %s4163_s29, 1 }
   0x9   : > { %p328_p3 = scmp.ne.s32.totalorder %s4055_s26, %s4051_s25  ;;  %p329_p4 = scmp.eq.s32.totalorder %s3356_s30, 1 }
   0xa   : > { %s4178_s17 = scalar_select %p310_p1, %s4059_s27, %s312_s15  }
   0xb   : > { %p4180_p5 = por %p323_p2, %p322_p0  ;;  %p4184_p6 = por %p329_p4, %p328_p3 }
   0xc   : > { %5795 = sst [smem:[#allocation10_spill]] %s4178_s17  ;;  %p3357_p7 = scmp.ge.s32.totalorder %s4063_s28, 1 }
   0xd   : > { %s5796_s18 = scalar_select %p4180_p5, 1, 0 }
   0xe   : > { %s5797_s19 = scalar_select %p4184_p6, 1, 0 }
   0xf   : > { %p336_p8 = scmp.lt.s32.totalorder %s4063_s28, 3  ;;  %p5775_p9 = scmp.eq.s32.totalorder %s4163_s29, 0 }
  0x10   : > { %s4065_s21 = smov [#allocation2]   ;;  %s3969_s15 = scalar_lea.hbm %s5761_s3, 2048 }
  0x11   : > { %p4191_p10 = pnand %p3357_p7, %p336_p8  ;;  %s354_s22 = sshll.u32 %s4065_s21, 4  ;;  %s355_s22 = int_to_ptr.vmem [resolvable:$true] %s354_s22 }
  0x12   : > { %p3970_p13 = scmp.ne.s32.totalorder %s5761_s3, %s3969_s15  ;;  %p3976_p3 = scmp.lt.u32.totalorder %s3969_s15, %s5761_s3 }
  0x13   : > { %s5798_s20 = scalar_select %p4191_p10, 1, 0 }
  0x14   : > { %p3696_p11 = pneg %p4191_p10 }
  0x16   : > { %p4199_p12 = pnand %p5775_p9, %p3696_p11 }
  0x18   : > { %p3971_p0 = pneg %p4199_p12 }
  0x1a   : > { %p3972_p1 = pnand %p3971_p0, %p3970_p13 }
  0x1c   : > { %p3973_p2 = pneg %p3972_p1 }
  0x1e   : > { %p3978_p4 = pnand %p3976_p3, %p3973_p2 }
  0x20   : > { %3981 = shalt.err (!%p3978_p4)
}
  0x21   : > { %s3982_s14 = scalar_lea.vmem %s355_s22, 2048  ;;  %p3990_p9 = scmp.lt.s32.totalorder %s355_s22, %s355_s22 }
  0x22   : > { %p3983_p7 = scmp.ne.s32.totalorder %s355_s22, %s3982_s14  ;;  %p3991_p6 = scmp.lt.s32.totalorder %s3982_s14, %s3982_s14 }
  0x24   : > { %p3985_p8 = pnand %p3983_p7, %p3971_p0  ;;  %p3992_p5 = por %p3991_p6, %p3990_p9 }
  0x26   : > { %p3986_p11 = pneg %p3985_p8 }
  0x28   : > { %p3993_p10 = pnand %p3992_p5, %p3986_p11 }
  0x2a   : > { %3996 = shalt.err (!%p3993_p10)
}
  0x2b   : > { %s4066_s17 = smov 64   ;;  %s4067_s24 = smov 4  }
  0x2c   : > { %3699 = dma.hbm_to_vmem [thread:$0]  (!%p4199_p12), %s5761_s3, 2048, %s355_s22, [#allocation3], %s4066_s17, %s4066_s17, %s4067_s24  }
  0x2d   : > { %p5800_p13 = scmp.ne.s32.totalorder %s5798_s20, 0 }
  0x2f   : > { %405 = sbr.rel (%p5800_p13) target bundleno = 2389 (0x955), region = 72 }
  0x36   : > { %p5801_p1 = scmp.eq.s32.totalorder %s4163_s29, 0 }
  0x38   : > { %4042 = dma.done.wait (%p5801_p1), [#allocation3], 2048   ;;  %p5802_p0 = pmov %p5801_p1 }
  0x39   : > { %p449_p5 = scmp.lt.s32.totalorder %s4163_s29, 1  ;;  %v5778_v0 = vmov 0   ;;  %v3749_v3 = vld [vmem:[#allocation2] sm:$0xff]   ;;  %v3750_v5 = vld [vmem:[#allocation2 + $0x8] sm:$0xff]   ;;  %v3751_v7 = vld [vmem:[#allocation2 + $0x10] sm:$0xff]   ;;  %vm824_vm0 = vcmask 261120  }
  0x3a   : > { %4044 = vsyncadd (%p5802_p0), [#allocation3], 4294965248  ;;  %3746 = vset.pattern.permute.xlu1 %v5778_v0  ;;  %3745 = vset.pattern.permute.xlu0 %v5778_v0  ;;  %v792_v4 = vld [vmem:[%s5763_s5] sm:$0xff]  ;;  %v793_v6 = vld [vmem:[%s5763_s5 + $0x8] sm:$0xff]  ;;  %vm4070_vm1 = vmmov 0   ;;  %s446_s16 = sand.u32 1, %s4055_s26  }
  0x3b   : > { %s450_s27 = scalar_select %p449_p5, %s4163_s29, 1  ;;  %1848 = vmatprep.subr.bf16.mxu1 %v5778_v0  ;;  %3578 = vmatprep.mubr.bf16.mxu0 %v3749_v3  ;;  %v763_v8 = vld [vmem:[%s5762_s4 + $0x18] sm:$0xff]  ;;  %v760_v9 = vld [vmem:[%s5762_s4] sm:$0xff]  ;;  %v761_v13 = vld [vmem:[%s5762_s4 + $0x8] sm:$0xff] }
  0x3c   : > { %1258 = vperm.xlu1 %3746, %v792_v4   ;;  %v3752_v10 = vld [vmem:[#allocation2 + $0x18] sm:$0xff]   ;;  %1066 = vperm.xlu0 %3745, %v760_v9   ;;  %v3753_v12 = vld [vmem:[#allocation2 + $0x20] sm:$0xff]   ;;  %v765_v14 = vld [vmem:[%s5762_s4 + $0x28] sm:$0xff]  ;;  %s3519_s22 = sshll.u32 %s4163_s29, 8  ;;  %s3271_s17 = scalar_lea.sflag [#allocation4], %s446_s16 }
  0x3d   : > { %s3518_s14 = sshll.u32 %s450_s27, 4  ;;  %v795_v11 = vld [vmem:[%s5763_s5 + $0x18] sm:$0xff]  ;;  %v762_v15 = vld [vmem:[%s5762_s4 + $0x10] sm:$0xff]  ;;  %v3754_v16 = vld [vmem:[#allocation2 + $0x28] sm:$0xff]   ;;  %s3362_s27 = sshll.u32 %s446_s16, 4 }
  0x3e   : > { %s453_s23 = scalar_lea.vmem %s5758_s0, %s3518_s14  ;;  %v797_v17 = vld [vmem:[%s5763_s5 + $0x28] sm:$0xff]  ;;  %v3755_v18 = vld [vmem:[#allocation2 + $0x30] sm:$0xff]   ;;  %v767_v20 = vld [vmem:[%s5762_s4 + $0x38] sm:$0xff]  ;;  %s448_s14 = scalar_lea.vmem [#allocation5], %s3362_s27 }
  0x3f   : > { %v3747_v1 = vld [vmem:[%s453_s23] sm:$0xff]   ;;  %v3748_v2 = vld [vmem:[%s453_s23 + $0x8] sm:$0xff]   ;;  %v794_v19 = vld [vmem:[%s5763_s5 + $0x10] sm:$0xff]  ;;  %s3285_s20 = sshll.u32 %s448_s14, 4  ;;  %s5718_s21 = scalar_lea.hbm %s5771_s13, %s3519_s22  ;;  %s5713_s20 = int_to_ptr.vmem [resolvable:$true] %s3285_s20 }
  0x40   : > { %3574 = vmatprep.subr.bf16.mxu0 %v3747_v1  ;;  %1263 = vperm.xlu1 %3746, %v793_v6   ;;  %v764_v21 = vld [vmem:[%s5762_s4 + $0x20] sm:$0xff]  ;;  %v3756_v22 = vld [vmem:[#allocation2 + $0x38] sm:$0xff]   ;;  %v769_v26 = vld [vmem:[%s5762_s4 + $0x48] sm:$0xff]  ;;  %s3997_s24 = scalar_lea.vmem %s5713_s20, 256  ;;  %p5846_p9 = scmp.ne.s32.totalorder %s5796_s18, 0 }
  0x41   : > { %3575 = vmatpush3.bf16.xpose.msra.mxu0 %v3747_v1  ;;  %1071 = vperm.xlu0 %3745, %v761_v13   ;;  %v799_v23 = vld [vmem:[%s5763_s5 + $0x38] sm:$0xff]  ;;  %v3757_v24 = vld [vmem:[#allocation2 + $0x40] sm:$0xff]   ;;  %v766_v27 = vld [vmem:[%s5762_s4 + $0x30] sm:$0xff]  ;;  %p3998_p6 = scmp.ne.s32.totalorder %s5713_s20, %s3997_s24  ;;  %s4071_s29 = smov [#allocation5]  }
  0x42   : > { %3576 = vmatprep.subr.bf16.mxu0 %v3748_v2  ;;  %v796_v25 = vld [vmem:[%s5763_s5 + $0x20] sm:$0xff]  ;;  %v3758_v28 = vld [vmem:[#allocation2 + $0x48] sm:$0xff]   ;;  %v3759_v30 = vld [vmem:[#allocation2 + $0x50] sm:$0xff]   ;;  %s4001_s30 = sshll.u32 %s4071_s29, 4  ;;  %s4002_s30 = int_to_ptr.vmem [resolvable:$false] %s4001_s30 }
  0x43   : > { %v801_v29 = vld [vmem:[%s5763_s5 + $0x48] sm:$0xff]  ;;  %v798_v31 = vld [vmem:[%s5763_s5 + $0x30] sm:$0xff]  ;;  %v771_v32 = vld [vmem:[%s5762_s4 + $0x58] sm:$0xff]  ;;  %p3999_p10 = pnand %p3998_p6, %p5846_p9  ;;  %s4003_s27 = scalar_lea.vmem %s4002_s30, 512 }
  0x44   : > { %1081 = vperm.xlu1 %3746, %v763_v8   ;;  %v768_v33 = vld [vmem:[%s5762_s4 + $0x40] sm:$0xff]  ;;  %v3760_v34 = vld [vmem:[#allocation2 + $0x58] sm:$0xff]   ;;  %v773_v38 = vld [vmem:[%s5762_s4 + $0x68] sm:$0xff]  ;;  %p4004_p2 = scmp.lt.s32.totalorder %s5713_s20, %s4002_s30  ;;  %p4005_p3 = scmp.lt.s32.totalorder %s4003_s27, %s3997_s24 }
  0x45   : > { %1076 = vperm.xlu0 %3745, %v762_v15   ;;  %v803_v35 = vld [vmem:[%s5763_s5 + $0x58] sm:$0xff]  ;;  %v3761_v36 = vld [vmem:[#allocation2 + $0x60] sm:$0xff]   ;;  %v770_v39 = vld [vmem:[%s5762_s4 + $0x50] sm:$0xff]  ;;  %p4000_p12 = pneg %p3999_p10 }
  0x46   : > { %v800_v37 = vld [vmem:[%s5763_s5 + $0x40] sm:$0xff]  ;;  %v3762_v40 = vld [vmem:[#allocation2 + $0x68] sm:$0xff]   ;;  %v3763_v42 = vld [vmem:[#allocation2 + $0x70] sm:$0xff]   ;;  %p4006_p4 = por %p4005_p3, %p4004_p2 }
  0x47   : > { %v805_v41 = vld [vmem:[%s5763_s5 + $0x68] sm:$0xff]  ;;  %v802_v43 = vld [vmem:[%s5763_s5 + $0x50] sm:$0xff]  ;;  %v775_v44 = vld [vmem:[%s5762_s4 + $0x78] sm:$0xff] }
  0x48   : > { %1273 = vperm.xlu1 %3746, %v795_v11   ;;  %v772_v45 = vld [vmem:[%s5762_s4 + $0x60] sm:$0xff]  ;;  %v3764_v46 = vld [vmem:[#allocation2 + $0x78] sm:$0xff]   ;;  %v777_v49 = vld [vmem:[%s5762_s4 + $0x88] sm:$0xff]  ;;  %p4007_p7 = pnand %p4006_p4, %p4000_p12 }
  0x49   : > { %3577 = vmatpush3.bf16.xpose.msra.mxu0 %v3748_v2  ;;  %1268 = vperm.xlu0 %3745, %v794_v19   ;;  %v807_v47 = vld [vmem:[%s5763_s5 + $0x78] sm:$0xff]  ;;  %v804_v48 = vld [vmem:[%s5763_s5 + $0x60] sm:$0xff]  ;;  %v774_v50 = vld [vmem:[%s5762_s4 + $0x70] sm:$0xff] }
  0x4a   : > { %v809_v51 = vld [vmem:[%s5763_s5 + $0x88] sm:$0xff]  ;;  %v806_v52 = vld [vmem:[%s5763_s5 + $0x70] sm:$0xff]  ;;  %v779_v53 = vld [vmem:[%s5762_s4 + $0x98] sm:$0xff] }
  0x4b   : > { %v776_v54 = vld [vmem:[%s5762_s4 + $0x80] sm:$0xff]  ;;  %v811_v55 = vld [vmem:[%s5763_s5 + $0x98] sm:$0xff]  ;;  %v781_v57 = vld [vmem:[%s5762_s4 + $0xa8] sm:$0xff] }
  0x4c   : > { %1091 = vperm.xlu1 %3746, %v765_v14   ;;  %v808_v56 = vld [vmem:[%s5763_s5 + $0x80] sm:$0xff]  ;;  %v778_v58 = vld [vmem:[%s5762_s4 + $0x90] sm:$0xff]  ;;  %v813_v59 = vld [vmem:[%s5763_s5 + $0xa8] sm:$0xff] }
  0x4d   : > { %1086 = vperm.xlu0 %3745, %v764_v21   ;;  %v810_v60 = vld [vmem:[%s5763_s5 + $0x90] sm:$0xff]  ;;  %v783_v61 = vld [vmem:[%s5762_s4 + $0xb8] sm:$0xff]  ;;  %v780_v62 = vld [vmem:[%s5762_s4 + $0xa0] sm:$0xff] }
  0x4e   : > { %v815_v63 = vld [vmem:[%s5763_s5 + $0xb8] sm:$0xff]  ;;  %v812_v1 = vld [vmem:[%s5763_s5 + $0xa0] sm:$0xff]  ;;  %v785_v2 = vld [vmem:[%s5762_s4 + $0xc8] sm:$0xff] }
  0x4f   : > { %v782_v3 = vld [vmem:[%s5762_s4 + $0xb0] sm:$0xff]  ;;  %v817_v4 = vld [vmem:[%s5763_s5 + $0xc8] sm:$0xff]  ;;  %v787_v6 = vld [vmem:[%s5762_s4 + $0xd8] sm:$0xff] }
  0x50   : > { %3579 = vmatmul.mubr.bf16.vlgmr.msra.gmra.mrb[0].mxu0 %v3750_v5  ;;  %1283 = vperm.xlu1 %3746, %v797_v17   ;;  %v814_v5 = vld [vmem:[%s5763_s5 + $0xb0] sm:$0xff]  ;;  %v819_v8 = vld [vmem:[%s5763_s5 + $0xd8] sm:$0xff]  ;;  %v816_v9 = vld [vmem:[%s5763_s5 + $0xc0] sm:$0xff] }
  0x51   : > { %3582 = vmatprep.mubr.bf16.mxu0 %v3751_v7  ;;  %1278 = vperm.xlu0 %3745, %v796_v25   ;;  %v784_v7 = vld [vmem:[%s5762_s4 + $0xc0] sm:$0xff]  ;;  %v786_v11 = vld [vmem:[%s5762_s4 + $0xd0] sm:$0xff]  ;;  %v791_v14 = vld [vmem:[%s5762_s4 + $0xf8] sm:$0xff] }
  0x52   : > { %v818_v13 = vld [vmem:[%s5763_s5 + $0xd0] sm:$0xff]  ;;  %v788_v15 = vld [vmem:[%s5762_s4 + $0xe0] sm:$0xff]  ;;  %v2206_v25 = vld [vmem:[%s5765_s7 + $0x28] sm:$0xff] }
  0x53   : > { %v820_v17 = vld [vmem:[%s5763_s5 + $0xe0] sm:$0xff]  ;;  %v790_v19 = vld [vmem:[%s5762_s4 + $0xf0] sm:$0xff] }
  0x54   : > { %1101 = vperm.xlu1 %3746, %v767_v20   ;;  %v2202_v20 = vld [vmem:[%s5765_s7 + $0x8] sm:$0xff]  ;;  %v822_v21 = vld [vmem:[%s5763_s5 + $0xf0] sm:$0xff] }
  0x55   : > { %1096 = vperm.xlu0 %3745, %v766_v27   ;;  %v2213_v27 = vld [vmem:[%s5765_s7 + $0x60] sm:$0xff] }
  0x58   : > { %3583 = vmatmul.mubr.bf16.gmra.mrb[4].mxu0 %v3752_v10  ;;  %1293 = vperm.xlu1 %3746, %v799_v23   ;;  %v789_v10 = vld [vmem:[%s5762_s4 + $0xe8] sm:$0xff]  ;;  %v2204_v23 = vld [vmem:[%s5765_s7 + $0x18] sm:$0xff] }
  0x59   : > { %3586 = vmatprep.mubr.bf16.mxu0 %v3753_v12  ;;  %1288 = vperm.xlu0 %3745, %v798_v31   ;;  %v821_v12 = vld [vmem:[%s5763_s5 + $0xe8] sm:$0xff] }
  0x5c   : > { %1111 = vperm.xlu1 %3746, %v769_v26   ;;  %v2210_v26 = vld [vmem:[%s5765_s7 + $0x48] sm:$0xff] }
  0x5d   : > { %1106 = vperm.xlu0 %3745, %v768_v33  }
  0x60   : > { %3587 = vmatmul.mubr.bf16.gmra.mrb[8].mxu0 %v3754_v16  ;;  %1303 = vperm.xlu1 %3746, %v801_v29   ;;  %v823_v16 = vld [vmem:[%s5763_s5 + $0xf8] sm:$0xff]  ;;  %v2215_v29 = vld [vmem:[%s5765_s7 + $0x70] sm:$0xff] }
  0x61   : > { %3590 = vmatprep.mubr.bf16.mxu0 %v3755_v18  ;;  %1298 = vperm.xlu0 %3745, %v800_v37   ;;  %v2201_v18 = vld [vmem:[%s5765_s7] sm:$0xff] }
  0x64   : > { %1121 = vperm.xlu1 %3746, %v771_v32  }
  0x65   : > { %1116 = vperm.xlu0 %3745, %v770_v39  }
  0x68   : > { %3591 = vmatmul.mubr.bf16.gmra.mrb[12].mxu0 %v3756_v22  ;;  %1313 = vperm.xlu1 %3746, %v803_v35   ;;  %v2203_v22 = vld [vmem:[%s5765_s7 + $0x10] sm:$0xff] }
  0x69   : > { %3594 = vmatprep.mubr.bf16.mxu0 %v3757_v24  ;;  %1308 = vperm.xlu0 %3745, %v802_v43   ;;  %v2205_v24 = vld [vmem:[%s5765_s7 + $0x20] sm:$0xff] }
  0x6c   : > { %1131 = vperm.xlu1 %3746, %v773_v38  }
  0x6d   : > { %1126 = vperm.xlu0 %3745, %v772_v45  }
  0x70   : > { %3595 = vmatmul.mubr.bf16.gmra.mrb[16].mxu0 %v3758_v28  ;;  %1323 = vperm.xlu1 %3746, %v805_v41   ;;  %v2214_v28 = vld [vmem:[%s5765_s7 + $0x68] sm:$0xff] }
  0x71   : > { %3598 = vmatprep.mubr.bf16.mxu0 %v3759_v30  ;;  %1318 = vperm.xlu0 %3745, %v804_v48  }
  0x74   : > { %1141 = vperm.xlu1 %3746, %v775_v44  }
  0x75   : > { %1136 = vperm.xlu0 %3745, %v774_v50  }
  0x78   : > { %3599 = vmatmul.mubr.bf16.gmra.mrb[20].mxu0 %v3760_v34  ;;  %1333 = vperm.xlu1 %3746, %v807_v47  }
  0x79   : > { %3602 = vmatprep.mubr.bf16.mxu0 %v3761_v36  ;;  %1328 = vperm.xlu0 %3745, %v806_v52  }
  0x7c   : > { %1151 = vperm.xlu1 %3746, %v777_v49  }
  0x7d   : > { %1146 = vperm.xlu0 %3745, %v776_v54  }
  0x80   : > { %3603 = vmatmul.mubr.bf16.gmra.mrb[24].mxu0 %v3762_v40  ;;  %1343 = vperm.xlu1 %3746, %v809_v51  }
  0x81   : > { %3606 = vmatprep.mubr.bf16.mxu0 %v3763_v42  ;;  %1338 = vperm.xlu0 %3745, %v808_v56  }
  0x84   : > { %1161 = vperm.xlu1 %3746, %v779_v53  }
  0x85   : > { %1156 = vperm.xlu0 %3745, %v778_v58  }
  0x88   : > { %3607 = vmatmul.mubr.bf16.gmra.mrb[28].mxu0 %v3764_v46  ;;  %1353 = vperm.xlu1 %3746, %v811_v55  }
  0x89   : > { %1348 = vperm.xlu0 %3745, %v810_v60  }
  0x8c   : > { %1171 = vperm.xlu1 %3746, %v781_v57  }
  0x8d   : > { %1166 = vperm.xlu0 %3745, %v780_v62  }
  0x90   : > { %1363 = vperm.xlu1 %3746, %v813_v59  }
  0x91   : > { %1358 = vperm.xlu0 %3745, %v812_v1  }
  0x94   : > { %1181 = vperm.xlu1 %3746, %v783_v61  }
  0x95   : > { %1176 = vperm.xlu0 %3745, %v782_v3  }
  0x98   : > { %1373 = vperm.xlu1 %3746, %v815_v63  }
  0x99   : > { %1368 = vperm.xlu0 %3745, %v814_v5  }
  0x9c   : > { %1191 = vperm.xlu1 %3746, %v785_v2  }
  0x9d   : > { %1186 = vperm.xlu0 %3745, %v784_v7  }
  0xa0   : > { %1383 = vperm.xlu1 %3746, %v817_v4  }
  0xa1   : > { %1378 = vperm.xlu0 %3745, %v816_v9  }
  0xa4   : > { %1201 = vperm.xlu1 %3746, %v787_v6  }
  0xa5   : > { %1196 = vperm.xlu0 %3745, %v786_v11  }
  0xa8   : > { %1393 = vperm.xlu1 %3746, %v819_v8  }
  0xa9   : > { %1388 = vperm.xlu0 %3745, %v818_v13  }
  0xac   : > { %1211 = vperm.xlu1 %3746, %v789_v10  }
  0xad   : > { %1206 = vperm.xlu0 %3745, %v788_v15  }
  0xb0   : > { %1403 = vperm.xlu1 %3746, %v821_v12  }
  0xb1   : > { %1398 = vperm.xlu0 %3745, %v820_v17  }
  0xb4   : > { %1221 = vperm.xlu1 %3746, %v791_v14  }
  0xb5   : > { %1216 = vperm.xlu0 %3745, %v790_v19  }
  0xb8   : > { %1413 = vperm.xlu1 %3746, %v823_v16  }
  0xb9   : > { %1408 = vperm.xlu0 %3745, %v822_v21  }
  0xbc   : > { %2235 = vperm.xlu1 %3746, %v2201_v18  }
  0xc0   : > { %2240 = vperm.xlu1 %3746, %v2202_v20  }
  0xc4   : > { %2245 = vperm.xlu1 %3746, %v2203_v22  }
  0xc8   : > { %2250 = vperm.xlu1 %3746, %v2204_v23  }
  0xcc   : > { %2255 = vperm.xlu1 %3746, %v2205_v24  }
  0xd0   : > { %2260 = vperm.xlu1 %3746, %v2206_v25  }
  0xd4   : > { %2280 = vperm.xlu1 %3746, %v2210_v26  }
  0xd8   : > { %2295 = vperm.xlu1 %3746, %v2213_v27  }
  0xdc   : > { %2300 = vperm.xlu1 %3746, %v2214_v28  }
  0xe0   : > { %2305 = vperm.xlu1 %3746, %v2215_v29  }
 0x123   : > { %v4455_v30 = vpop.f32.mrb[0].mxu0 }
 0x124   : > { %v4457_v31 = vpop.f32.mrb[1].mxu0  ;;  %v828_v37 = vsel %vm824_vm0, %v4455_v30, 0.0 }
 0x125   : > { %v4459_v32 = vpop.f32.mrb[2].mxu0  ;;  %v825_v34 = vsel %vm824_vm0, %v4457_v31, 0.0 }
 0x126   : > { %v4461_v33 = vpop.f32.mrb[3].mxu0  ;;  %v830_v39 = vsel %vm824_vm0, %v4459_v32, 0.0 }
 0x127   : > { %v826_v35 = vsel %vm824_vm0, %v4461_v33, 0.0 }
 0x128   : > { %v827_v36 = vadd.f32 %v826_v35, %v825_v34 }
 0x12a   : > { %v829_v38 = vadd.f32 %v828_v37, %v827_v36 }
 0x12b   : > { %v4471_v40 = vpop.f32.mrb[4].mxu0 }
 0x12c   : > { %v4473_v41 = vpop.f32.mrb[5].mxu0  ;;  %v831_v42 = vadd.f32 %v830_v39, %v829_v38  ;;  %v836_v49 = vsel %vm824_vm0, %v4471_v40, 0.0 }
 0x12d   : > { %v832_v43 = vsel %vm824_vm0, %v4473_v41, 0.0  ;;  %v4477_v44 = vpop.f32.mrb[6].mxu0 }
 0x12e   : > { %v833_v45 = vadd.f32 %v832_v43, %v831_v42  ;;  %v4479_v46 = vpop.f32.mrb[7].mxu0  ;;  %v838_v51 = vsel %vm824_vm0, %v4477_v44, 0.0 }
 0x12f   : > { %v834_v47 = vsel %vm824_vm0, %v4479_v46, 0.0 }
 0x130   : > { %v835_v48 = vadd.f32 %v834_v47, %v833_v45 }
 0x132   : > { %v837_v50 = vadd.f32 %v836_v49, %v835_v48 }
 0x133   : > { %v4487_v52 = vpop.f32.mrb[8].mxu0 }
 0x134   : > { %v4489_v53 = vpop.f32.mrb[9].mxu0  ;;  %v839_v54 = vadd.f32 %v838_v51, %v837_v50  ;;  %v844_v61 = vsel %vm824_vm0, %v4487_v52, 0.0 }
 0x135   : > { %v840_v55 = vsel %vm824_vm0, %v4489_v53, 0.0  ;;  %v4493_v56 = vpop.f32.mrb[10].mxu0 }
 0x136   : > { %v841_v57 = vadd.f32 %v840_v55, %v839_v54  ;;  %v4495_v58 = vpop.f32.mrb[11].mxu0  ;;  %v846_v63 = vsel %vm824_vm0, %v4493_v56, 0.0 }
 0x137   : > { %v842_v59 = vsel %vm824_vm0, %v4495_v58, 0.0 }
 0x138   : > { %v843_v60 = vadd.f32 %v842_v59, %v841_v57 }
 0x13a   : > { %v845_v62 = vadd.f32 %v844_v61, %v843_v60 }
 0x13b   : > { %v4503_v1 = vpop.f32.mrb[12].mxu0 }
 0x13c   : > { %v4505_v2 = vpop.f32.mrb[13].mxu0  ;;  %v847_v3 = vadd.f32 %v846_v63, %v845_v62  ;;  %v852_v10 = vsel %vm824_vm0, %v4503_v1, 0.0 }
 0x13d   : > { %v848_v4 = vsel %vm824_vm0, %v4505_v2, 0.0  ;;  %v4509_v5 = vpop.f32.mrb[14].mxu0 }
 0x13e   : > { %v849_v6 = vadd.f32 %v848_v4, %v847_v3  ;;  %v4511_v7 = vpop.f32.mrb[15].mxu0  ;;  %v854_v12 = vsel %vm824_vm0, %v4509_v5, 0.0 }
 0x13f   : > { %v850_v8 = vsel %vm824_vm0, %v4511_v7, 0.0 }
 0x140   : > { %v851_v9 = vadd.f32 %v850_v8, %v849_v6 }
 0x142   : > { %v853_v11 = vadd.f32 %v852_v10, %v851_v9 }
 0x143   : > { %v4519_v13 = vpop.f32.mrb[16].mxu0 }
 0x144   : > { %v4521_v14 = vpop.f32.mrb[17].mxu0  ;;  %v855_v15 = vadd.f32 %v854_v12, %v853_v11  ;;  %v860_v22 = vsel %vm824_vm0, %v4519_v13, 0.0 }
 0x145   : > { %v856_v16 = vsel %vm824_vm0, %v4521_v14, 0.0  ;;  %v4525_v17 = vpop.f32.mrb[18].mxu0 }
 0x146   : > { %v857_v18 = vadd.f32 %v856_v16, %v855_v15  ;;  %v4527_v19 = vpop.f32.mrb[19].mxu0  ;;  %v862_v24 = vsel %vm824_vm0, %v4525_v17, 0.0 }
 0x147   : > { %v858_v20 = vsel %vm824_vm0, %v4527_v19, 0.0 }
 0x148   : > { %v859_v21 = vadd.f32 %v858_v20, %v857_v18 }
 0x14a   : > { %v861_v23 = vadd.f32 %v860_v22, %v859_v21 }
 0x14b   : > { %v4535_v25 = vpop.f32.mrb[20].mxu0 }
 0x14c   : > { %v4537_v26 = vpop.f32.mrb[21].mxu0  ;;  %v863_v27 = vadd.f32 %v862_v24, %v861_v23  ;;  %v868_v38 = vsel %vm824_vm0, %v4535_v25, 0.0 }
 0x14d   : > { %v864_v28 = vsel %vm824_vm0, %v4537_v26, 0.0  ;;  %v4541_v29 = vpop.f32.mrb[22].mxu0 }
 0x14e   : > { %v865_v34 = vadd.f32 %v864_v28, %v863_v27  ;;  %v716_v35 = vpop.f32.mrb[23].mxu0  ;;  %v870_v42 = vsel %vm824_vm0, %v4541_v29, 0.0 }
 0x14f   : > { %v866_v36 = vsel %vm824_vm0, %v716_v35, 0.0 }
 0x150   : > { %v867_v37 = vadd.f32 %v866_v36, %v865_v34 }
 0x152   : > { %v869_v39 = vadd.f32 %v868_v38, %v867_v37 }
 0x153   : > { %v3604_v43 = vpop.f32.mrb[24].mxu0 }
 0x154   : > { %v729_v45 = vpop.f32.mrb[25].mxu0  ;;  %v871_v47 = vadd.f32 %v870_v42, %v869_v39  ;;  %v876_v57 = vsel %vm824_vm0, %v3604_v43, 0.0 }
 0x155   : > { %v872_v48 = vsel %vm824_vm0, %v729_v45, 0.0  ;;  %v3605_v49 = vpop.f32.mrb[26].mxu0 }
 0x156   : > { %v873_v50 = vadd.f32 %v872_v48, %v871_v47  ;;  %v732_v51 = vpop.f32.mrb[27].mxu0  ;;  %v878_v60 = vsel %vm824_vm0, %v3605_v49, 0.0  ;;  %v4582_v47 = vpop.permute.xlu0 %1066 }
 0x157   : > { %v874_v54 = vsel %vm824_vm0, %v732_v51, 0.0 }
 0x158   : > { %v875_v55 = vadd.f32 %v874_v54, %v873_v50 }
 0x15a   : > { %v877_v59 = vadd.f32 %v876_v57, %v875_v55 }
 0x15b   : > { %v3608_v61 = vpop.f32.mrb[28].mxu0 }
 0x15c   : > { %v745_v62 = vpop.f32.mrb[29].mxu0  ;;  %v879_v63 = vadd.f32 %v878_v60, %v877_v59  ;;  %v884_v11 = vsel %vm824_vm0, %v3608_v61, 0.0 }
 0x15d   : > { %v880_v3 = vsel %vm824_vm0, %v745_v62, 0.0  ;;  %v3609_v4 = vpop.f32.mrb[30].mxu0 }
 0x15e   : > { %v881_v6 = vadd.f32 %v880_v3, %v879_v63  ;;  %v748_v8 = vpop.f32.mrb[31].mxu0  ;;  %v886_v15 = vsel %vm824_vm0, %v3609_v4, 0.0 }
 0x15f   : > { %v882_v9 = vsel %vm824_vm0, %v748_v8, 0.0 }
 0x160   : > { %v883_v10 = vadd.f32 %v882_v9, %v881_v6 }
 0x162   : > { %v885_v12 = vadd.f32 %v884_v11, %v883_v10 }
 0x164   : > { %v887_v16 = vadd.f32 %v886_v15, %v885_v12 }
 0x166   : > { %v888_v18 = vrot.slane %v887_v16, 4 }
 0x168   : > { %v889_v20 = vadd.f32 %v888_v18, %v887_v16 }
 0x16a   : > { %v890_v21 = vrot.slane %v889_v20, 2 }
 0x16c   : > { %v891_v22 = vadd.f32 %v890_v21, %v889_v20 }
 0x16e   : > { %v892_v23 = vrot.slane %v891_v22, 1 }
 0x170   : > { %v893_v24 = vadd.f32 %v892_v23, %v891_v22 }
 0x172   : > { %v895_v27 = vmul.f32 0.00390625, %v893_v24 }
 0x174   : > { %v4557_v28 = vsub.f32 %v4457_v31, %v895_v27  ;;  %v4560_v34 = vsub.f32 %v4461_v33, %v895_v27  ;;  %v4563_v36 = vsub.f32 %v4455_v30, %v895_v27  ;;  %v4566_v37 = vsub.f32 %v4459_v32, %v895_v27  ;;  %v4580_v33 = vpop.permute.xlu1 %1258 }
 0x175   : > { %v4569_v38 = vsub.f32 %v4473_v41, %v895_v27  ;;  %v4572_v39 = vsub.f32 %v4479_v46, %v895_v27  ;;  %v4575_v42 = vsub.f32 %v4471_v40, %v895_v27  ;;  %v4578_v31 = vsub.f32 %v4477_v44, %v895_v27 }
 0x176   : > { %v4585_v30 = vsub.f32 %v4489_v53, %v895_v27  ;;  %v4588_v32 = vsub.f32 %v4495_v58, %v895_v27  ;;  %v4591_v41 = vsub.f32 %v4487_v52, %v895_v27  ;;  %v4594_v46 = vsub.f32 %v4493_v56, %v895_v27 }
 0x177   : > { %v4597_v40 = vsub.f32 %v4505_v2, %v895_v27  ;;  %v4600_v44 = vsub.f32 %v4511_v7, %v895_v27  ;;  %v4603_v48 = vsub.f32 %v4503_v1, %v895_v27  ;;  %v4606_v53 = vsub.f32 %v4509_v5, %v895_v27 }
 0x178   : > { %v4609_v58 = vsub.f32 %v4521_v14, %v895_v27  ;;  %v4612_v52 = vsub.f32 %v4527_v19, %v895_v27  ;;  %v4615_v56 = vsub.f32 %v4519_v13, %v895_v27  ;;  %v4618_v2 = vsub.f32 %v4525_v17, %v895_v27 }
 0x179   : > { %v4621_v7 = vsub.f32 %v4537_v26, %v895_v27  ;;  %v4623_v1 = vsub.f32 %v716_v35, %v895_v27  ;;  %v4626_v5 = vsub.f32 %v4535_v25, %v895_v27  ;;  %v4629_v14 = vsub.f32 %v4541_v29, %v895_v27  ;;  %v4647_v25 = vpop.permute.xlu1 %1263  ;;  %v4649_v29 = vpop.permute.xlu0 %1071 }
 0x17a   : > { %5803 = vst [vmem:[#allocation11_spill] sm:$0xff] %v4615_v56  ;;  %v4631_v50 = vsub.f32 %v729_v45, %v895_v27  ;;  %v4633_v19 = vsub.f32 %v732_v51, %v895_v27  ;;  %v4635_v13 = vsub.f32 %v3604_v43, %v895_v27  ;;  %v4637_v54 = vsub.f32 %v3605_v49, %v895_v27 }
 0x17b   : > { %5804 = vst [vmem:[#allocation12_spill] sm:$0xff] %v4621_v7  ;;  %5805 = vst [vmem:[#allocation13_spill] sm:$0xff] %v4623_v1  ;;  %v4639_v17 = vsub.f32 %v745_v62, %v895_v27  ;;  %v4641_v26 = vsub.f32 %v748_v8, %v895_v27  ;;  %v4643_v35 = vsub.f32 %v3608_v61, %v895_v27 }
 0x17c   : > { %5806 = vst [vmem:[#allocation14_spill] sm:$0xff] %v4626_v5  ;;  %5807 = vst [vmem:[#allocation15_spill] sm:$0xff] %v4629_v14  ;;  %v4645_v55 = vsub.f32 %v3609_v4, %v895_v27  ;;  %v928_v45 = vmul.f32 %v4557_v28, %v4557_v28  ;;  %v929_v43 = vmul.f32 %v4560_v34, %v4560_v34 }
 0x17d   : > { %5808 = vst [vmem:[#allocation16_spill] sm:$0xff] %v4631_v50  ;;  %5809 = vst [vmem:[#allocation17_spill] sm:$0xff] %v4633_v19  ;;  %v4655_v49 = vpop.permute.xlu1 %1081  ;;  %v4657_v51 = vpop.permute.xlu0 %1076  ;;  %v930_v57 = vmul.f32 %v4563_v36, %v4563_v36  ;;  %v931_v59 = vmul.f32 %v4566_v37, %v4566_v37  ;;  %v932_v63 = vmul.f32 %v4569_v38, %v4569_v38 }
 0x17e   : > { %5810 = vst [vmem:[#allocation18_spill] sm:$0xff] %v4635_v13  ;;  %5811 = vst [vmem:[#allocation19_spill] sm:$0xff] %v4637_v54  ;;  %v960_v60 = vsel %vm824_vm0, %v928_v45, 0.0  ;;  %v961_v61 = vsel %vm824_vm0, %v929_v43, 0.0  ;;  %v933_v9 = vmul.f32 %v4572_v39, %v4572_v39  ;;  %v934_v12 = vmul.f32 %v4575_v42, %v4575_v42 }
 0x17f   : > { %5812 = vst [vmem:[#allocation20_spill] sm:$0xff] %v4639_v17  ;;  %5813 = vst [vmem:[#allocation21_spill] sm:$0xff] %v4641_v26  ;;  %v962_v62 = vadd.f32 %v961_v61, %v960_v60  ;;  %v963_v3 = vsel %vm824_vm0, %v930_v57, 0.0  ;;  %v965_v10 = vsel %vm824_vm0, %v931_v59, 0.0  ;;  %v967_v15 = vsel %vm824_vm0, %v932_v63, 0.0 }
 0x180   : > { %5814 = vst [vmem:[#allocation22_spill] sm:$0xff] %v4643_v35  ;;  %5815 = vst [vmem:[#allocation23_spill] sm:$0xff] %v4645_v55  ;;  %v935_v18 = vmul.f32 %v4578_v31, %v4578_v31  ;;  %v969_v20 = vsel %vm824_vm0, %v933_v9, 0.0  ;;  %v936_v24 = vmul.f32 %v4585_v30, %v4585_v30  ;;  %v971_v27 = vsel %vm824_vm0, %v934_v12, 0.0 }
 0x181   : > { %v964_v4 = vadd.f32 %v963_v3, %v962_v62  ;;  %v4668_v6 = vpop.permute.xlu1 %1273  ;;  %v4670_v8 = vpop.permute.xlu0 %1268  ;;  %v937_v43 = vmul.f32 %v4588_v32, %v4588_v32  ;;  %v938_v60 = vmul.f32 %v4591_v41, %v4591_v41 }
 0x182   : > { %v973_v57 = vsel %vm824_vm0, %v935_v18, 0.0  ;;  %v975_v61 = vsel %vm824_vm0, %v936_v24, 0.0 }
 0x183   : > { %v966_v11 = vadd.f32 %v965_v10, %v964_v4  ;;  %v939_v4 = vmul.f32 %v4594_v46, %v4594_v46  ;;  %v977_v9 = vsel %vm824_vm0, %v937_v43, 0.0  ;;  %v979_v12 = vsel %vm824_vm0, %v938_v60, 0.0 }
 0x185   : > { %v968_v16 = vadd.f32 %v967_v15, %v966_v11  ;;  %v4681_v22 = vpop.permute.xlu1 %1091  ;;  %v4683_v23 = vpop.permute.xlu0 %1086  ;;  %v940_v11 = vmul.f32 %v4597_v40, %v4597_v40  ;;  %v981_v18 = vsel %vm824_vm0, %v939_v4, 0.0 }
 0x187   : > { %v970_v21 = vadd.f32 %v969_v20, %v968_v16  ;;  %v941_v16 = vmul.f32 %v4600_v44, %v4600_v44 }
 0x189   : > { %v972_v45 = vadd.f32 %v971_v27, %v970_v21  ;;  %v4694_v63 = vpop.permute.xlu1 %1283  ;;  %v4696_v3 = vpop.permute.xlu0 %1278  ;;  %v942_v27 = vmul.f32 %v4603_v48, %v4603_v48 }
 0x18b   : > { %v974_v59 = vadd.f32 %v973_v57, %v972_v45  ;;  %v983_v45 = vsel %vm824_vm0, %v940_v11, 0.0  ;;  %v943_v57 = vmul.f32 %v4606_v53, %v4606_v53  ;;  %v945_v11 = vmul.f32 %v4612_v52, %v4612_v52 }
 0x18d   : > { %v976_v62 = vadd.f32 %v975_v61, %v974_v59  ;;  %v4707_v21 = vpop.permute.xlu1 %1101  ;;  %v4709_v24 = vpop.permute.xlu0 %1096  ;;  %v985_v59 = vsel %vm824_vm0, %v941_v16, 0.0  ;;  %v944_v61 = vmul.f32 %v4609_v58, %v4609_v58  ;;  %v946_v16 = vmul.f32 %v4615_v56, %v4615_v56 }
 0x18f   : > { %v978_v10 = vadd.f32 %v977_v9, %v976_v62  ;;  %v987_v62 = vsel %vm824_vm0, %v942_v27, 0.0  ;;  %v947_v27 = vmul.f32 %v4618_v2, %v4618_v2 }
 0x191   : > { %v980_v15 = vadd.f32 %v979_v12, %v978_v10  ;;  %v4720_v9 = vpop.permute.xlu1 %1293  ;;  %v4722_v10 = vpop.permute.xlu0 %1288  ;;  %v989_v12 = vsel %vm824_vm0, %v943_v57, 0.0  ;;  %v948_v57 = vmul.f32 %v4621_v7, %v4621_v7 }
 0x193   : > { %v982_v20 = vadd.f32 %v981_v18, %v980_v15  ;;  %v991_v18 = vsel %vm824_vm0, %v944_v61, 0.0  ;;  %v949_v61 = vmul.f32 %v4623_v1, %v4623_v1 }
 0x195   : > { %v984_v43 = vadd.f32 %v983_v45, %v982_v20  ;;  %v993_v45 = vsel %vm824_vm0, %v945_v11, 0.0  ;;  %v950_v11 = vmul.f32 %v4626_v5, %v4626_v5 }
 0x197   : > { %v986_v60 = vadd.f32 %v985_v59, %v984_v43  ;;  %v4733_v59 = vpop.permute.xlu1 %1111 }
 0x199   : > { %v988_v4 = vadd.f32 %v987_v62, %v986_v60  ;;  %v4735_v60 = vpop.permute.xlu0 %1106  ;;  %v995_v62 = vsel %vm824_vm0, %v946_v16, 0.0  ;;  %v951_v16 = vmul.f32 %v4629_v14, %v4629_v14 }
 0x19b   : > { %v990_v15 = vadd.f32 %v989_v12, %v988_v4  ;;  %v997_v12 = vsel %vm824_vm0, %v947_v27, 0.0  ;;  %v952_v27 = vmul.f32 %v4631_v50, %v4631_v50  ;;  %v3767_v50 = vld [vmem:[%s5764_s6 + $0x4] ss:$8 sps:$4 sm:$0xff]  }
 0x19c   : > { %1880 = vmatprep.mubr.bf16.mxu1 %v3767_v50 }
 0x19d   : > { %v992_v20 = vadd.f32 %v991_v18, %v990_v15  ;;  %v999_v18 = vsel %vm824_vm0, %v948_v57, 0.0  ;;  %v4748_v0 = vpop.permute.xlu0 %1298  ;;  %v953_v57 = vmul.f32 %v4633_v19, %v4633_v19 }
 0x19f   : > { %v994_v43 = vadd.f32 %v993_v45, %v992_v20  ;;  %v4746_v45 = vpop.permute.xlu1 %1303 }
 0x1a1   : > { %v996_v4 = vadd.f32 %v995_v62, %v994_v43  ;;  %v1001_v43 = vsel %vm824_vm0, %v949_v61, 0.0  ;;  %v4761_v7 = vpop.permute.xlu0 %1116  ;;  %v954_v61 = vmul.f32 %v4635_v13, %v4635_v13 }
 0x1a3   : > { %v998_v15 = vadd.f32 %v997_v12, %v996_v4  ;;  %v1003_v4 = vsel %vm824_vm0, %v950_v11, 0.0  ;;  %v4759_v5 = vpop.permute.xlu1 %1121  ;;  %v955_v11 = vmul.f32 %v4637_v54, %v4637_v54 }
 0x1a5   : > { %v1000_v20 = vadd.f32 %v999_v18, %v998_v15  ;;  %v1005_v15 = vsel %vm824_vm0, %v951_v16, 0.0  ;;  %v956_v16 = vmul.f32 %v4639_v17, %v4639_v17 }
 0x1a7   : > { %v1002_v62 = vadd.f32 %v1001_v43, %v1000_v20  ;;  %v1007_v20 = vsel %vm824_vm0, %v952_v27, 0.0  ;;  %v4775_v13 = vpop.permute.xlu1 %1313  ;;  %v4777_v27 = vpop.permute.xlu0 %1308 }
 0x1a9   : > { %v1004_v12 = vadd.f32 %v1003_v4, %v1002_v62  ;;  %v1009_v62 = vsel %vm824_vm0, %v953_v57, 0.0  ;;  %v1013_v57 = vsel %vm824_vm0, %v955_v11, 0.0 }
 0x1ab   : > { %v1006_v18 = vadd.f32 %v1005_v15, %v1004_v12  ;;  %v1011_v12 = vsel %vm824_vm0, %v954_v61, 0.0  ;;  %v1015_v61 = vsel %vm824_vm0, %v956_v16, 0.0  ;;  %v4788_v54 = vpop.permute.xlu1 %1131  ;;  %v4790_v19 = vpop.permute.xlu0 %1126 }
 0x1ad   : > { %v1008_v43 = vadd.f32 %v1007_v20, %v1006_v18  ;;  %v957_v18 = vmul.f32 %v4641_v26, %v4641_v26 }
 0x1af   : > { %v1010_v4 = vadd.f32 %v1009_v62, %v1008_v43  ;;  %v958_v43 = vmul.f32 %v4643_v35, %v4643_v35  ;;  %v4794_v26 = vpop.permute.xlu1 %1323  ;;  %v4796_v16 = vpop.permute.xlu0 %1318 }
 0x1b1   : > { %v1012_v15 = vadd.f32 %v1011_v12, %v1010_v4  ;;  %v959_v4 = vmul.f32 %v4645_v55, %v4645_v55  ;;  %v1017_v12 = vsel %vm824_vm0, %v957_v18, 0.0  ;;  %v1019_v11 = vsel %vm824_vm0, %v958_v43, 0.0 }
 0x1b3   : > { %v1014_v20 = vadd.f32 %v1013_v57, %v1012_v15  ;;  %v1021_v50 = vsel %vm824_vm0, %v959_v4, 0.0  ;;  %v4800_v18 = vpop.permute.xlu0 %1136 }
 0x1b5   : > { %v1016_v62 = vadd.f32 %v1015_v61, %v1014_v20  ;;  %v4798_v61 = vpop.permute.xlu1 %1141 }
 0x1b7   : > { %v1018_v17 = vadd.f32 %v1017_v12, %v1016_v62  ;;  %v4804_v14 = vpop.permute.xlu0 %1328 }
 0x1b8   : > { %5817 = vst [vmem:[#allocation25_spill] sm:$0xff] %v4804_v14 }
 0x1b9   : > { %v1020_v15 = vadd.f32 %v1019_v11, %v1018_v17  ;;  %v4802_v55 = vpop.permute.xlu1 %1333 }
 0x1ba   : > { %5816 = vst [vmem:[#allocation24_spill] sm:$0xff] %v4802_v55 }
 0x1bb   : > { %v1022_v57 = vadd.f32 %v1021_v50, %v1020_v15  ;;  %v4808_v4 = vpop.permute.xlu0 %1146 }
 0x1bd   : > { %v1023_v35 = vrot.slane %v1022_v57, 4  ;;  %v4806_v43 = vpop.permute.xlu1 %1151 }
 0x1bf   : > { %v1024_v20 = vadd.f32 %v1023_v35, %v1022_v57  ;;  %v4812_v35 = vpop.permute.xlu0 %1338 }
 0x1c1   : > { %v1025_v62 = vrot.slane %v1024_v20, 2  ;;  %v4810_v50 = vpop.permute.xlu1 %1343 }
 0x1c3   : > { %v1026_v12 = vadd.f32 %v1025_v62, %v1024_v20  ;;  %v4816_v20 = vpop.permute.xlu0 %1156 }
 0x1c4   : > { %5818 = vst [vmem:[#allocation26_spill] sm:$0xff] %v4816_v20 }
 0x1c5   : > { %v1027_v17 = vrot.slane %v1026_v12, 1  ;;  %v4814_v1 = vpop.permute.xlu1 %1161 }
 0x1c7   : > { %v1028_v11 = vadd.f32 %v1027_v17, %v1026_v12  ;;  %v4820_v55 = vpop.permute.xlu0 %1348 }
 0x1c8   : > { %5820 = vst [vmem:[#allocation28_spill] sm:$0xff] %v4820_v55 }
 0x1c9   : > { %v1029_v15 = vmul.f32 0.00390625, %v1028_v11  ;;  %v4818_v62 = vpop.permute.xlu1 %1353 }
 0x1ca   : > { %5819 = vst [vmem:[#allocation27_spill] sm:$0xff] %v4818_v62 }
 0x1cb   : > { %v1030_v57 = vadd.f32 1e-06, %v1029_v15  ;;  %v4826_v12 = vpop.permute.xlu0 %1166 }
 0x1cc   : > { %5822 = vst [vmem:[#allocation30_spill] sm:$0xff] %v4826_v12 }
 0x1cd   : > { %3957 = vrsqrt.f32 %v1030_v57  ;;  %v4824_v56 = vpop.permute.xlu1 %1171 }
 0x1ce   : > { %5821 = vst [vmem:[#allocation29_spill] sm:$0xff] %v4824_v56 }
 0x1cf   : > { %v4841_v12 = vpop.permute.xlu0 %1358 }
 0x1d0   : > { %5823 = vst [vmem:[#allocation31_spill] sm:$0xff] %v4841_v12 }
 0x1d1   : > { %v4837_v55 = vpop.permute.xlu1 %1363 }
 0x1d7   : > { %v4822_v14 = vpop.eup %3957 }
 0x1d8   : > { %v1032_v17 = vmul.f32 %v4822_v14, %v4557_v28  ;;  %v1033_v11 = vmul.f32 %v4822_v14, %v4560_v34  ;;  %v1034_v15 = vmul.f32 %v4822_v14, %v4563_v36  ;;  %v1035_v57 = vmul.f32 %v4822_v14, %v4566_v37 }
 0x1d9   : > { %v1036_v56 = vmul.f32 %v4822_v14, %v4569_v38  ;;  %v1037_v28 = vmul.f32 %v4822_v14, %v4572_v39  ;;  %v1039_v38 = vmul.f32 %v4822_v14, %v4578_v31  ;;  %v1041_v31 = vmul.f32 %v4822_v14, %v4588_v32 }
 0x1da   : > { %v1224_v62 = vmul.f32 %v4582_v47, %v1032_v17  ;;  %v1226_v34 = vmul.f32 %v4657_v51, %v1034_v15  ;;  %v1227_v20 = vmul.f32 %v4655_v49, %v1035_v57  ;;  %v1225_v36 = vmul.f32 %v4649_v29, %v1033_v11  ;;  %v4858_v29 = vpop.permute.xlu1 %1181 }
 0x1db   : > { %v1038_v17 = vmul.f32 %v4822_v14, %v4575_v42  ;;  %v1228_v12 = vmul.f32 %v4683_v23, %v1036_v56  ;;  %v1229_v39 = vmul.f32 %v4681_v22, %v1037_v28  ;;  %v1040_v42 = vmul.f32 %v4822_v14, %v4585_v30 }
 0x1dc   : > { %v1416_v37 = vadd.f32 %v4580_v33, %v1224_v62  ;;  %v1417_v47 = vadd.f32 %v4647_v25, %v1225_v36  ;;  %v1418_v51 = vadd.f32 %v4670_v8, %v1226_v34  ;;  %v1419_v49 = vadd.f32 %v4668_v6, %v1227_v20  ;;  %v4860_v33 = vpop.permute.xlu0 %1176 }
 0x1dd   : > { %v1230_v56 = vmul.f32 %v4709_v24, %v1038_v17  ;;  %v5824_v25 = vmov 0   ;;  %v1231_v8 = vmul.f32 %v4707_v21, %v1039_v38  ;;  %v1420_v22 = vadd.f32 %v4696_v3, %v1228_v12 }
 0x1de   : > { %v1448_v15 = vpack.c.bf16 %v1417_v47, %v1416_v37  ;;  %v1449_v6 = vpack.c.bf16 %v1419_v49, %v1418_v51  ;;  %v1421_v23 = vadd.f32 %v4694_v63, %v1229_v39  ;;  %v4871_v20 = vpop.permute.xlu1 %1373  ;;  %v1042_v30 = vmul.f32 %v4822_v14, %v4591_v41  ;;  %v5826_v39 = vld [vmem:[#allocation25_spill] sm:$0xff]  ;;  %v5827_v51 = vld [vmem:[#allocation24_spill] sm:$0xff] }
 0x1df   : > { %v1043_v32 = vmul.f32 %v4822_v14, %v4594_v46  ;;  %v1232_v24 = vmul.f32 %v4735_v60, %v1040_v42  ;;  %v1233_v3 = vmul.f32 %v4733_v59, %v1041_v31  ;;  %v1422_v21 = vadd.f32 %v4722_v10, %v1230_v56  ;;  %v5828_v42 = vld [vmem:[#allocation13_spill] sm:$0xff]  ;;  %v5829_v56 = vld [vmem:[#allocation26_spill] sm:$0xff] }
 0x1e0   : > { %1849 = vmatpush1.bf16.msra.mxu1 %v1448_v15  ;;  %v4878_v62 = vpop.permute.xlu0 %1368  ;;  %v1423_v63 = vadd.f32 %v4720_v9, %v1231_v8  ;;  %v1450_v12 = vpack.c.bf16 %v1421_v23, %v1420_v22  ;;  %v1044_v41 = vmul.f32 %v4822_v14, %v4597_v40  ;;  %v1045_v46 = vmul.f32 %v4822_v14, %v4600_v44 }
 0x1e1   : > { %1850 = vmatprep.subr.bf16.mxu1 %v5824_v25  ;;  %v1234_v60 = vmul.f32 %v4761_v7, %v1042_v30  ;;  %v1235_v11 = vmul.f32 %v4759_v5, %v1043_v32  ;;  %v1424_v59 = vadd.f32 %v4748_v0, %v1232_v24  ;;  %v1425_v10 = vadd.f32 %v4746_v45, %v1233_v3  ;;  %v5831_v32 = vld [vmem:[#allocation15_spill] sm:$0xff]  ;;  %v5832_v3 = vld [vmem:[#allocation29_spill] sm:$0xff] }
 0x1e2   : > { %v1451_v57 = vpack.c.bf16 %v1423_v63, %v1422_v21  ;;  %v4893_v9 = vpop.permute.xlu1 %1191  ;;  %v1046_v40 = vmul.f32 %v4822_v14, %v4603_v48  ;;  %v1047_v44 = vmul.f32 %v4822_v14, %v4606_v53  ;;  %v1236_v7 = vmul.f32 %v4790_v19, %v1044_v41 }
 0x1e3   : > { %v1237_v0 = vmul.f32 %v4788_v54, %v1045_v46  ;;  %v1426_v5 = vadd.f32 %v4777_v27, %v1234_v60  ;;  %v1427_v45 = vadd.f32 %v4775_v13, %v1235_v11  ;;  %v1452_v34 = vpack.c.bf16 %v1425_v10, %v1424_v59  ;;  %v5835_v46 = vld [vmem:[#allocation30_spill] sm:$0xff]  ;;  %v5837_v10 = vld [vmem:[#allocation17_spill] sm:$0xff] }
 0x1e4   : > { %1851 = vmatpush1.bf16.msra.mxu1 %v1449_v6  ;;  %v4895_v28 = vpop.permute.xlu0 %1186  ;;  %v1048_v48 = vmul.f32 %v4822_v14, %v4609_v58  ;;  %v1049_v53 = vmul.f32 %v4822_v14, %v4612_v52  ;;  %v1238_v19 = vmul.f32 %v4800_v18, %v1046_v40  ;;  %v1239_v54 = vmul.f32 %v4798_v61, %v1047_v44  ;;  %v5825_v18 = vld [vmem:[#allocation11_spill] sm:$0xff]  ;;  %v5830_v6 = vld [vmem:[#allocation12_spill] sm:$0xff]  ;;  %v5836_v11 = vld [vmem:[#allocation14_spill] sm:$0xff] }
 0x1e5   : > { %1852 = vmatprep.subr.bf16.mxu1 %v5824_v25  ;;  %v1428_v13 = vadd.f32 %v4796_v16, %v1236_v7  ;;  %v1429_v27 = vadd.f32 %v4794_v26, %v1237_v0  ;;  %v1453_v47 = vpack.c.bf16 %v1427_v45, %v1426_v5  ;;  %v1051_v58 = vmul.f32 %v4822_v14, %v4618_v2  ;;  %v5838_v0 = vld [vmem:[#allocation31_spill] sm:$0xff] }
 0x1e6   : > { %v4906_v36 = vpop.permute.xlu1 %1383  ;;  %v1240_v17 = vmul.f32 %v4808_v4, %v1048_v48  ;;  %v1241_v52 = vmul.f32 %v4806_v43, %v1049_v53  ;;  %v1050_v38 = vmul.f32 %v4822_v14, %v5825_v18  ;;  %v1430_v61 = vadd.f32 %v5826_v39, %v1238_v19 }
 0x1e7   : > { %v1431_v16 = vadd.f32 %v5827_v51, %v1239_v54  ;;  %v1454_v15 = vpack.c.bf16 %v1429_v27, %v1428_v13  ;;  %v1053_v2 = vmul.f32 %v4822_v14, %v5828_v42  ;;  %v1243_v31 = vmul.f32 %v4814_v1, %v1051_v58  ;;  %v5834_v1 = vld [vmem:[#allocation27_spill] sm:$0xff]  ;;  %v5841_v58 = vld [vmem:[#allocation18_spill] sm:$0xff] }
 0x1e8   : > { %1853 = vmatpush1.bf16.msra.mxu1 %v1450_v12  ;;  %v4913_v37 = vpop.permute.xlu0 %1378  ;;  %v1432_v4 = vadd.f32 %v4812_v35, %v1240_v17  ;;  %v1433_v43 = vadd.f32 %v4810_v50, %v1241_v52  ;;  %v1242_v8 = vmul.f32 %v5829_v56, %v1050_v38  ;;  %v1052_v23 = vmul.f32 %v4822_v14, %v5830_v6  ;;  %v5833_v50 = vld [vmem:[#allocation28_spill] sm:$0xff]  ;;  %v5840_v54 = vld [vmem:[#allocation19_spill] sm:$0xff]  ;;  %v5842_v52 = vld [vmem:[#allocation21_spill] sm:$0xff] }
 0x1e9   : > { %1854 = vmatprep.subr.bf16.mxu1 %v5824_v25  ;;  %v1455_v22 = vpack.c.bf16 %v1431_v16, %v1430_v61  ;;  %v1055_v24 = vmul.f32 %v4822_v14, %v5831_v32  ;;  %v1245_v21 = vmul.f32 %v5832_v3, %v1053_v2  ;;  %v1435_v41 = vadd.f32 %v5834_v1, %v1243_v31  ;;  %v5843_v16 = vld [vmem:[#allocation20_spill] sm:$0xff]  ;;  %v5844_v2 = vld [vmem:[#allocation23_spill] sm:$0xff]  ;;  %v5845_v31 = vld [vmem:[#allocation22_spill] sm:$0xff] }
 0x1ea   : > { %v1202_v26 = vpop.permute.xlu1 %1201  ;;  %v1456_v35 = vpack.c.bf16 %v1433_v43, %v1432_v4  ;;  %v1434_v12 = vadd.f32 %v5833_v50, %v1242_v8  ;;  %v1244_v60 = vmul.f32 %v5835_v46, %v1052_v23  ;;  %v1054_v59 = vmul.f32 %v4822_v14, %v5836_v11  ;;  %v3768_v50 = vld [vmem:[%s5764_s6 + $0x14] ss:$8 sps:$4 sm:$0xff]   ;;  %v3771_v1 = vld [vmem:[%s5764_s6 + $0x24] ss:$8 sps:$4 sm:$0xff]  }
 0x1eb   : > { %v1247_v40 = vmul.f32 %v4858_v29, %v1055_v24  ;;  %v1437_v44 = vadd.f32 %v4837_v55, %v1245_v21  ;;  %v1059_v13 = vmul.f32 %v4822_v14, %v5840_v54  ;;  %v1058_v17 = vmul.f32 %v4822_v14, %v5841_v58  ;;  %v3774_v46 = vld [vmem:[%s5764_s6 + $0x34] ss:$8 sps:$4 sm:$0xff]   ;;  %v3777_v11 = vld [vmem:[%s5764_s6 + $0x44] ss:$8 sps:$4 sm:$0xff]  }
 0x1ec   : > { %1855 = vmatpush1.bf16.msra.mxu1 %v1451_v57  ;;  %v1197_v49 = vpop.permute.xlu0 %1196  ;;  %v1057_v57 = vmul.f32 %v4822_v14, %v5837_v10  ;;  %v1457_v7 = vpack.c.bf16 %v1435_v41, %v1434_v12  ;;  %v1436_v5 = vadd.f32 %v5838_v0, %v1244_v60  ;;  %v1246_v45 = vmul.f32 %v4860_v33, %v1054_v59  ;;  %v3770_v12 = vld [vmem:[%s5764_s6 + $0x10] ss:$8 sps:$4 sm:$0xff]   ;;  %v3773_v41 = vld [vmem:[%s5764_s6 + $0x20] ss:$8 sps:$4 sm:$0xff]   ;;  %v3780_v10 = vld [vmem:[%s5764_s6 + $0x54] ss:$8 sps:$4 sm:$0xff]  }
 0x1ed   : > { %1856 = vmatprep.subr.bf16.mxu1 %v5824_v25  ;;  %v1439_v55 = vadd.f32 %v4871_v20, %v1247_v40  ;;  %v1061_v18 = vmul.f32 %v4822_v14, %v5842_v52  ;;  %v1251_v38 = vmul.f32 %v1202_v26, %v1059_v13  ;;  %v1063_v4 = vmul.f32 %v4822_v14, %v5844_v2  ;;  %v3776_v60 = vld [vmem:[%s5764_s6 + $0x30] ss:$8 sps:$4 sm:$0xff]   ;;  %v3779_v59 = vld [vmem:[%s5764_s6 + $0x40] ss:$8 sps:$4 sm:$0xff]   ;;  %v3783_v40 = vld [vmem:[%s5764_s6 + $0x64] ss:$8 sps:$4 sm:$0xff]  }
 0x1ee   : > { %v1394_v30 = vpop.permute.xlu1 %1393  ;;  %v1249_v29 = vmul.f32 %v4893_v9, %v1057_v57  ;;  %v1458_v27 = vpack.c.bf16 %v1437_v44, %v1436_v5  ;;  %v1062_v56 = vmul.f32 %v4822_v14, %v5845_v31  ;;  %v3782_v57 = vld [vmem:[%s5764_s6 + $0x50] ss:$8 sps:$4 sm:$0xff]   ;;  %v3785_v44 = vld [vmem:[%s5764_s6 + $0x60] ss:$8 sps:$4 sm:$0xff]   ;;  %v3789_v5 = vld [vmem:[%s5764_s6 + $0x84] ss:$8 sps:$4 sm:$0xff]  }
 0x1ef   : > { %v1443_v42 = vadd.f32 %v1394_v30, %v1251_v38  ;;  %v3788_v0 = vld [vmem:[%s5764_s6 + $0x70] ss:$8 sps:$4 sm:$0xff]   ;;  %v3798_v54 = vld [vmem:[%s5764_s6 + $0xb4] ss:$8 sps:$4 sm:$0xff]   ;;  %v3807_v58 = vld [vmem:[%s5764_s6 + $0xe4] ss:$8 sps:$4 sm:$0xff]  }
 0x1f0   : > { %1857 = vmatpush1.bf16.msra.mxu1 %v1452_v34  ;;  %v1389_v63 = vpop.permute.xlu0 %1388  ;;  %v5839_v34 = vld [vmem:[#allocation16_spill] sm:$0xff]  ;;  %v1441_v9 = vadd.f32 %v4906_v36, %v1249_v29  ;;  %v3800_v13 = vld [vmem:[%s5764_s6 + $0xb0] ss:$8 sps:$4 sm:$0xff]   ;;  %v3810_v52 = vld [vmem:[%s5764_s6 + $0xf4] ss:$8 sps:$4 sm:$0xff]  }
 0x1f1   : > { %1858 = vmatprep.subr.bf16.mxu1 %v5824_v25  ;;  %v1056_v48 = vmul.f32 %v4822_v14, %v5839_v34  ;;  %v3792_v34 = vld [vmem:[%s5764_s6 + $0x94] ss:$8 sps:$4 sm:$0xff]   ;;  %v3801_v29 = vld [vmem:[%s5764_s6 + $0xc4] ss:$8 sps:$4 sm:$0xff]   ;;  %v3830_v2 = vld [vmem:[%s5764_s6 + $0x150] ss:$8 sps:$4 sm:$0xff]  }
 0x1f2   : > { %v1212_v53 = vpop.permute.xlu1 %1211  ;;  %v3813_v38 = vld [vmem:[%s5764_s6 + $0x104] ss:$8 sps:$4 sm:$0xff]  }
 0x1f3   : > { %v1248_v33 = vmul.f32 %v4895_v28, %v1056_v48  ;;  %v1060_v28 = vmul.f32 %v4822_v14, %v5843_v16  ;;  %v3794_v48 = vld [vmem:[%s5764_s6 + $0x90] ss:$8 sps:$4 sm:$0xff]  }
 0x1f4   : > { %1859 = vmatpush1.bf16.msra.mxu1 %v1453_v47  ;;  %v1207_v19 = vpop.permute.xlu0 %1206  ;;  %v1438_v47 = vadd.f32 %v4878_v62, %v1246_v45  ;;  %v1250_v62 = vmul.f32 %v1197_v49, %v1058_v17  ;;  %v3791_v45 = vld [vmem:[%s5764_s6 + $0x80] ss:$8 sps:$4 sm:$0xff]   ;;  %v3824_v16 = vld [vmem:[%s5764_s6 + $0x130] ss:$8 sps:$4 sm:$0xff]  }
 0x1f5   : > { %1860 = vmatprep.subr.bf16.mxu1 %v5824_v25  ;;  %v1440_v51 = vadd.f32 %v4913_v37, %v1248_v33  ;;  %v1252_v43 = vmul.f32 %v1207_v19, %v1060_v28  ;;  %v3797_v19 = vld [vmem:[%s5764_s6 + $0xa0] ss:$8 sps:$4 sm:$0xff]   ;;  %v3806_v33 = vld [vmem:[%s5764_s6 + $0xd0] ss:$8 sps:$4 sm:$0xff]   ;;  %v3825_v28 = vld [vmem:[%s5764_s6 + $0x144] ss:$8 sps:$4 sm:$0xff]  }
 0x1f6   : > { %v1404_v39 = vpop.permute.xlu1 %1403  ;;  %v1459_v20 = vpack.c.bf16 %v1439_v55, %v1438_v47  ;;  %v1442_v36 = vadd.f32 %v1389_v63, %v1250_v62  ;;  %v3765_v63 = vld [vmem:[%s5764_s6] ss:$8 sps:$4 sm:$0xff]   ;;  %v4069_v55 = vmov 0.0   ;;  %v3804_v47 = vld [vmem:[%s5764_s6 + $0xd4] ss:$8 sps:$4 sm:$0xff]  }
 0x1f7   : > { %v1460_v26 = vpack.c.bf16 %v1441_v9, %v1440_v51  ;;  %3610 = vmatprep.subr.bf16.mxu0 %v4069_v55  ;;  %v3809_v17 = vld [vmem:[%s5764_s6 + $0xe0] ss:$8 sps:$4 sm:$0xff]   ;;  %v3816_v9 = vld [vmem:[%s5764_s6 + $0x114] ss:$8 sps:$4 sm:$0xff]   ;;  %3626 = vmatprep.mubr.msk.bf16.mxu0 %vm4070_vm1, %v4069_v55 }
 0x1f8   : > { %1861 = vmatpush1.bf16.msra.mxu1 %v1454_v15  ;;  %v1399_v61 = vpop.permute.xlu0 %1398  ;;  %v1253_v15 = vmul.f32 %v1212_v53, %v1061_v18  ;;  %v1461_v6 = vpack.c.bf16 %v1443_v42, %v1442_v36  ;;  %v3795_v53 = vld [vmem:[%s5764_s6 + $0xa4] ss:$8 sps:$4 sm:$0xff]   ;;  %v3812_v18 = vld [vmem:[%s5764_s6 + $0xf0] ss:$8 sps:$4 sm:$0xff]   ;;  %v3821_v51 = vld [vmem:[%s5764_s6 + $0x120] ss:$8 sps:$4 sm:$0xff]  }
 0x1f9   : > { %1862 = vmatprep.subr.bf16.mxu1 %v5824_v25  ;;  %v1444_v23 = vadd.f32 %v1399_v61, %v1252_v43  ;;  %v3818_v61 = vld [vmem:[%s5764_s6 + $0x110] ss:$8 sps:$4 sm:$0xff]   ;;  %v3822_v62 = vld [vmem:[%s5764_s6 + $0x134] ss:$8 sps:$4 sm:$0xff]  }
 0x1fa   : > { %v1222_v8 = vpop.permute.xlu1 %1221  ;;  %v1445_v49 = vadd.f32 %v1404_v39, %v1253_v15  ;;  %v3815_v39 = vld [vmem:[%s5764_s6 + $0x100] ss:$8 sps:$4 sm:$0xff]   ;;  %v3828_v42 = vld [vmem:[%s5764_s6 + $0x154] ss:$8 sps:$4 sm:$0xff]   ;;  %v3836_v43 = vld [vmem:[%s5764_s6 + $0x170] ss:$8 sps:$4 sm:$0xff]  }
 0x1fb   : > { %v3827_v15 = vld [vmem:[%s5764_s6 + $0x140] ss:$8 sps:$4 sm:$0xff]   ;;  %v3834_v36 = vld [vmem:[%s5764_s6 + $0x174] ss:$8 sps:$4 sm:$0xff]  }
 0x1fc   : > { %1863 = vmatpush1.bf16.msra.mxu1 %v1455_v22  ;;  %v1217_v37 = vpop.permute.xlu0 %1216  ;;  %v1255_v22 = vmul.f32 %v1222_v8, %v1063_v4  ;;  %v1462_v21 = vpack.c.bf16 %v1445_v49, %v1444_v23  ;;  %v3831_v4 = vld [vmem:[%s5764_s6 + $0x164] ss:$8 sps:$4 sm:$0xff]  }
 0x1fd   : > { %1864 = vmatprep.subr.bf16.mxu1 %v5824_v25  ;;  %v1254_v30 = vmul.f32 %v1217_v37, %v1062_v56  ;;  %v2137_v56 = vld [vmem:[%s5759_s1] sm:$0xff]  ;;  %v2138_v8 = vld [vmem:[%s5759_s1 + $0x8] sm:$0xff] }
 0x1fe   : > { %v1414_v32 = vpop.permute.xlu1 %1413 }
 0x1ff   : > { %v1447_v3 = vadd.f32 %v1414_v32, %v1255_v22 }
 0x200   : > { %1865 = vmatpush1.bf16.msra.mxu1 %v1456_v35  ;;  %v1409_v24 = vpop.permute.xlu0 %1408 }
 0x201   : > { %1866 = vmatprep.subr.bf16.mxu1 %v5824_v25  ;;  %v1446_v35 = vadd.f32 %v1409_v24, %v1254_v30  ;;  %v2139_v24 = vld [vmem:[%s5759_s1 + $0x10] sm:$0xff] }
 0x203   : > { %v1463_v14 = vpack.c.bf16 %v1447_v3, %v1446_v35  ;;  %v2140_v3 = vld [vmem:[%s5759_s1 + $0x18] sm:$0xff] }
 0x204   : > { %1867 = vmatpush1.bf16.msra.mxu1 %v1457_v7  ;;  %v3786_v7 = vld [vmem:[%s5764_s6 + $0x74] ss:$8 sps:$4 sm:$0xff]  }
 0x205   : > { %1868 = vmatprep.subr.bf16.mxu1 %v5824_v25 }
 0x208   : > { %1869 = vmatpush1.bf16.msra.mxu1 %v1458_v27  ;;  %v3803_v27 = vld [vmem:[%s5764_s6 + $0xc0] ss:$8 sps:$4 sm:$0xff]  }
 0x209   : > { %1870 = vmatprep.subr.bf16.mxu1 %v5824_v25 }
 0x20c   : > { %1871 = vmatpush1.bf16.msra.mxu1 %v1459_v20  ;;  %v3819_v20 = vld [vmem:[%s5764_s6 + $0x124] ss:$8 sps:$4 sm:$0xff]  }
 0x20d   : > { %1872 = vmatprep.subr.bf16.mxu1 %v5824_v25 }
 0x210   : > { %1873 = vmatpush1.bf16.msra.mxu1 %v1460_v26  ;;  %v3833_v26 = vld [vmem:[%s5764_s6 + $0x160] ss:$8 sps:$4 sm:$0xff]  }
 0x211   : > { %1874 = vmatprep.subr.bf16.mxu1 %v5824_v25 }
 0x214   : > { %1875 = vmatpush1.bf16.msra.mxu1 %v1461_v6 }
 0x215   : > { %1876 = vmatprep.subr.bf16.mxu1 %v5824_v25 }
 0x218   : > { %1877 = vmatpush1.bf16.msra.mxu1 %v1462_v21 }
 0x219   : > { %1878 = vmatprep.subr.bf16.mxu1 %v5824_v25 }
 0x21c   : > { %1879 = vmatpush1.bf16.msra.mxu1 %v1463_v14 }
 0x21f   : > { %1881 = vmatmul.mubr.bf16.vlgmr.msra.gmra.mrb[0].mxu1 %v3765_v63 }
 0x220   : > { %1888 = vmatprep.mubr.bf16.mxu1 %v3768_v50 }
 0x227   : > { %1889 = vmatmul.mubr.bf16.gmra.mrb[4].mxu1 %v3770_v12 }
 0x228   : > { %1896 = vmatprep.mubr.bf16.mxu1 %v3771_v1 }
 0x22f   : > { %1897 = vmatmul.mubr.bf16.gmra.mrb[8].mxu1 %v3773_v41  ;;  %v2141_v41 = vld [vmem:[%s5759_s1 + $0x20] sm:$0xff] }
 0x230   : > { %1904 = vmatprep.mubr.bf16.mxu1 %v3774_v46  ;;  %v2142_v46 = vld [vmem:[%s5759_s1 + $0x28] sm:$0xff] }
 0x237   : > { %1905 = vmatmul.mubr.bf16.gmra.mrb[12].mxu1 %v3776_v60 }
 0x238   : > { %1912 = vmatprep.mubr.bf16.mxu1 %v3777_v11 }
 0x23f   : > { %1913 = vmatmul.mubr.bf16.gmra.mrb[16].mxu1 %v3779_v59 }
 0x240   : > { %1920 = vmatprep.mubr.bf16.mxu1 %v3780_v10 }
 0x247   : > { %1921 = vmatmul.mubr.bf16.gmra.mrb[20].mxu1 %v3782_v57 }
 0x248   : > { %1928 = vmatprep.mubr.bf16.mxu1 %v3783_v40 }
 0x24f   : > { %1929 = vmatmul.mubr.bf16.gmra.mrb[24].mxu1 %v3785_v44 }
 0x250   : > { %1936 = vmatprep.mubr.bf16.mxu1 %v3786_v7  ;;  %v2143_v7 = vld [vmem:[%s5759_s1 + $0x30] sm:$0xff] }
 0x257   : > { %1937 = vmatmul.mubr.bf16.gmra.mrb[28].mxu1 %v3788_v0  ;;  %v2144_v0 = vld [vmem:[%s5759_s1 + $0x38] sm:$0xff] }
 0x258   : > { %1944 = vmatprep.mubr.bf16.mxu1 %v3789_v5 }
 0x25f   : > { %1945 = vmatmul.mubr.bf16.gmra.mrb[32].mxu1 %v3791_v45 }
 0x260   : > { %1952 = vmatprep.mubr.bf16.mxu1 %v3792_v34 }
 0x267   : > { %1953 = vmatmul.mubr.bf16.gmra.mrb[36].mxu1 %v3794_v48 }
 0x268   : > { %1960 = vmatprep.mubr.bf16.mxu1 %v3795_v53 }
 0x26f   : > { %1961 = vmatmul.mubr.bf16.gmra.mrb[40].mxu1 %v3797_v19 }
 0x270   : > { %1968 = vmatprep.mubr.bf16.mxu1 %v3798_v54 }
 0x277   : > { %1969 = vmatmul.mubr.bf16.gmra.mrb[44].mxu1 %v3800_v13  ;;  %v2145_v13 = vld [vmem:[%s5759_s1 + $0x40] sm:$0xff] }
 0x278   : > { %1976 = vmatprep.mubr.bf16.mxu1 %v3801_v29  ;;  %v2146_v29 = vld [vmem:[%s5759_s1 + $0x48] sm:$0xff] }
 0x27f   : > { %1977 = vmatmul.mubr.bf16.gmra.mrb[48].mxu1 %v3803_v27 }
 0x280   : > { %1984 = vmatprep.mubr.bf16.mxu1 %v3804_v47 }
 0x287   : > { %1985 = vmatmul.mubr.bf16.gmra.mrb[52].mxu1 %v3806_v33 }
 0x288   : > { %1992 = vmatprep.mubr.bf16.mxu1 %v3807_v58 }
 0x28f   : > { %1993 = vmatmul.mubr.bf16.gmra.mrb[56].mxu1 %v3809_v17 }
 0x290   : > { %2000 = vmatprep.mubr.bf16.mxu1 %v3810_v52 }
 0x297   : > { %2001 = vmatmul.mubr.bf16.gmra.mrb[60].mxu1 %v3812_v18 }
 0x298   : > { %2008 = vmatprep.mubr.bf16.mxu1 %v3813_v38  ;;  %v2147_v38 = vld [vmem:[%s5759_s1 + $0x50] sm:$0xff] }
 0x29f   : > { %2009 = vmatmul.mubr.bf16.gmra.mrb[64].mxu1 %v3815_v39  ;;  %v2148_v39 = vld [vmem:[%s5759_s1 + $0x58] sm:$0xff] }
 0x2a0   : > { %2016 = vmatprep.mubr.bf16.mxu1 %v3816_v9 }
 0x2a7   : > { %2017 = vmatmul.mubr.bf16.gmra.mrb[68].mxu1 %v3818_v61 }
 0x2a8   : > { %2024 = vmatprep.mubr.bf16.mxu1 %v3819_v20 }
 0x2af   : > { %2025 = vmatmul.mubr.bf16.gmra.mrb[72].mxu1 %v3821_v51 }
 0x2b0   : > { %2032 = vmatprep.mubr.bf16.mxu1 %v3822_v62 }
 0x2b7   : > { %2033 = vmatmul.mubr.bf16.gmra.mrb[76].mxu1 %v3824_v16 }
 0x2b8   : > { %2040 = vmatprep.mubr.bf16.mxu1 %v3825_v28 }
 0x2bf   : > { %2041 = vmatmul.mubr.bf16.gmra.mrb[80].mxu1 %v3827_v15  ;;  %v2149_v15 = vld [vmem:[%s5759_s1 + $0x60] sm:$0xff] }
 0x2c0   : > { %2048 = vmatprep.mubr.bf16.mxu1 %v3828_v42  ;;  %v2150_v42 = vld [vmem:[%s5759_s1 + $0x68] sm:$0xff] }
 0x2c7   : > { %2049 = vmatmul.mubr.bf16.gmra.mrb[84].mxu1 %v3830_v2 }
 0x2c8   : > { %2056 = vmatprep.mubr.bf16.mxu1 %v3831_v4 }
 0x2cf   : > { %2057 = vmatmul.mubr.bf16.gmra.mrb[88].mxu1 %v3833_v26 }
 0x2d0   : > { %2064 = vmatprep.mubr.bf16.mxu1 %v3834_v36 }
 0x2d7   : > { %2065 = vmatmul.mubr.bf16.gmra.mrb[92].mxu1 %v3836_v43 }
 0x2f2   : > { %v1882_v31 = vpop.f32.mrb[0].mxu1 }
 0x2f3   : > { %v1884_v37 = vpop.f32.mrb[1].mxu1  ;;  %v2169_v22 = vadd.f32 %v2137_v56, %v1882_v31 }
 0x2f4   : > { %v1885_v49 = vpop.f32.mrb[2].mxu1  ;;  %v2152_v37 = vld [vmem:[%s5759_s1 + $0x78] sm:$0xff] }
 0x2f5   : > { %v2170_v6 = vadd.f32 %v2138_v8, %v1885_v49  ;;  %v1887_v23 = vpop.f32.mrb[3].mxu1  ;;  %v2151_v8 = vld [vmem:[%s5759_s1 + $0x70] sm:$0xff] }
 0x2f7   : > { %v2425_v30 = vpack.c.bf16 %v2170_v6, %v2169_v22  ;;  %v3837_v22 = vld [vmem:[%s5764_s6 + $0x184] ss:$8 sps:$4 sm:$0xff]   ;;  %v3839_v6 = vld [vmem:[%s5764_s6 + $0x180] ss:$8 sps:$4 sm:$0xff]  }
 0x2f8   : > { %2072 = vmatprep.mubr.bf16.mxu1 %v3837_v22 }
 0x2f9   : > { %3611 = vmatpush3.bf16.msra.mxu0 %v2425_v30  ;;  %2073 = vmatmul.mubr.bf16.gmra.mrb[96].mxu1 %v3839_v6  ;;  %v2165_v6 = vld [vmem:[%s5759_s1 + $0xe0] sm:$0xff] }
 0x2fa   : > { %v1890_v32 = vpop.f32.mrb[4].mxu1  ;;  %3612 = vmatprep.subr.bf16.mxu0 %v4069_v55 }
 0x2fb   : > { %v1892_v21 = vpop.f32.mrb[5].mxu1  ;;  %v2171_v14 = vadd.f32 %v2139_v24, %v1890_v32 }
 0x2fc   : > { %v1893_v35 = vpop.f32.mrb[6].mxu1  ;;  %v2457_v21 = vld [vmem:[%s5760_s2] sm:$0xf] }
 0x2fd   : > { %v2172_v63 = vadd.f32 %v2140_v3, %v1893_v35  ;;  %v1895_v50 = vpop.f32.mrb[7].mxu1 }
 0x2ff   : > { %v2426_v12 = vpack.c.bf16 %v2172_v63, %v2171_v14  ;;  %v2153_v14 = vld [vmem:[%s5759_s1 + $0x80] sm:$0xff]  ;;  %v2154_v63 = vld [vmem:[%s5759_s1 + $0x88] sm:$0xff] }
 0x301   : > { %3613 = vmatpush3.bf16.msra.mxu0 %v2426_v12 }
 0x302   : > { %v1898_v1 = vpop.f32.mrb[8].mxu1  ;;  %3614 = vmatprep.subr.bf16.mxu0 %v4069_v55 }
 0x303   : > { %v1900_v60 = vpop.f32.mrb[9].mxu1  ;;  %v2173_v59 = vadd.f32 %v2141_v41, %v1898_v1 }
 0x304   : > { %v1901_v11 = vpop.f32.mrb[10].mxu1 }
 0x305   : > { %v2174_v10 = vadd.f32 %v2142_v46, %v1901_v11  ;;  %v1903_v57 = vpop.f32.mrb[11].mxu1 }
 0x307   : > { %v2427_v40 = vpack.c.bf16 %v2174_v10, %v2173_v59  ;;  %v2155_v59 = vld [vmem:[%s5759_s1 + $0x90] sm:$0xff]  ;;  %v2156_v10 = vld [vmem:[%s5759_s1 + $0x98] sm:$0xff] }
 0x309   : > { %3615 = vmatpush3.bf16.msra.mxu0 %v2427_v40 }
 0x30a   : > { %v1906_v44 = vpop.f32.mrb[12].mxu1  ;;  %3616 = vmatprep.subr.bf16.mxu0 %v4069_v55 }
 0x30b   : > { %v1908_v5 = vpop.f32.mrb[13].mxu1  ;;  %v2175_v34 = vadd.f32 %v2143_v7, %v1906_v44 }
 0x30c   : > { %v1909_v45 = vpop.f32.mrb[14].mxu1 }
 0x30d   : > { %v2176_v48 = vadd.f32 %v2144_v0, %v1909_v45  ;;  %v1911_v53 = vpop.f32.mrb[15].mxu1 }
 0x30f   : > { %v2428_v19 = vpack.c.bf16 %v2176_v48, %v2175_v34  ;;  %v2157_v34 = vld [vmem:[%s5759_s1 + $0xa0] sm:$0xff]  ;;  %v2158_v48 = vld [vmem:[%s5759_s1 + $0xa8] sm:$0xff] }
 0x311   : > { %3617 = vmatpush3.bf16.msra.mxu0 %v2428_v19 }
 0x312   : > { %v1914_v54 = vpop.f32.mrb[16].mxu1  ;;  %3618 = vmatprep.subr.bf16.mxu0 %v4069_v55 }
 0x313   : > { %v1916_v27 = vpop.f32.mrb[17].mxu1  ;;  %v2177_v33 = vadd.f32 %v2145_v13, %v1914_v54 }
 0x314   : > { %v1917_v47 = vpop.f32.mrb[18].mxu1 }
 0x315   : > { %v2178_v58 = vadd.f32 %v2146_v29, %v1917_v47  ;;  %v1919_v17 = vpop.f32.mrb[19].mxu1 }
 0x317   : > { %v2429_v52 = vpack.c.bf16 %v2178_v58, %v2177_v33  ;;  %v2159_v33 = vld [vmem:[%s5759_s1 + $0xb0] sm:$0xff]  ;;  %v2160_v58 = vld [vmem:[%s5759_s1 + $0xb8] sm:$0xff] }
 0x319   : > { %3619 = vmatpush3.bf16.msra.mxu0 %v2429_v52 }
 0x31a   : > { %v1922_v18 = vpop.f32.mrb[20].mxu1  ;;  %3620 = vmatprep.subr.bf16.mxu0 %v4069_v55 }
 0x31b   : > { %v1924_v9 = vpop.f32.mrb[21].mxu1  ;;  %v2179_v20 = vadd.f32 %v2147_v38, %v1922_v18 }
 0x31c   : > { %v1925_v61 = vpop.f32.mrb[22].mxu1 }
 0x31d   : > { %v2180_v51 = vadd.f32 %v2148_v39, %v1925_v61  ;;  %v1927_v62 = vpop.f32.mrb[23].mxu1 }
 0x31f   : > { %v2430_v16 = vpack.c.bf16 %v2180_v51, %v2179_v20  ;;  %v2161_v20 = vld [vmem:[%s5759_s1 + $0xc0] sm:$0xff]  ;;  %v2162_v51 = vld [vmem:[%s5759_s1 + $0xc8] sm:$0xff] }
 0x321   : > { %3621 = vmatpush3.bf16.msra.mxu0 %v2430_v16 }
 0x322   : > { %v1930_v28 = vpop.f32.mrb[24].mxu1  ;;  %3622 = vmatprep.subr.bf16.mxu0 %v4069_v55 }
 0x323   : > { %v1932_v2 = vpop.f32.mrb[25].mxu1  ;;  %v2181_v26 = vadd.f32 %v2149_v15, %v1930_v28 }
 0x324   : > { %v1933_v4 = vpop.f32.mrb[26].mxu1 }
 0x325   : > { %v2182_v36 = vadd.f32 %v2150_v42, %v1933_v4  ;;  %v1935_v43 = vpop.f32.mrb[27].mxu1 }
 0x327   : > { %v2431_v31 = vpack.c.bf16 %v2182_v36, %v2181_v26  ;;  %v2163_v26 = vld [vmem:[%s5759_s1 + $0xd0] sm:$0xff]  ;;  %v2164_v36 = vld [vmem:[%s5759_s1 + $0xd8] sm:$0xff] }
 0x329   : > { %3623 = vmatpush3.bf16.msra.mxu0 %v2431_v31 }
 0x32a   : > { %v1938_v56 = vpop.f32.mrb[28].mxu1  ;;  %3624 = vmatprep.subr.bf16.mxu0 %v4069_v55 }
 0x32b   : > { %v1940_v49 = vpop.f32.mrb[29].mxu1  ;;  %v2183_v30 = vadd.f32 %v2151_v8, %v1938_v56 }
 0x32c   : > { %v1941_v23 = vpop.f32.mrb[30].mxu1 }
 0x32d   : > { %v2184_v32 = vadd.f32 %v2152_v37, %v1941_v23  ;;  %v1943_v24 = vpop.f32.mrb[31].mxu1  ;;  %v2166_v23 = vld [vmem:[%s5759_s1 + $0xe8] sm:$0xff] }
 0x32f   : > { %v2432_v3 = vpack.c.bf16 %v2184_v32, %v2183_v30 }
 0x331   : > { %3625 = vmatpush3.bf16.msra.mxu0 %v2432_v3 }
 0x332   : > { %v1946_v35 = vpop.f32.mrb[32].mxu1  ;;  %3630 = vmatprep.subr.bf16.mxu0 %v4069_v55 }
 0x333   : > { %v1948_v50 = vpop.f32.mrb[33].mxu1  ;;  %v2185_v1 = vadd.f32 %v2153_v14, %v1946_v35  ;;  %v2236_v35 = vpop.permute.xlu1 %2235 }
 0x334   : > { %3627 = vmatmul.mubr.bf16.vlgmr.msra.gmra.mrb[32].mxu0 %v2457_v21  ;;  %v1949_v12 = vpop.f32.mrb[34].mxu1  ;;  %v2167_v50 = vld [vmem:[%s5759_s1 + $0xf0] sm:$0xff] }
 0x335   : > { %v2186_v41 = vadd.f32 %v2154_v63, %v1949_v12  ;;  %v1951_v46 = vpop.f32.mrb[35].mxu1  ;;  %3646 = vmatprep.mubr.msk.bf16.mxu0 %vm4070_vm1, %v4069_v55  ;;  %v2168_v12 = vld [vmem:[%s5759_s1 + $0xf8] sm:$0xff] }
 0x337   : > { %v2433_v60 = vpack.c.bf16 %v2186_v41, %v2185_v1  ;;  %v2241_v41 = vpop.permute.xlu1 %2240 }
 0x339   : > { %3631 = vmatpush3.bf16.msra.mxu0 %v2433_v60 }
 0x33a   : > { %v1954_v11 = vpop.f32.mrb[36].mxu1  ;;  %3632 = vmatprep.subr.bf16.mxu0 %v4069_v55 }
 0x33b   : > { %v1956_v57 = vpop.f32.mrb[37].mxu1  ;;  %v2187_v44 = vadd.f32 %v2155_v59, %v1954_v11 }
 0x33c   : > { %v1957_v40 = vpop.f32.mrb[38].mxu1  ;;  %v2458_v57 = vld [vmem:[%s5760_s2 + $0x4] sm:$0xf] }
 0x33d   : > { %v2188_v7 = vadd.f32 %v2156_v10, %v1957_v40  ;;  %v1959_v0 = vpop.f32.mrb[39].mxu1  ;;  %v2246_v40 = vpop.permute.xlu1 %2245 }
 0x33f   : > { %v2434_v5 = vpack.c.bf16 %v2188_v7, %v2187_v44 }
 0x341   : > { %3633 = vmatpush3.bf16.msra.mxu0 %v2434_v5 }
 0x342   : > { %v1962_v45 = vpop.f32.mrb[40].mxu1  ;;  %3634 = vmatprep.subr.bf16.mxu0 %v4069_v55 }
 0x343   : > { %v1964_v53 = vpop.f32.mrb[41].mxu1  ;;  %v2189_v54 = vadd.f32 %v2157_v34, %v1962_v45 }
 0x344   : > { %v1965_v19 = vpop.f32.mrb[42].mxu1  ;;  %v2251_v53 = vpop.permute.xlu1 %2250 }
 0x345   : > { %v2190_v13 = vadd.f32 %v2158_v48, %v1965_v19  ;;  %v1967_v29 = vpop.f32.mrb[43].mxu1 }
 0x347   : > { %v2435_v27 = vpack.c.bf16 %v2190_v13, %v2189_v54 }
 0x349   : > { %3635 = vmatpush3.bf16.msra.mxu0 %v2435_v27 }
 0x34a   : > { %v1970_v47 = vpop.f32.mrb[44].mxu1  ;;  %3636 = vmatprep.subr.bf16.mxu0 %v4069_v55 }
 0x34b   : > { %v1972_v17 = vpop.f32.mrb[45].mxu1  ;;  %v2191_v18 = vadd.f32 %v2159_v33, %v1970_v47 }
 0x34c   : > { %v1973_v52 = vpop.f32.mrb[46].mxu1 }
 0x34d   : > { %v2192_v38 = vadd.f32 %v2160_v58, %v1973_v52  ;;  %v1975_v39 = vpop.f32.mrb[47].mxu1  ;;  %v2256_v58 = vpop.permute.xlu1 %2255 }
 0x34f   : > { %v2436_v9 = vpack.c.bf16 %v2192_v38, %v2191_v18 }
 0x351   : > { %3637 = vmatpush3.bf16.msra.mxu0 %v2436_v9  ;;  %v2261_v39 = vpop.permute.xlu1 %2260 }
 0x352   : > { %v1978_v61 = vpop.f32.mrb[48].mxu1  ;;  %3638 = vmatprep.subr.bf16.mxu0 %v4069_v55 }
 0x353   : > { %v1980_v62 = vpop.f32.mrb[49].mxu1  ;;  %v2193_v28 = vadd.f32 %v2161_v20, %v1978_v61 }
 0x354   : > { %v1981_v16 = vpop.f32.mrb[50].mxu1 }
 0x355   : > { %v2194_v15 = vadd.f32 %v2162_v51, %v1981_v16  ;;  %v1983_v42 = vpop.f32.mrb[51].mxu1 }
 0x357   : > { %v2437_v2 = vpack.c.bf16 %v2194_v15, %v2193_v28  ;;  %v3840_v28 = vld [vmem:[%s5764_s6 + $0x194] ss:$8 sps:$4 sm:$0xff]   ;;  %v3842_v15 = vld [vmem:[%s5764_s6 + $0x190] ss:$8 sps:$4 sm:$0xff]  }
 0x358   : > { %2080 = vmatprep.mubr.bf16.mxu1 %v3840_v28 }
 0x359   : > { %3639 = vmatpush3.bf16.msra.mxu0 %v2437_v2  ;;  %v3843_v2 = vld [vmem:[%s5764_s6 + $0x1a4] ss:$8 sps:$4 sm:$0xff]   ;;  %2081 = vmatmul.mubr.bf16.gmra.mrb[100].mxu1 %v3842_v15 }
 0x35a   : > { %v1986_v4 = vpop.f32.mrb[52].mxu1  ;;  %3640 = vmatprep.subr.bf16.mxu0 %v4069_v55  ;;  %2088 = vmatprep.mubr.bf16.mxu1 %v3843_v2 }
 0x35b   : > { %v1988_v43 = vpop.f32.mrb[53].mxu1  ;;  %v2195_v56 = vadd.f32 %v2163_v26, %v1986_v4 }
 0x35c   : > { %v1989_v31 = vpop.f32.mrb[54].mxu1  ;;  %v3845_v43 = vld [vmem:[%s5764_s6 + $0x1a0] ss:$8 sps:$4 sm:$0xff]  }
 0x35d   : > { %v2196_v8 = vadd.f32 %v2164_v36, %v1989_v31  ;;  %v1991_v37 = vpop.f32.mrb[55].mxu1  ;;  %v3846_v31 = vld [vmem:[%s5764_s6 + $0x1b4] ss:$8 sps:$4 sm:$0xff]  }
 0x35f   : > { %v2438_v49 = vpack.c.bf16 %v2196_v8, %v2195_v56 }
 0x361   : > { %3641 = vmatpush3.bf16.msra.mxu0 %v2438_v49  ;;  %2089 = vmatmul.mubr.bf16.gmra.mrb[104].mxu1 %v3845_v43 }
 0x362   : > { %v1994_v22 = vpop.f32.mrb[56].mxu1  ;;  %3642 = vmatprep.subr.bf16.mxu0 %v4069_v55  ;;  %2096 = vmatprep.mubr.bf16.mxu1 %v3846_v31 }
 0x363   : > { %v1996_v30 = vpop.f32.mrb[57].mxu1  ;;  %v2197_v24 = vadd.f32 %v2165_v6, %v1994_v22  ;;  %v5280_v22 = vpop.permute.xlu1 %2280  ;;  %v3848_v6 = vld [vmem:[%s5764_s6 + $0x1b0] ss:$8 sps:$4 sm:$0xff]  }
 0x364   : > { %v1997_v32 = vpop.f32.mrb[58].mxu1 }
 0x365   : > { %v2198_v3 = vadd.f32 %v2166_v23, %v1997_v32  ;;  %v1999_v21 = vpop.f32.mrb[59].mxu1 }
 0x366   : > { %v3849_v21 = vld [vmem:[%s5764_s6 + $0x1c4] ss:$8 sps:$4 sm:$0xff]  }
 0x367   : > { %v2439_v14 = vpack.c.bf16 %v2198_v3, %v2197_v24  ;;  %v2296_v3 = vpop.permute.xlu1 %2295 }
 0x369   : > { %3643 = vmatpush3.bf16.msra.mxu0 %v2439_v14  ;;  %2097 = vmatmul.mubr.bf16.gmra.mrb[108].mxu1 %v3848_v6 }
 0x36a   : > { %v2002_v63 = vpop.f32.mrb[60].mxu1  ;;  %3644 = vmatprep.subr.bf16.mxu0 %v4069_v55  ;;  %2104 = vmatprep.mubr.bf16.mxu1 %v3849_v21  ;;  %v2224_v21 = vld [vmem:[%s5765_s7 + $0xb8] sm:$0xff] }
 0x36b   : > { %v2004_v1 = vpop.f32.mrb[61].mxu1  ;;  %v2199_v60 = vadd.f32 %v2167_v50, %v2002_v63  ;;  %v2301_v50 = vpop.permute.xlu1 %2300 }
 0x36c   : > { %v2005_v46 = vpop.f32.mrb[62].mxu1 }
 0x36d   : > { %v2200_v11 = vadd.f32 %v2168_v12, %v2005_v46  ;;  %v2007_v59 = vpop.f32.mrb[63].mxu1 }
 0x36e   : > { %v3854_v59 = vld [vmem:[%s5764_s6 + $0x1d0] ss:$8 sps:$4 sm:$0xff]  }
 0x36f   : > { %v2440_v10 = vpack.c.bf16 %v2200_v11, %v2199_v60  ;;  %v3852_v11 = vld [vmem:[%s5764_s6 + $0x1d4] ss:$8 sps:$4 sm:$0xff]  }
 0x371   : > { %3645 = vmatpush3.bf16.msra.mxu0 %v2440_v10 }
 0x372   : > { %v2010_v44 = vpop.f32.mrb[64].mxu1  ;;  %3650 = vmatprep.subr.bf16.mxu0 %v4069_v55 }
 0x373   : > { %v2012_v7 = vpop.f32.mrb[65].mxu1  ;;  %v2393_v5 = vadd.f32 %v2236_v35, %v2010_v44  ;;  %v3851_v35 = vld [vmem:[%s5764_s6 + $0x1c0] ss:$8 sps:$4 sm:$0xff]  }
 0x374   : > { %v2013_v0 = vpop.f32.mrb[66].mxu1  ;;  %3647 = vmatmul.mubr.bf16.vlgmr.msra.gmra.mrb[36].mxu0 %v2458_v57  ;;  %2105 = vmatmul.mubr.bf16.gmra.mrb[112].mxu1 %v3851_v35  ;;  %v3857_v44 = vld [vmem:[%s5764_s6 + $0x1e0] ss:$8 sps:$4 sm:$0xff]   ;;  %v3858_v7 = vld [vmem:[%s5764_s6 + $0x1f4] ss:$8 sps:$4 sm:$0xff]  }
 0x375   : > { %v2394_v45 = vadd.f32 %v2241_v41, %v2013_v0  ;;  %v2015_v34 = vpop.f32.mrb[67].mxu1  ;;  %3666 = vmatprep.mubr.msk.bf16.mxu0 %vm4070_vm1, %v4069_v55  ;;  %2112 = vmatprep.mubr.bf16.mxu1 %v3852_v11  ;;  %v3860_v0 = vld [vmem:[%s5764_s6 + $0x1f0] ss:$8 sps:$4 sm:$0xff]  }
 0x377   : > { %v2441_v48 = vpack.c.bf16 %v2394_v45, %v2393_v5 }
 0x379   : > { %v2567_v19 = vsel %vm824_vm0, %v2441_v48, 0 }
 0x37a   : > { %v2018_v54 = vpop.f32.mrb[68].mxu1  ;;  %3651 = vmatpush3.bf16.xpose.msra.mxu0 %v2567_v19  ;;  %v2207_v19 = vld [vmem:[%s5765_s7 + $0x30] sm:$0xff] }
 0x37b   : > { %v2020_v13 = vpop.f32.mrb[69].mxu1  ;;  %3652 = vmatprep.subr.bf16.mxu0 %v4069_v55  ;;  %v2395_v27 = vadd.f32 %v2246_v40, %v2018_v54  ;;  %v3855_v40 = vld [vmem:[%s5764_s6 + $0x1e4] ss:$8 sps:$4 sm:$0xff]   ;;  %v2208_v54 = vld [vmem:[%s5765_s7 + $0x38] sm:$0xff] }
 0x37c   : > { %v2021_v29 = vpop.f32.mrb[70].mxu1  ;;  %2113 = vmatmul.mubr.bf16.gmra.mrb[116].mxu1 %v3854_v59  ;;  %v2209_v13 = vld [vmem:[%s5765_s7 + $0x40] sm:$0xff] }
 0x37d   : > { %v2396_v47 = vadd.f32 %v2251_v53, %v2021_v29  ;;  %v2023_v33 = vpop.f32.mrb[71].mxu1  ;;  %2120 = vmatprep.mubr.bf16.mxu1 %v3855_v40  ;;  %v2211_v29 = vld [vmem:[%s5765_s7 + $0x50] sm:$0xff] }
 0x37f   : > { %v2442_v17 = vpack.c.bf16 %v2396_v47, %v2395_v27  ;;  %v2212_v27 = vld [vmem:[%s5765_s7 + $0x58] sm:$0xff] }
 0x381   : > { %v2570_v52 = vsel %vm824_vm0, %v2442_v17, 0 }
 0x382   : > { %v2026_v18 = vpop.f32.mrb[72].mxu1  ;;  %3653 = vmatpush3.bf16.xpose.msra.mxu0 %v2570_v52 }
 0x383   : > { %v2028_v38 = vpop.f32.mrb[73].mxu1  ;;  %3654 = vmatprep.subr.bf16.mxu0 %v4069_v55  ;;  %v2397_v61 = vadd.f32 %v2256_v58, %v2026_v18  ;;  %v2216_v18 = vld [vmem:[%s5765_s7 + $0x78] sm:$0xff] }
 0x384   : > { %v2029_v9 = vpop.f32.mrb[74].mxu1  ;;  %2121 = vmatmul.mubr.bf16.gmra.mrb[120].mxu1 %v3857_v44  ;;  %v2217_v38 = vld [vmem:[%s5765_s7 + $0x80] sm:$0xff] }
 0x385   : > { %v2398_v20 = vadd.f32 %v2261_v39, %v2029_v9  ;;  %v2031_v51 = vpop.f32.mrb[75].mxu1  ;;  %2128 = vmatprep.mubr.bf16.mxu1 %v3858_v7 }
 0x387   : > { %v2443_v62 = vpack.c.bf16 %v2398_v20, %v2397_v61  ;;  %v2218_v20 = vld [vmem:[%s5765_s7 + $0x88] sm:$0xff] }
 0x389   : > { %v2573_v16 = vsel %vm824_vm0, %v2443_v62, 0 }
 0x38a   : > { %3655 = vmatpush3.bf16.xpose.msra.mxu0 %v2573_v16  ;;  %v5262_v42 = vpop.f32.mrb[76].mxu1  ;;  %v2220_v16 = vld [vmem:[%s5765_s7 + $0x98] sm:$0xff] }
 0x38b   : > { %v2036_v4 = vpop.f32.mrb[77].mxu1  ;;  %3656 = vmatprep.subr.bf16.mxu0 %v4069_v55 }
 0x38c   : > { %v5268_v26 = vpop.f32.mrb[78].mxu1  ;;  %2129 = vmatmul.mubr.bf16.gmra.mrb[124].mxu1 %v3860_v0  ;;  %v2221_v4 = vld [vmem:[%s5765_s7 + $0xa0] sm:$0xff] }
 0x38d   : > { %v2039_v36 = vpop.f32.mrb[79].mxu1 }
 0x392   : > { %v5276_v56 = vpop.f32.mrb[80].mxu1 }
 0x393   : > { %v2044_v8 = vpop.f32.mrb[81].mxu1 }
 0x394   : > { %v5278_v37 = vpop.f32.mrb[82].mxu1  ;;  %v2222_v8 = vld [vmem:[%s5765_s7 + $0xa8] sm:$0xff] }
 0x395   : > { %v2047_v49 = vpop.f32.mrb[83].mxu1 }
 0x39a   : > { %v5285_v23 = vpop.f32.mrb[84].mxu1 }
 0x39b   : > { %v2052_v30 = vpop.f32.mrb[85].mxu1 }
 0x39c   : > { %v5287_v32 = vpop.f32.mrb[86].mxu1  ;;  %v2223_v30 = vld [vmem:[%s5765_s7 + $0xb0] sm:$0xff] }
 0x39d   : > { %v2055_v24 = vpop.f32.mrb[87].mxu1 }
 0x3a2   : > { %v2058_v14 = vpop.f32.mrb[88].mxu1 }
 0x3a3   : > { %v2060_v63 = vpop.f32.mrb[89].mxu1  ;;  %v5295_v1 = vadd.f32 %v2296_v3, %v2058_v14 }
 0x3a4   : > { %v2061_v12 = vpop.f32.mrb[90].mxu1  ;;  %v2225_v63 = vld [vmem:[%s5765_s7 + $0xc0] sm:$0xff] }
 0x3a5   : > { %v5297_v41 = vadd.f32 %v2301_v50, %v2061_v12  ;;  %v2063_v46 = vpop.f32.mrb[91].mxu1 }
 0x3a6   : > { %v2227_v46 = vld [vmem:[%s5765_s7 + $0xd0] sm:$0xff] }
 0x3a7   : > { %v2447_v60 = vpack.c.bf16 %v5297_v41, %v5295_v1  ;;  %v2230_v41 = vld [vmem:[%s5765_s7 + $0xe8] sm:$0xff] }
 0x3aa   : > { %v5307_v10 = vpop.f32.mrb[92].mxu1 }
 0x3ab   : > { %v2068_v57 = vpop.f32.mrb[93].mxu1 }
 0x3ac   : > { %v5350_v39 = vpop.f32.mrb[94].mxu1 }
 0x3ad   : > { %v2071_v9 = vpop.f32.mrb[95].mxu1 }
 0x3cc   : > { %v5352_v61 = vpop.f32.mrb[96].mxu1 }
 0x3cd   : > { %v2076_v51 = vpop.f32.mrb[97].mxu1 }
 0x3ce   : > { %v5357_v62 = vpop.f32.mrb[98].mxu1 }
 0x3cf   : > { %v2079_v28 = vpop.f32.mrb[99].mxu1 }
 0x407   : > { %v5321_v5 = vpop.f32.mrb[32].mxu0 }
 0x408   : > { %v2539_v45 = vsel %vm824_vm0, %v5321_v5, -inf  ;;  %v3628_v34 = vpop.f32.mrb[33].mxu0 }
 0x409   : > { %2540 = vmax.xlane.f32.xlu0 %v2539_v45  ;;  %v2496_v48 = vpop.f32.mrb[34].mxu0 }
 0x40a   : > { %v3629_v53 = vpop.f32.mrb[35].mxu0 }
 0x41f   : > { %2265 = vperm.xlu0 %3745, %v2207_v19  }
 0x423   : > { %2270 = vperm.xlu0 %3745, %v2208_v54  }
 0x427   : > { %2275 = vperm.xlu0 %3745, %v2209_v13  }
 0x42b   : > { %2285 = vperm.xlu0 %3745, %v2211_v29  }
 0x42c   : > { %v5362_v15 = vpop.f32.mrb[100].mxu1 }
 0x42d   : > { %v2084_v2 = vpop.f32.mrb[101].mxu1 }
 0x42e   : > { %v5367_v36 = vpop.f32.mrb[102].mxu1 }
 0x42f   : > { %2290 = vperm.xlu0 %3745, %v2212_v27   ;;  %v2087_v43 = vpop.f32.mrb[103].mxu1 }
 0x434   : > { %v5369_v31 = vpop.f32.mrb[104].mxu1 }
 0x435   : > { %v2092_v49 = vpop.f32.mrb[105].mxu1 }
 0x436   : > { %v5374_v6 = vpop.f32.mrb[106].mxu1  ;;  %v2306_v49 = vpop.permute.xlu1 %2305 }
 0x437   : > { %v2095_v24 = vpop.f32.mrb[107].mxu1 }
 0x43c   : > { %v5379_v3 = vpop.f32.mrb[108].mxu1 }
 0x43d   : > { %v2100_v35 = vpop.f32.mrb[109].mxu1 }
 0x43e   : > { %v5384_v14 = vpop.f32.mrb[110].mxu1 }
 0x43f   : > { %v2103_v50 = vpop.f32.mrb[111].mxu1 }
 0x447   : > { %v5340_v47 = vpop.f32.mrb[36].mxu0  ;;  %v5389_v12 = vpop.f32.mrb[112].mxu1 }
 0x448   : > { %v2542_v33 = vsel %vm824_vm0, %v5340_v47, -inf  ;;  %v3648_v58 = vpop.f32.mrb[37].mxu0  ;;  %v2108_v11 = vpop.f32.mrb[113].mxu1 }
 0x449   : > { %2543 = vmax.xlane.f32.xlu1 %v2542_v33  ;;  %v2536_v17 = vpop.f32.mrb[38].mxu0  ;;  %v5394_v59 = vpop.f32.mrb[114].mxu1  ;;  %v2402_v33 = vadd.f32 %v5280_v22, %v5278_v37  ;;  %v2219_v37 = vld [vmem:[%s5765_s7 + $0x90] sm:$0xff]  ;;  %v2226_v22 = vld [vmem:[%s5765_s7 + $0xc8] sm:$0xff]  ;;  %v2407_v11 = vadd.f32 %v2306_v49, %v5307_v10 }
 0x44a   : > { %v3649_v52 = vpop.f32.mrb[39].mxu0  ;;  %v2111_v57 = vpop.f32.mrb[115].mxu1 }
 0x44f   : > { %v5396_v40 = vpop.f32.mrb[116].mxu1 }
 0x450   : > { %v2116_v44 = vpop.f32.mrb[117].mxu1 }
 0x45a   : > { %2310 = vperm.xlu1 %3746, %v2216_v18  }
 0x45e   : > { %2315 = vperm.xlu1 %3746, %v2217_v38  }
 0x462   : > { %2320 = vperm.xlu1 %3746, %v2218_v20   ;;  %v5430_v20 = vpop.f32.mrb[118].mxu1 }
 0x463   : > { %v2119_v51 = vpop.f32.mrb[119].mxu1 }
 0x464   : > { %v5435_v28 = vpop.f32.mrb[120].mxu1 }
 0x465   : > { %v2124_v1 = vpop.f32.mrb[121].mxu1 }
 0x466   : > { %2330 = vperm.xlu1 %3746, %v2220_v16   ;;  %v2229_v16 = vld [vmem:[%s5765_s7 + $0xe0] sm:$0xff] }
 0x46a   : > { %2335 = vperm.xlu1 %3746, %v2221_v4   ;;  %v2231_v4 = vld [vmem:[%s5765_s7 + $0xf0] sm:$0xff] }
 0x46e   : > { %2340 = vperm.xlu1 %3746, %v2222_v8  }
 0x472   : > { %2345 = vperm.xlu1 %3746, %v2223_v30   ;;  %v2232_v30 = vld [vmem:[%s5765_s7 + $0xf8] sm:$0xff] }
 0x476   : > { %2350 = vperm.xlu1 %3746, %v2224_v21  }
 0x47a   : > { %2355 = vperm.xlu1 %3746, %v2225_v63  }
 0x47e   : > { %2365 = vperm.xlu1 %3746, %v2227_v46  }
 0x496   : > { %v2541_v7 = vpop.xlane.xlu0 %2540 }
 0x497   : > { %v2545_v0 = vsub.f32 %v5321_v5, %v2541_v7 }
 0x499   : > { %v2547_v45 = vmul.f32 1.442695, %v2545_v0 }
 0x49b   : > { %3959 = vpow2.f32 %v2547_v45 }
 0x49e   : > { %v2266_v34 = vpop.permute.xlu0 %2265 }
 0x49f   : > { %v2399_v53 = vadd.f32 %v2266_v34, %v5262_v42 }
 0x4a2   : > { %v2271_v48 = vpop.permute.xlu0 %2270 }
 0x4a3   : > { %v2400_v19 = vadd.f32 %v2271_v48, %v5268_v26 }
 0x4a5   : > { %v5401_v54 = vpop.eup %3959  ;;  %v2444_v13 = vpack.c.bf16 %v2400_v19, %v2399_v53 }
 0x4a6   : > { %v2276_v29 = vpop.permute.xlu0 %2275  ;;  %v2551_v27 = vsel %vm824_vm0, %v5401_v54, 0.0 }
 0x4a7   : > { %v2401_v5 = vadd.f32 %v2276_v29, %v5276_v56  ;;  %2552 = vadd.xlane.f32.xlu0 %v2551_v27  ;;  %v2576_v58 = vsel %vm824_vm0, %v2444_v13, 0 }
 0x4a8   : > { %3657 = vmatpush3.bf16.xpose.msra.mxu0 %v2576_v58 }
 0x4a9   : > { %v2445_v17 = vpack.c.bf16 %v2402_v33, %v2401_v5  ;;  %3658 = vmatprep.subr.bf16.mxu0 %v4069_v55 }
 0x4aa   : > { %v2286_v42 = vpop.permute.xlu0 %2285 }
 0x4ab   : > { %v2403_v52 = vadd.f32 %v2286_v42, %v5285_v23  ;;  %v2579_v38 = vsel %vm824_vm0, %v2445_v17, 0  ;;  %v2585_v23 = vsel %vm824_vm0, %v2447_v60, 0  ;;  %v5440_v60 = vpop.f32.mrb[122].mxu1 }
 0x4ac   : > { %v2127_v2 = vpop.f32.mrb[123].mxu1 }
 0x4ad   : > { %v5445_v43 = vpop.f32.mrb[124].mxu1 }
 0x4ae   : > { %v2291_v26 = vpop.permute.xlu0 %2290  ;;  %v2132_v8 = vpop.f32.mrb[125].mxu1 }
 0x4af   : > { %v2404_v18 = vadd.f32 %v2291_v26, %v5287_v32  ;;  %v2228_v32 = vld [vmem:[%s5765_s7 + $0xd8] sm:$0xff]  ;;  %v5450_v24 = vpop.f32.mrb[126].mxu1 }
 0x4b0   : > { %3659 = vmatpush3.bf16.xpose.msra.mxu0 %v2579_v38  ;;  %v2135_v21 = vpop.f32.mrb[127].mxu1 }
 0x4b1   : > { %v2446_v9 = vpack.c.bf16 %v2404_v18, %v2403_v52  ;;  %3660 = vmatprep.subr.bf16.mxu0 %v4069_v55 }
 0x4b3   : > { %v2582_v56 = vsel %vm824_vm0, %v2446_v9, 0 }
 0x4b8   : > { %3661 = vmatpush3.bf16.xpose.msra.mxu0 %v2582_v56 }
 0x4b9   : > { %3662 = vmatprep.subr.bf16.mxu0 %v4069_v55 }
 0x4bd   : > { %2325 = vperm.xlu0 %3745, %v2219_v37  }
 0x4c0   : > { %3663 = vmatpush3.bf16.xpose.msra.mxu0 %v2585_v23 }
 0x4c1   : > { %2360 = vperm.xlu0 %3745, %v2226_v22   ;;  %3664 = vmatprep.subr.bf16.mxu0 %v4069_v55 }
 0x4c5   : > { %2370 = vperm.xlu0 %3745, %v2228_v32  }
 0x4c9   : > { %2375 = vperm.xlu0 %3745, %v2229_v16  }
 0x4cd   : > { %2380 = vperm.xlu0 %3745, %v2230_v41  }
 0x4d1   : > { %2385 = vperm.xlu0 %3745, %v2231_v4  }
 0x4d5   : > { %2390 = vperm.xlu0 %3745, %v2232_v30  }
 0x4d6   : > { %v2544_v35 = vpop.xlane.xlu1 %2543 }
 0x4d7   : > { %v2546_v63 = vsub.f32 %v5340_v47, %v2544_v35  ;;  %v3863_v35 = vld [vmem:[%s5766_s8 + $0x4] ss:$8 sps:$4 sm:$0xff]  }
 0x4d9   : > { %v2549_v50 = vmul.f32 1.442695, %v2546_v63 }
 0x4da   : > { %v2311_v46 = vpop.permute.xlu1 %2310 }
 0x4db   : > { %3961 = vpow2.f32 %v2549_v50  ;;  %v2408_v57 = vadd.f32 %v2311_v46, %v5350_v39 }
 0x4dd   : > { %v2448_v44 = vpack.c.bf16 %v2408_v57, %v2407_v11  ;;  %v3861_v11 = vld [vmem:[%s5766_s8] ss:$8 sps:$4 sm:$0xff]  }
 0x4de   : > { %v2316_v7 = vpop.permute.xlu1 %2315 }
 0x4df   : > { %v2588_v0 = vsel %vm824_vm0, %v2448_v44, 0  ;;  %v2409_v34 = vadd.f32 %v2316_v7, %v5352_v61  ;;  %v3864_v44 = vld [vmem:[%s5766_s8 + $0x10] ss:$8 sps:$4 sm:$0xff]   ;;  %v3869_v7 = vld [vmem:[%s5766_s8 + $0x24] ss:$8 sps:$4 sm:$0xff]  }
 0x4e0   : > { %3665 = vmatpush3.bf16.xpose.msra.mxu0 %v2588_v0  ;;  %v3867_v0 = vld [vmem:[%s5766_s8 + $0x20] ss:$8 sps:$4 sm:$0xff]  }
 0x4e1   : > { %3670 = vmatprep.subr.bf16.mxu0 %v4069_v55 }
 0x4e2   : > { %v2321_v45 = vpop.permute.xlu1 %2320 }
 0x4e3   : > { %v2410_v48 = vadd.f32 %v2321_v45, %v5357_v62  ;;  %v3872_v45 = vld [vmem:[%s5766_s8 + $0x34] ss:$8 sps:$4 sm:$0xff]  }
 0x4e5   : > { %v5459_v47 = vpop.eup %3961  ;;  %v2449_v53 = vpack.c.bf16 %v2410_v48, %v2409_v34  ;;  %v3870_v34 = vld [vmem:[%s5766_s8 + $0x30] ss:$8 sps:$4 sm:$0xff]   ;;  %v3875_v48 = vld [vmem:[%s5766_s8 + $0x44] ss:$8 sps:$4 sm:$0xff]  }
 0x4e6   : > { %v2331_v19 = vpop.permute.xlu1 %2330  ;;  %v2554_v10 = vsel %vm824_vm0, %v5459_v47, 0.0 }
 0x4e7   : > { %2555 = vadd.xlane.f32.xlu1 %v2554_v10  ;;  %v2412_v18 = vadd.f32 %v2331_v19, %v5367_v36  ;;  %v2634_v51 = vsel %vm824_vm0, %v2449_v53, 0  ;;  %v3878_v53 = vld [vmem:[%s5766_s8 + $0x54] ss:$8 sps:$4 sm:$0xff]   ;;  %v3876_v19 = vld [vmem:[%s5766_s8 + $0x50] ss:$8 sps:$4 sm:$0xff]  }
 0x4e8   : > { %v3881_v10 = vld [vmem:[%s5766_s8 + $0x64] ss:$8 sps:$4 sm:$0xff]  }
 0x4ea   : > { %v2336_v39 = vpop.permute.xlu1 %2335 }
 0x4eb   : > { %v2413_v29 = vadd.f32 %v2336_v39, %v5369_v31  ;;  %v3879_v39 = vld [vmem:[%s5766_s8 + $0x60] ss:$8 sps:$4 sm:$0xff]  }
 0x4ee   : > { %v2341_v13 = vpop.permute.xlu1 %2340 }
 0x4ef   : > { %v2414_v27 = vadd.f32 %v2341_v13, %v5374_v6  ;;  %v3884_v13 = vld [vmem:[%s5766_s8 + $0x74] ss:$8 sps:$4 sm:$0xff]  }
 0x4f1   : > { %v2451_v33 = vpack.c.bf16 %v2414_v27, %v2413_v29  ;;  %v3882_v29 = vld [vmem:[%s5766_s8 + $0x70] ss:$8 sps:$4 sm:$0xff]   ;;  %v3887_v27 = vld [vmem:[%s5766_s8 + $0x84] ss:$8 sps:$4 sm:$0xff]  }
 0x4f2   : > { %v2346_v5 = vpop.permute.xlu1 %2345 }
 0x4f3   : > { %v2415_v61 = vadd.f32 %v2346_v5, %v5379_v3  ;;  %v2640_v4 = vsel %vm824_vm0, %v2451_v33, 0  ;;  %v3885_v5 = vld [vmem:[%s5766_s8 + $0x80] ss:$8 sps:$4 sm:$0xff]  }
 0x4f6   : > { %v2351_v58 = vpop.permute.xlu1 %2350 }
 0x4f7   : > { %v2416_v62 = vadd.f32 %v2351_v58, %v5384_v14 }
 0x4f9   : > { %v2452_v17 = vpack.c.bf16 %v2416_v62, %v2415_v61  ;;  %v3890_v62 = vld [vmem:[%s5766_s8 + $0x94] ss:$8 sps:$4 sm:$0xff]  }
 0x4fa   : > { %v2356_v26 = vpop.permute.xlu1 %2355 }
 0x4fb   : > { %v2417_v37 = vadd.f32 %v2356_v26, %v5389_v12  ;;  %v3888_v26 = vld [vmem:[%s5766_s8 + $0x90] ss:$8 sps:$4 sm:$0xff]  }
 0x4fe   : > { %v2366_v22 = vpop.permute.xlu1 %2365 }
 0x4ff   : > { %v2419_v36 = vadd.f32 %v2366_v22, %v5396_v40  ;;  %v3908_v22 = vld [vmem:[%s5766_s8 + $0xf4] ss:$8 sps:$4 sm:$0xff]  }
 0x534   : > { %v2553_v42 = vpop.xlane.xlu0 %2552 }
 0x535   : > { %3963 = vrcp.f32 %v2553_v42 }
 0x53c   : > { %v2326_v52 = vpop.permute.xlu0 %2325 }
 0x53d   : > { %v2411_v38 = vadd.f32 %v2326_v52, %v5362_v15  ;;  %v3893_v52 = vld [vmem:[%s5766_s8 + $0xa4] ss:$8 sps:$4 sm:$0xff]  }
 0x53f   : > { %v3964_v9 = vpop.eup %3963  ;;  %v2450_v31 = vpack.c.bf16 %v2412_v18, %v2411_v38  ;;  %v3891_v18 = vld [vmem:[%s5766_s8 + $0xa0] ss:$8 sps:$4 sm:$0xff]   ;;  %v3896_v38 = vld [vmem:[%s5766_s8 + $0xb4] ss:$8 sps:$4 sm:$0xff]  }
 0x540   : > { %v2559_v6 = vmul.f32 %v3964_v9, %v5401_v54  ;;  %v2361_v56 = vpop.permute.xlu0 %2360  ;;  %v3899_v9 = vld [vmem:[%s5766_s8 + $0xc4] ss:$8 sps:$4 sm:$0xff]  }
 0x541   : > { %v2418_v3 = vadd.f32 %v2361_v56, %v5394_v59  ;;  %v2637_v16 = vsel %vm824_vm0, %v2450_v31, 0  ;;  %v3897_v31 = vld [vmem:[%s5766_s8 + $0xc0] ss:$8 sps:$4 sm:$0xff]   ;;  %v3900_v56 = vld [vmem:[%s5766_s8 + $0xd0] ss:$8 sps:$4 sm:$0xff]  }
 0x542   : > { %v2561_v14 = vpack.c.bf16 %v2559_v6, %v2559_v6  ;;  %v3902_v6 = vld [vmem:[%s5766_s8 + $0xd4] ss:$8 sps:$4 sm:$0xff]  }
 0x543   : > { %v2453_v23 = vpack.c.bf16 %v2418_v3, %v2417_v37  ;;  %v3905_v37 = vld [vmem:[%s5766_s8 + $0xe4] ss:$8 sps:$4 sm:$0xff]   ;;  %v3903_v3 = vld [vmem:[%s5766_s8 + $0xe0] ss:$8 sps:$4 sm:$0xff]  }
 0x544   : > { %v2371_v32 = vpop.permute.xlu0 %2370  ;;  %3667 = vmatmul.mubr.msk.bf16.vlgmr.msra.gmra.mrb[40].mxu0 %vm824_vm0, %v2561_v14  ;;  %v3906_v14 = vld [vmem:[%s5766_s8 + $0xf0] ss:$8 sps:$4 sm:$0xff]  }
 0x545   : > { %v2420_v15 = vadd.f32 %v2371_v32, %v5430_v20  ;;  %3671 = vmatpush3.bf16.xpose.msra.mxu0 %v2634_v51  ;;  %3686 = vmatprep.mubr.msk.bf16.mxu0 %vm4070_vm1, %v4069_v55 }
 0x546   : > { %3672 = vmatprep.subr.bf16.mxu0 %v4069_v55 }
 0x547   : > { %v2454_v12 = vpack.c.bf16 %v2420_v15, %v2419_v36 }
 0x548   : > { %v2376_v59 = vpop.permute.xlu0 %2375 }
 0x549   : > { %v2421_v1 = vadd.f32 %v2376_v59, %v5435_v28  ;;  %v2643_v28 = vsel %vm824_vm0, %v2452_v17, 0  ;;  %v2649_v21 = vsel %vm824_vm0, %v2454_v12, 0  ;;  %v3909_v12 = vld [vmem:[%s5770_s12] ss:$8 sps:$4 sm:$0xff]   ;;  %v3911_v59 = vld [vmem:[%s5770_s12 + $0x4] ss:$8 sps:$4 sm:$0xff]  }
 0x54a   : > { %3227 = vmatprep.subr.bf16.mxu1 %v3911_v59 }
 0x54b   : > { %3228 = vmatpush1.bf16.msra.mxu1 %v3909_v12 }
 0x54c   : > { %v2381_v54 = vpop.permute.xlu0 %2380 }
 0x54d   : > { %v2422_v41 = vadd.f32 %v2381_v54, %v5440_v60  ;;  %3673 = vmatpush3.bf16.xpose.msra.mxu0 %v2637_v16  ;;  %v2646_v60 = vsel %vm824_vm0, %v2453_v23, 0  ;;  %v3914_v54 = vld [vmem:[%s5770_s12 + $0x14] ss:$8 sps:$4 sm:$0xff]   ;;  %v3912_v16 = vld [vmem:[%s5770_s12 + $0x10] ss:$8 sps:$4 sm:$0xff]  }
 0x54e   : > { %3674 = vmatprep.subr.bf16.mxu0 %v4069_v55  ;;  %3229 = vmatprep.subr.bf16.mxu1 %v3914_v54 }
 0x54f   : > { %v2455_v40 = vpack.c.bf16 %v2422_v41, %v2421_v1  ;;  %v3917_v1 = vld [vmem:[%s5770_s12 + $0x24] ss:$8 sps:$4 sm:$0xff]   ;;  %3230 = vmatpush1.bf16.msra.mxu1 %v3912_v16  ;;  %v3915_v41 = vld [vmem:[%s5770_s12 + $0x20] ss:$8 sps:$4 sm:$0xff]  }
 0x550   : > { %v2386_v20 = vpop.permute.xlu0 %2385  ;;  %3231 = vmatprep.subr.bf16.mxu1 %v3917_v1 }
 0x551   : > { %v2423_v8 = vadd.f32 %v2386_v20, %v5445_v43  ;;  %v3918_v20 = vld [vmem:[%s5770_s12 + $0x30] ss:$8 sps:$4 sm:$0xff]  }
 0x553   : > { %3232 = vmatpush1.bf16.msra.mxu1 %v3915_v41 }
 0x554   : > { %v2391_v2 = vpop.permute.xlu0 %2390 }
 0x555   : > { %v2424_v49 = vadd.f32 %v2391_v2, %v5450_v24  ;;  %3675 = vmatpush3.bf16.xpose.msra.mxu0 %v2640_v4  ;;  %v2652_v24 = vsel %vm824_vm0, %v2455_v40, 0  ;;  %v3920_v40 = vld [vmem:[%s5770_s12 + $0x34] ss:$8 sps:$4 sm:$0xff]   ;;  %v3923_v2 = vld [vmem:[%s5770_s12 + $0x44] ss:$8 sps:$4 sm:$0xff]  }
 0x556   : > { %3676 = vmatprep.subr.bf16.mxu0 %v4069_v55  ;;  %3233 = vmatprep.subr.bf16.mxu1 %v3920_v40  ;;  %v3921_v4 = vld [vmem:[%s5770_s12 + $0x40] ss:$8 sps:$4 sm:$0xff]  }
 0x557   : > { %v2456_v30 = vpack.c.bf16 %v2424_v49, %v2423_v8  ;;  %3234 = vmatpush1.bf16.msra.mxu1 %v3918_v20 }
 0x558   : > { %3235 = vmatprep.subr.bf16.mxu1 %v3923_v2 }
 0x559   : > { %v2655_v63 = vsel %vm824_vm0, %v2456_v30, 0 }
 0x55b   : > { %3236 = vmatpush1.bf16.msra.mxu1 %v3921_v4 }
 0x55d   : > { %3677 = vmatpush3.bf16.xpose.msra.mxu0 %v2643_v28 }
 0x55e   : > { %3678 = vmatprep.subr.bf16.mxu0 %v4069_v55 }
 0x565   : > { %3679 = vmatpush3.bf16.xpose.msra.mxu0 %v2646_v60  ;;  %v2977_v60 = vlaneseq }
 0x566   : > { %3680 = vmatprep.subr.bf16.mxu0 %v4069_v55 }
 0x56d   : > { %3681 = vmatpush3.bf16.xpose.msra.mxu0 %v2649_v21  ;;  %v2978_v21 = vshrl.u32 %v2977_v60, 7 }
 0x56e   : > { %3682 = vmatprep.subr.bf16.mxu0 %v4069_v55 }
 0x574   : > { %v2556_v43 = vpop.xlane.xlu1 %2555 }
 0x575   : > { %3965 = vrcp.f32 %v2556_v43  ;;  %3683 = vmatpush3.bf16.xpose.msra.mxu0 %v2652_v24  ;;  %v5626_v43 = vsub.s32 0, %v2978_v21  ;;  %v2975_v24 = vld [vmem:[%s5767_s9] sm:$0x3] }
 0x576   : > { %3684 = vmatprep.subr.bf16.mxu0 %v4069_v55  ;;  %v3866_v55 = vld [vmem:[%s5766_s8 + $0x14] ss:$8 sps:$4 sm:$0xff]  }
 0x57d   : > { %3685 = vmatpush3.bf16.xpose.msra.mxu0 %v2655_v63  ;;  %v2980_v63 = vrot.slane %v2975_v24, %v5626_v43 }
 0x57e   : > { %2811 = vmatprep.subr.bf16.mxu0 %v3863_v35  ;;  %v5631_v35 = vsub.s32 1, %v2978_v21 }
 0x57f   : > { %v3966_v50 = vpop.eup %3965 }
 0x580   : > { %v2560_v46 = vmul.f32 %v3966_v50, %v5459_v47  ;;  %v3873_v47 = vld [vmem:[%s5766_s8 + $0x40] ss:$8 sps:$4 sm:$0xff]  }
 0x582   : > { %v2562_v57 = vpack.c.bf16 %v2560_v46, %v2560_v46  ;;  %v2984_v46 = vrot.slane %v2975_v24, %v5631_v35 }
 0x584   : > { %3687 = vmatmul.mubr.msk.bf16.vlgmr.msra.gmra.mrb[44].mxu0 %vm824_vm0, %v2562_v57 }
 0x585   : > { %2812 = vmatpush1.bf16.msra.mxu0 %v3861_v11  ;;  %2843 = vmatprep.mubr.bf16.mxu0 %v5824_v25 }
 0x586   : > { %2813 = vmatprep.subr.bf16.mxu0 %v3866_v55 }
 0x589   : > { %2814 = vmatpush1.bf16.msra.mxu0 %v3864_v44 }
 0x58a   : > { %2815 = vmatprep.subr.bf16.mxu0 %v3869_v7 }
 0x58d   : > { %2816 = vmatpush1.bf16.msra.mxu0 %v3867_v0 }
 0x58e   : > { %2817 = vmatprep.subr.bf16.mxu0 %v3872_v45 }
 0x591   : > { %2818 = vmatpush1.bf16.msra.mxu0 %v3870_v34 }
 0x592   : > { %2819 = vmatprep.subr.bf16.mxu0 %v3875_v48  ;;  %v3924_v48 = vld [vmem:[%s5770_s12 + $0x50] ss:$8 sps:$4 sm:$0xff]  }
 0x595   : > { %2820 = vmatpush1.bf16.msra.mxu0 %v3873_v47  ;;  %v3926_v47 = vld [vmem:[%s5770_s12 + $0x54] ss:$8 sps:$4 sm:$0xff]  }
 0x596   : > { %2821 = vmatprep.subr.bf16.mxu0 %v3878_v53  ;;  %3237 = vmatprep.subr.bf16.mxu1 %v3926_v47  ;;  %v3927_v53 = vld [vmem:[%s5770_s12 + $0x60] ss:$8 sps:$4 sm:$0xff]  }
 0x597   : > { %3238 = vmatpush1.bf16.msra.mxu1 %v3924_v48 }
 0x599   : > { %2822 = vmatpush1.bf16.msra.mxu0 %v3876_v19  ;;  %v3929_v19 = vld [vmem:[%s5770_s12 + $0x64] ss:$8 sps:$4 sm:$0xff]  }
 0x59a   : > { %2823 = vmatprep.subr.bf16.mxu0 %v3881_v10  ;;  %v3932_v10 = vld [vmem:[%s5770_s12 + $0x74] ss:$8 sps:$4 sm:$0xff]   ;;  %3239 = vmatprep.subr.bf16.mxu1 %v3929_v19 }
 0x59b   : > { %3240 = vmatpush1.bf16.msra.mxu1 %v3927_v53 }
 0x59c   : > { %3241 = vmatprep.subr.bf16.mxu1 %v3932_v10 }
 0x59d   : > { %2824 = vmatpush1.bf16.msra.mxu0 %v3879_v39  ;;  %v3930_v39 = vld [vmem:[%s5770_s12 + $0x70] ss:$8 sps:$4 sm:$0xff]  }
 0x59e   : > { %2825 = vmatprep.subr.bf16.mxu0 %v3884_v13  ;;  %v3935_v13 = vld [vmem:[%s5770_s12 + $0x84] ss:$8 sps:$4 sm:$0xff]  }
 0x59f   : > { %3242 = vmatpush1.bf16.msra.mxu1 %v3930_v39 }
 0x5a0   : > { %3243 = vmatprep.subr.bf16.mxu1 %v3935_v13 }
 0x5a1   : > { %2826 = vmatpush1.bf16.msra.mxu0 %v3882_v29  ;;  %v3933_v29 = vld [vmem:[%s5770_s12 + $0x80] ss:$8 sps:$4 sm:$0xff]  }
 0x5a2   : > { %2932 = vmatprep.subr.bf16.mxu0 %v3887_v27  ;;  %v3938_v27 = vld [vmem:[%s5770_s12 + $0x94] ss:$8 sps:$4 sm:$0xff]  }
 0x5a3   : > { %3244 = vmatpush1.bf16.msra.mxu1 %v3933_v29 }
 0x5a4   : > { %3245 = vmatprep.subr.bf16.mxu1 %v3938_v27 }
 0x617   : > { %v2624_v33 = vpop.f32.mrb[40].mxu0 }
 0x618   : > { %v2697_v58 = vpack.c.bf16 %v2624_v33, %v2624_v33  ;;  %v3668_v61 = vpop.f32.mrb[41].mxu0  ;;  %v3936_v33 = vld [vmem:[%s5770_s12 + $0x90] ss:$8 sps:$4 sm:$0xff]  }
 0x619   : > { %v2627_v17 = vpop.f32.mrb[42].mxu0  ;;  %3246 = vmatpush1.bf16.msra.mxu1 %v3936_v33  ;;  %v3944_v61 = vld [vmem:[%s5770_s12 + $0xb4] ss:$8 sps:$4 sm:$0xff]  }
 0x61a   : > { %v3669_v42 = vpop.f32.mrb[43].mxu0  ;;  %2844 = vmatmul.mubr.bf16.vlgmr.msra.gmra.mrb[48].mxu0 %v2697_v58  ;;  %v3939_v58 = vld [vmem:[%s5770_s12 + $0xa0] ss:$8 sps:$4 sm:$0xff]   ;;  %v3947_v17 = vld [vmem:[%s5770_s12 + $0xc4] ss:$8 sps:$4 sm:$0xff]  }
 0x61b   : > { %2933 = vmatpush1.bf16.msra.mxu0 %v3885_v5  ;;  %2964 = vmatprep.mubr.bf16.mxu0 %v5824_v25  ;;  %v3894_v25 = vld [vmem:[%s5766_s8 + $0xb0] ss:$8 sps:$4 sm:$0xff]   ;;  %v3941_v5 = vld [vmem:[%s5770_s12 + $0xa4] ss:$8 sps:$4 sm:$0xff]   ;;  %v3945_v42 = vld [vmem:[%s5770_s12 + $0xc0] ss:$8 sps:$4 sm:$0xff]  }
 0x61c   : > { %2934 = vmatprep.subr.bf16.mxu0 %v3890_v62  ;;  %3247 = vmatprep.subr.bf16.mxu1 %v3941_v5  ;;  %v3942_v62 = vld [vmem:[%s5770_s12 + $0xb0] ss:$8 sps:$4 sm:$0xff]  }
 0x61d   : > { %3248 = vmatpush1.bf16.msra.mxu1 %v3939_v58 }
 0x61e   : > { %3249 = vmatprep.subr.bf16.mxu1 %v3944_v61 }
 0x61f   : > { %2935 = vmatpush1.bf16.msra.mxu0 %v3888_v26  ;;  %v3950_v26 = vld [vmem:[%s5770_s12 + $0xd4] ss:$8 sps:$4 sm:$0xff]  }
 0x620   : > { %2936 = vmatprep.subr.bf16.mxu0 %v3893_v52  ;;  %v3948_v52 = vld [vmem:[%s5770_s12 + $0xd0] ss:$8 sps:$4 sm:$0xff]  }
 0x621   : > { %3250 = vmatpush1.bf16.msra.mxu1 %v3942_v62 }
 0x622   : > { %3251 = vmatprep.subr.bf16.mxu1 %v3947_v17 }
 0x623   : > { %2937 = vmatpush1.bf16.msra.mxu0 %v3891_v18  ;;  %v3953_v18 = vld [vmem:[%s5770_s12 + $0xe4] ss:$8 sps:$4 sm:$0xff]  }
 0x624   : > { %2938 = vmatprep.subr.bf16.mxu0 %v3896_v38  ;;  %v3951_v38 = vld [vmem:[%s5770_s12 + $0xe0] ss:$8 sps:$4 sm:$0xff]  }
 0x625   : > { %3252 = vmatpush1.bf16.msra.mxu1 %v3945_v42 }
 0x626   : > { %3253 = vmatprep.subr.bf16.mxu1 %v3950_v26 }
 0x627   : > { %2939 = vmatpush1.bf16.msra.mxu0 %v3894_v25 }
 0x628   : > { %2940 = vmatprep.subr.bf16.mxu0 %v3899_v9 }
 0x629   : > { %3254 = vmatpush1.bf16.msra.mxu1 %v3948_v52 }
 0x62a   : > { %3255 = vmatprep.subr.bf16.mxu1 %v3953_v18 }
 0x62b   : > { %2941 = vmatpush1.bf16.msra.mxu0 %v3897_v31 }
 0x62c   : > { %2942 = vmatprep.subr.bf16.mxu0 %v3902_v6 }
 0x62d   : > { %3256 = vmatpush1.bf16.msra.mxu1 %v3951_v38 }
 0x62f   : > { %2943 = vmatpush1.bf16.msra.mxu0 %v3900_v56 }
 0x630   : > { %2944 = vmatprep.subr.bf16.mxu0 %v3905_v37 }
 0x633   : > { %2945 = vmatpush1.bf16.msra.mxu0 %v3903_v3 }
 0x634   : > { %2946 = vmatprep.subr.bf16.mxu0 %v3908_v22  ;;  %v3954_v22 = vld [vmem:[%s5770_s12 + $0xf0] ss:$8 sps:$4 sm:$0xff]  }
 0x637   : > { %2947 = vmatpush1.bf16.msra.mxu0 %v3906_v14  ;;  %v3956_v14 = vld [vmem:[%s5770_s12 + $0xf4] ss:$8 sps:$4 sm:$0xff]  }
 0x638   : > { %3257 = vmatprep.subr.bf16.mxu1 %v3956_v14 }
 0x639   : > { %3258 = vmatpush1.bf16.msra.mxu1 %v3954_v22 }
 0x657   : > { %v2691_v23 = vpop.f32.mrb[44].mxu0 }
 0x658   : > { %v2698_v32 = vpack.c.bf16 %v2691_v23, %v2691_v23  ;;  %v3688_v51 = vpop.f32.mrb[45].mxu0 }
 0x659   : > { %v2694_v36 = vpop.f32.mrb[46].mxu0 }
 0x65a   : > { %v3689_v15 = vpop.f32.mrb[47].mxu0  ;;  %2965 = vmatmul.mubr.bf16.vlgmr.msra.gmra.mrb[52].mxu0 %v2698_v32  ;;  %v2989_v36 = vld [vmem:[%s5768_s10] sm:$0x3] }
 0x65b   : > { %v2990_v15 = vld [vmem:[%s5769_s11] sm:$0x3]  ;;  %v3011_v12 = vrot.slane %v2989_v36, %v5626_v43  ;;  %v3015_v59 = vrot.slane %v2989_v36, %v5631_v35 }
 0x65c   : > { %v3024_v41 = vrot.slane %v2990_v15, %v5626_v43  ;;  %v3028_v40 = vrot.slane %v2990_v15, %v5631_v35 }
 0x6ed   : > { %v2845_v8 = vpop.f32.mrb[48].mxu0 }
 0x6ee   : > { %v2847_v49 = vpop.f32.mrb[49].mxu0 }
 0x6ef   : > { %v2849_v30 = vpop.f32.mrb[50].mxu0 }
 0x6f0   : > { %v2850_v28 = vpop.f32.mrb[51].mxu0 }
 0x72d   : > { %v2966_v50 = vpop.f32.mrb[52].mxu0 }
 0x72e   : > { %v2973_v11 = vadd.f32 %v2966_v50, %v2845_v8  ;;  %v2968_v57 = vpop.f32.mrb[53].mxu0 }
 0x72f   : > { %v2974_v55 = vadd.f32 %v2968_v57, %v2847_v49  ;;  %v2970_v44 = vpop.f32.mrb[54].mxu0 }
 0x730   : > { %v2987_v7 = vadd.f32 %v2980_v63, %v2973_v11  ;;  %v2971_v0 = vpop.f32.mrb[55].mxu0 }
 0x731   : > { %v2988_v45 = vadd.f32 %v2984_v46, %v2974_v55 }
 0x733   : > { %v2991_v34 = vadd.f32 %v2988_v45, %v2987_v7 }
 0x735   : > { %2992 = vadd.xlane.f32.xlu0 %v2991_v34 }
 0x7c2   : > { %v2993_v25 = vpop.xlane.xlu0 %2992 }
 0x7c3   : > { %v2994_v9 = vmul.f32 0.00390625, %v2993_v25 }
 0x7c5   : > { %v2995_v31 = vsub.f32 %v2987_v7, %v2994_v9  ;;  %v2996_v6 = vsub.f32 %v2988_v45, %v2994_v9 }
 0x7c7   : > { %v2997_v56 = vmul.f32 %v2995_v31, %v2995_v31  ;;  %v2998_v37 = vmul.f32 %v2996_v6, %v2996_v6 }
 0x7c9   : > { %v2999_v3 = vadd.f32 %v2998_v37, %v2997_v56 }
 0x7cb   : > { %3000 = vadd.xlane.f32.xlu1 %v2999_v3 }
 0x858   : > { %v3001_v23 = vpop.xlane.xlu1 %3000 }
 0x859   : > { %v3002_v32 = vmul.f32 0.00390625, %v3001_v23 }
 0x85b   : > { %v3003_v51 = vadd.f32 1e-06, %v3002_v32 }
 0x85d   : > { %3967 = vrsqrt.f32 %v3003_v51 }
 0x867   : > { %v3968_v54 = vpop.eup %3967 }
 0x868   : > { %v3005_v16 = vmul.f32 %v3968_v54, %v2995_v31  ;;  %v3006_v1 = vmul.f32 %v3968_v54, %v2996_v6 }
 0x86a   : > { %v3018_v20 = vmul.f32 %v3011_v12, %v3005_v16  ;;  %v3019_v2 = vmul.f32 %v3015_v59, %v3006_v1 }
 0x86c   : > { %v3031_v4 = vadd.f32 %v3024_v41, %v3018_v20  ;;  %v3032_v8 = vadd.f32 %v3028_v40, %v3019_v2 }
 0x86e   : > { %v3033_v49 = vpack.c.bf16 %v3031_v4, %v3031_v4  ;;  %v3034_v30 = vpack.c.bf16 %v3032_v8, %v3032_v8 }
 0x870   : > { %3259 = vmatprep.mubr.bf16.mxu1 %v3034_v30 }
 0x871   : > { %3260 = vmatmul.mubr.bf16.vlgmr.msra.gmra.mrb[128].mxu1 %v3033_v49 }
 0x944   : > { %v3261_v28 = vpop.f32.mrb[128].mxu1 }
 0x945   : > { %3268 = vst [vmem:[%s448_s14] sm:$0xff] %v3261_v28  ;;  %v3263_v60 = vpop.f32.mrb[129].mxu1 }
 0x946   : > { %3269 = vst [vmem:[%s448_s14 + $0x8] sm:$0xff] %v3263_v60  ;;  %v3265_v21 = vpop.f32.mrb[130].mxu1 }
 0x947   : > { %v3266_v43 = vpop.f32.mrb[131].mxu1 }
 0x948   : > { %4010 = shalt.err (!%p4007_p7)
}
 0x949   : > { %s4011_s16 = scalar_lea.hbm %s5718_s21, 256  ;;  %s4015_s23 = scalar_lea.hbm %s5771_s13, 512 }
 0x94a   : > { %p4012_p8 = scmp.ne.s32.totalorder %s5718_s21, %s4011_s16  ;;  %p4016_p1 = scmp.lt.u32.totalorder %s5718_s21, %s5771_s13 }
 0x94b   : > { %p4017_p0 = scmp.lt.u32.totalorder %s4015_s23, %s4011_s16  ;;  %p4019_p6 = scmp.lt.u32.totalorder %s4011_s16, %s5718_s21 }
 0x94c   : > { %p4013_p11 = pnand %p4012_p8, %p5846_p9 }
 0x94d   : > { %p4018_p5 = por %p4017_p0, %p4016_p1 }
 0x94e   : > { %p4014_p13 = pneg %p4013_p11 }
 0x94f   : > { %p4020_p10 = por %p4019_p6, %p4018_p5 }
 0x951   : > { %p4021_p12 = pnand %p4020_p10, %p4014_p13 }
 0x953   : > { %4024 = shalt.err (!%p4021_p12)
}
 0x954   : > { %3694 = dma.vmem_to_hbm [thread:$0]  (%p5846_p9), %s5713_s20, 256, %s5718_s21, %s3271_s17  }
 0x955 PF: > { %p3706_p2 = scmp.ge.s32.totalorder %s4063_s28, 2  ;;  %s3297_s24 = sand.u32 1, %s4051_s25  }
 0x956   : > { %p5847_p3 = scmp.ne.s32.totalorder %s5797_s19, 0  ;;  %s3298_s30 = scalar_lea.sflag [#allocation4], %s3297_s24 }
 0x958   : > { %p3701_p4 = pnand %p3706_p2, %p5847_p3 }
 0x95a   : > { %4046 = dma.done.wait (!%p3701_p4), %s3298_s30, 256  }
 0x95b   : > { %4048 = vsyncadd (!%p3701_p4), %s3298_s30, 4294967040  ;;  %s5848_s28 = sld [smem:[#allocation9_spill]]  ;;  %s5849_s27 = sld [smem:[#allocation8_spill]] }
 0x95c   : > { %s5850_s16 = sld [smem:[#allocation10_spill]]  ;;  %s5851_s25 = smov %s4055_s26 }
 0x961   : > { %p24_p7 = scmp.ge.s32.totalorder %s5848_s28, 4   ;;  %s5852_s26 = smov %s5849_s27 }
 0x962   : > { %s5853_s27 = smov %s5850_s16 }
 0x963   :  { %26 = sbr.rel (!%p24_p7) target bundleno = 4 (0x4), region = 112 }
 0x96a   :  { %3303 = vsyncpa [#allocation3], 1 }
 0x96b   :  { %3305 = vsyncpa [#allocation3 + $0x1], 1 }
 0x96c   :  { %3306 = vsyncpa [#allocation4], 1 }
 0x96d   :  { %3308 = vsyncpa [#allocation4 + $0x1], 1 }

// kernel: tpu_custom_call.1
= control target key start
LH: loop header
LB: loop body
LE: loop exit
PB: predicated region body
PF: predicated region fallthrough
CT: control target
= control target key end

     0   :  { %18 = vsyncpa [#allocation3], 0  ;;  %s5758_s0 = inlined_call_operand.vmem [shape: bf16[2,32,128], index: 0, kind: input, shape index: {}]   ;;  %s5759_s1 = inlined_call_operand.vmem [shape: f32[256,32], index: 1, kind: input, shape index: {}]   ;;  %s5760_s2 = inlined_call_operand.vmem [shape: bf16[2,8,128], index: 2, kind: input, shape index: {}]   ;;  %s5761_s3 = inlined_call_operand.hbm [shape: bf16[256,128], index: 3, kind: input, shape index: {}]   ;;  %s5762_s4 = inlined_call_operand.vmem [shape: f32[256,1], index: 4, kind: input, shape index: {}]   ;;  %s5763_s5 = inlined_call_operand.vmem [shape: f32[256,1], index: 5, kind: input, shape index: {}]   ;;  %s5764_s6 = inlined_call_operand.vmem [shape: bf16[512,256], index: 6, kind: input, shape index: {}]   ;;  %s5765_s7 = inlined_call_operand.vmem [shape: f32[256,1], index: 7, kind: input, shape index: {}]   ;;  %s5766_s8 = inlined_call_operand.vmem [shape: bf16[2,128,256], index: 8, kind: input, shape index: {}]   ;;  %s5767_s9 = inlined_call_operand.vmem [shape: f32[1,256], index: 9, kind: input, shape index: {}]   ;;  %s5768_s10 = inlined_call_operand.vmem [shape: f32[1,256], index: 10, kind: input, shape index: {}]   ;;  %s5769_s11 = inlined_call_operand.vmem [shape: f32[1,256], index: 11, kind: input, shape index: {}]   ;;  %s5770_s12 = inlined_call_operand.vmem [shape: bf16[256,256], index: 12, kind: input, shape index: {}]   ;;  %s5771_s13 = inlined_call_operand.hbm [shape: f32[2,8,256], index: 13, kind: output, shape index: {}]  }
   0x1   :  { %19 = vsyncpa [#allocation4], 0 }
   0x2   :  { %21 = vsyncpa [#allocation4 + $0x1], 0  ;;  %s4142_s25 = smov 0   ;;  %s4144_s26 = smov 0  }
   0x3   :  { %s4146_s27 = smov 0   ;;  %s4148_s28 = smov 0  }
   0x4 LB: > { %5793 = sst [smem:[#allocation8_spill]] %s4059_s27  ;;  %s4163_s29 = sadd.s32 4294967295, %s4063_s28   ;;  %s4063_s28 = sphi %s4148_s28, %s5848_s28   ;;  %s4059_s27 = sphi %s4146_s27, %s5853_s27   ;;  %s4055_s26 = sphi %s4144_s26, %s5852_s26   ;;  %s4051_s25 = sphi %s4142_s25, %s5851_s25  }
   0x5   : > { %s3356_s30 = sadd.s32 4294967294, %s4063_s28   ;;  %s4167_s14 = sadd.s32 1, %s4063_s28  }
   0x6   : > { %5794 = sst [smem:[#allocation9_spill]] %s4167_s14  ;;  %s312_s15 = sadd.s32 1, %s4059_s27 }
   0x7   : > { %s309_s16 = ssub.s32 %s4063_s28, %s4167_s14  ;;  %p322_p0 = scmp.ne.s32.totalorder %s4059_s27, %s4055_s26 }
   0x8   : > { %p310_p1 = scmp.eq.s32.totalorder %s309_s16, 0  ;;  %p323_p2 = scmp.eq.s32.totalorder %s4163_s29, 1 }
   0x9   : > { %p328_p3 = scmp.ne.s32.totalorder %s4055_s26, %s4051_s25  ;;  %p329_p4 = scmp.eq.s32.totalorder %s3356_s30, 1 }
   0xa   : > { %s4178_s17 = scalar_select %p310_p1, %s4059_s27, %s312_s15  }
   0xb   : > { %p4180_p5 = por %p323_p2, %p322_p0  ;;  %p4184_p6 = por %p329_p4, %p328_p3 }
   0xc   : > { %5795 = sst [smem:[#allocation10_spill]] %s4178_s17  ;;  %p3357_p7 = scmp.ge.s32.totalorder %s4063_s28, 1 }
   0xd   : > { %s5796_s18 = scalar_select %p4180_p5, 1, 0 }
   0xe   : > { %s5797_s19 = scalar_select %p4184_p6, 1, 0 }
   0xf   : > { %p336_p8 = scmp.lt.s32.totalorder %s4063_s28, 3  ;;  %p5775_p9 = scmp.eq.s32.totalorder %s4163_s29, 0 }
  0x10   : > { %s4065_s21 = smov [#allocation2]   ;;  %s3969_s15 = scalar_lea.hbm %s5761_s3, 2048 }
  0x11   : > { %p4191_p10 = pnand %p3357_p7, %p336_p8  ;;  %s354_s22 = sshll.u32 %s4065_s21, 4  ;;  %s355_s22 = int_to_ptr.vmem [resolvable:$true] %s354_s22 }
  0x12   : > { %p3970_p13 = scmp.ne.s32.totalorder %s5761_s3, %s3969_s15  ;;  %p3976_p3 = scmp.lt.u32.totalorder %s3969_s15, %s5761_s3 }
  0x13   : > { %s5798_s20 = scalar_select %p4191_p10, 1, 0 }
  0x14   : > { %p3696_p11 = pneg %p4191_p10 }
  0x16   : > { %p4199_p12 = pnand %p5775_p9, %p3696_p11 }
  0x18   : > { %p3971_p0 = pneg %p4199_p12 }
  0x1a   : > { %p3972_p1 = pnand %p3971_p0, %p3970_p13 }
  0x1c   : > { %p3973_p2 = pneg %p3972_p1 }
  0x1e   : > { %p3978_p4 = pnand %p3976_p3, %p3973_p2 }
  0x20   : > { %3981 = shalt.err (!%p3978_p4)
}
  0x21   : > { %s3982_s14 = scalar_lea.vmem %s355_s22, 2048  ;;  %p3990_p9 = scmp.lt.s32.totalorder %s355_s22, %s355_s22 }
  0x22   : > { %p3983_p7 = scmp.ne.s32.totalorder %s355_s22, %s3982_s14  ;;  %p3991_p6 = scmp.lt.s32.totalorder %s3982_s14, %s3982_s14 }
  0x24   : > { %p3985_p8 = pnand %p3983_p7, %p3971_p0  ;;  %p3992_p5 = por %p3991_p6, %p3990_p9 }
  0x26   : > { %p3986_p11 = pneg %p3985_p8 }
  0x28   : > { %p3993_p10 = pnand %p3992_p5, %p3986_p11 }
  0x2a   : > { %3996 = shalt.err (!%p3993_p10)
}
  0x2b   : > { %s4066_s17 = smov 64   ;;  %s4067_s24 = smov 4  }
  0x2c   : > { %3699 = dma.hbm_to_vmem [thread:$0]  (!%p4199_p12), %s5761_s3, 2048, %s355_s22, [#allocation3], %s4066_s17, %s4066_s17, %s4067_s24  }
  0x2d   : > { %p5800_p13 = scmp.ne.s32.totalorder %s5798_s20, 0 }
  0x2f   : > { %405 = sbr.rel (%p5800_p13) target bundleno = 2389 (0x955), region = 72 }
  0x36   : > { %p5801_p1 = scmp.eq.s32.totalorder %s4163_s29, 0 }
  0x38   : > { %4042 = dma.done.wait (%p5801_p1), [#allocation3], 2048   ;;  %p5802_p0 = pmov %p5801_p1 }
  0x39   : > { %p449_p5 = scmp.lt.s32.totalorder %s4163_s29, 1  ;;  %v5778_v0 = vmov 0   ;;  %v3749_v3 = vld [vmem:[#allocation2] sm:$0xff]   ;;  %v3750_v5 = vld [vmem:[#allocation2 + $0x8] sm:$0xff]   ;;  %v3751_v7 = vld [vmem:[#allocation2 + $0x10] sm:$0xff]   ;;  %vm824_vm0 = vcmask 261120  }
  0x3a   : > { %4044 = vsyncadd (%p5802_p0), [#allocation3], 4294965248  ;;  %3746 = vset.pattern.permute.xlu1 %v5778_v0  ;;  %3745 = vset.pattern.permute.xlu0 %v5778_v0  ;;  %v792_v4 = vld [vmem:[%s5763_s5] sm:$0xff]  ;;  %v793_v6 = vld [vmem:[%s5763_s5 + $0x8] sm:$0xff]  ;;  %vm4070_vm1 = vmmov 0   ;;  %s446_s16 = sand.u32 1, %s4055_s26  }
  0x3b   : > { %s450_s27 = scalar_select %p449_p5, %s4163_s29, 1  ;;  %1848 = vmatprep.subr.bf16.mxu1 %v5778_v0  ;;  %3578 = vmatprep.mubr.bf16.mxu0 %v3749_v3  ;;  %v763_v8 = vld [vmem:[%s5762_s4 + $0x18] sm:$0xff]  ;;  %v760_v9 = vld [vmem:[%s5762_s4] sm:$0xff]  ;;  %v761_v13 = vld [vmem:[%s5762_s4 + $0x8] sm:$0xff] }
  0x3c   : > { %1258 = vperm.xlu1 %3746, %v792_v4   ;;  %v3752_v10 = vld [vmem:[#allocation2 + $0x18] sm:$0xff]   ;;  %1066 = vperm.xlu0 %3745, %v760_v9   ;;  %v3753_v12 = vld [vmem:[#allocation2 + $0x20] sm:$0xff]   ;;  %v765_v14 = vld [vmem:[%s5762_s4 + $0x28] sm:$0xff]  ;;  %s3519_s22 = sshll.u32 %s4163_s29, 8  ;;  %s3271_s17 = scalar_lea.sflag [#allocation4], %s446_s16 }
  0x3d   : > { %s3518_s14 = sshll.u32 %s450_s27, 4  ;;  %v795_v11 = vld [vmem:[%s5763_s5 + $0x18] sm:$0xff]  ;;  %v762_v15 = vld [vmem:[%s5762_s4 + $0x10] sm:$0xff]  ;;  %v3754_v16 = vld [vmem:[#allocation2 + $0x28] sm:$0xff]   ;;  %s3362_s27 = sshll.u32 %s446_s16, 4 }
  0x3e   : > { %s453_s23 = scalar_lea.vmem %s5758_s0, %s3518_s14  ;;  %v797_v17 = vld [vmem:[%s5763_s5 + $0x28] sm:$0xff]  ;;  %v3755_v18 = vld [vmem:[#allocation2 + $0x30] sm:$0xff]   ;;  %v767_v20 = vld [vmem:[%s5762_s4 + $0x38] sm:$0xff]  ;;  %s448_s14 = scalar_lea.vmem [#allocation5], %s3362_s27 }
  0x3f   : > { %v3747_v1 = vld [vmem:[%s453_s23] sm:$0xff]   ;;  %v3748_v2 = vld [vmem:[%s453_s23 + $0x8] sm:$0xff]   ;;  %v794_v19 = vld [vmem:[%s5763_s5 + $0x10] sm:$0xff]  ;;  %s3285_s20 = sshll.u32 %s448_s14, 4  ;;  %s5718_s21 = scalar_lea.hbm %s5771_s13, %s3519_s22  ;;  %s5713_s20 = int_to_ptr.vmem [resolvable:$true] %s3285_s20 }
  0x40   : > { %3574 = vmatprep.subr.bf16.mxu0 %v3747_v1  ;;  %1263 = vperm.xlu1 %3746, %v793_v6   ;;  %v764_v21 = vld [vmem:[%s5762_s4 + $0x20] sm:$0xff]  ;;  %v3756_v22 = vld [vmem:[#allocation2 + $0x38] sm:$0xff]   ;;  %v769_v26 = vld [vmem:[%s5762_s4 + $0x48] sm:$0xff]  ;;  %s3997_s24 = scalar_lea.vmem %s5713_s20, 256  ;;  %p5846_p9 = scmp.ne.s32.totalorder %s5796_s18, 0 }
  0x41   : > { %3575 = vmatpush3.bf16.xpose.msra.mxu0 %v3747_v1  ;;  %1071 = vperm.xlu0 %3745, %v761_v13   ;;  %v799_v23 = vld [vmem:[%s5763_s5 + $0x38] sm:$0xff]  ;;  %v3757_v24 = vld [vmem:[#allocation2 + $0x40] sm:$0xff]   ;;  %v766_v27 = vld [vmem:[%s5762_s4 + $0x30] sm:$0xff]  ;;  %p3998_p6 = scmp.ne.s32.totalorder %s5713_s20, %s3997_s24  ;;  %s4071_s29 = smov [#allocation5]  }
  0x42   : > { %3576 = vmatprep.subr.bf16.mxu0 %v3748_v2  ;;  %v796_v25 = vld [vmem:[%s5763_s5 + $0x20] sm:$0xff]  ;;  %v3758_v28 = vld [vmem:[#allocation2 + $0x48] sm:$0xff]   ;;  %v3759_v30 = vld [vmem:[#allocation2 + $0x50] sm:$0xff]   ;;  %s4001_s30 = sshll.u32 %s4071_s29, 4  ;;  %s4002_s30 = int_to_ptr.vmem [resolvable:$false] %s4001_s30 }
  0x43   : > { %v801_v29 = vld [vmem:[%s5763_s5 + $0x48] sm:$0xff]  ;;  %v798_v31 = vld [vmem:[%s5763_s5 + $0x30] sm:$0xff]  ;;  %v771_v32 = vld [vmem:[%s5762_s4 + $0x58] sm:$0xff]  ;;  %p3999_p10 = pnand %p3998_p6, %p5846_p9  ;;  %s4003_s27 = scalar_lea.vmem %s4002_s30, 512 }
  0x44   : > { %1081 = vperm.xlu1 %3746, %v763_v8   ;;  %v768_v33 = vld [vmem:[%s5762_s4 + $0x40] sm:$0xff]  ;;  %v3760_v34 = vld [vmem:[#allocation2 + $0x58] sm:$0xff]   ;;  %v773_v38 = vld [vmem:[%s5762_s4 + $0x68] sm:$0xff]  ;;  %p4004_p2 = scmp.lt.s32.totalorder %s5713_s20, %s4002_s30  ;;  %p4005_p3 = scmp.lt.s32.totalorder %s4003_s27, %s3997_s24 }
  0x45   : > { %1076 = vperm.xlu0 %3745, %v762_v15   ;;  %v803_v35 = vld [vmem:[%s5763_s5 + $0x58] sm:$0xff]  ;;  %v3761_v36 = vld [vmem:[#allocation2 + $0x60] sm:$0xff]   ;;  %v770_v39 = vld [vmem:[%s5762_s4 + $0x50] sm:$0xff]  ;;  %p4000_p12 = pneg %p3999_p10 }
  0x46   : > { %v800_v37 = vld [vmem:[%s5763_s5 + $0x40] sm:$0xff]  ;;  %v3762_v40 = vld [vmem:[#allocation2 + $0x68] sm:$0xff]   ;;  %v3763_v42 = vld [vmem:[#allocation2 + $0x70] sm:$0xff]   ;;  %p4006_p4 = por %p4005_p3, %p4004_p2 }
  0x47   : > { %v805_v41 = vld [vmem:[%s5763_s5 + $0x68] sm:$0xff]  ;;  %v802_v43 = vld [vmem:[%s5763_s5 + $0x50] sm:$0xff]  ;;  %v775_v44 = vld [vmem:[%s5762_s4 + $0x78] sm:$0xff] }
  0x48   : > { %1273 = vperm.xlu1 %3746, %v795_v11   ;;  %v772_v45 = vld [vmem:[%s5762_s4 + $0x60] sm:$0xff]  ;;  %v3764_v46 = vld [vmem:[#allocation2 + $0x78] sm:$0xff]   ;;  %v777_v49 = vld [vmem:[%s5762_s4 + $0x88] sm:$0xff]  ;;  %p4007_p7 = pnand %p4006_p4, %p4000_p12 }
  0x49   : > { %3577 = vmatpush3.bf16.xpose.msra.mxu0 %v3748_v2  ;;  %1268 = vperm.xlu0 %3745, %v794_v19   ;;  %v807_v47 = vld [vmem:[%s5763_s5 + $0x78] sm:$0xff]  ;;  %v804_v48 = vld [vmem:[%s5763_s5 + $0x60] sm:$0xff]  ;;  %v774_v50 = vld [vmem:[%s5762_s4 + $0x70] sm:$0xff] }
  0x4a   : > { %v809_v51 = vld [vmem:[%s5763_s5 + $0x88] sm:$0xff]  ;;  %v806_v52 = vld [vmem:[%s5763_s5 + $0x70] sm:$0xff]  ;;  %v779_v53 = vld [vmem:[%s5762_s4 + $0x98] sm:$0xff] }
  0x4b   : > { %v776_v54 = vld [vmem:[%s5762_s4 + $0x80] sm:$0xff]  ;;  %v811_v55 = vld [vmem:[%s5763_s5 + $0x98] sm:$0xff]  ;;  %v781_v57 = vld [vmem:[%s5762_s4 + $0xa8] sm:$0xff] }
  0x4c   : > { %1091 = vperm.xlu1 %3746, %v765_v14   ;;  %v808_v56 = vld [vmem:[%s5763_s5 + $0x80] sm:$0xff]  ;;  %v778_v58 = vld [vmem:[%s5762_s4 + $0x90] sm:$0xff]  ;;  %v813_v59 = vld [vmem:[%s5763_s5 + $0xa8] sm:$0xff] }
  0x4d   : > { %1086 = vperm.xlu0 %3745, %v764_v21   ;;  %v810_v60 = vld [vmem:[%s5763_s5 + $0x90] sm:$0xff]  ;;  %v783_v61 = vld [vmem:[%s5762_s4 + $0xb8] sm:$0xff]  ;;  %v780_v62 = vld [vmem:[%s5762_s4 + $0xa0] sm:$0xff] }
  0x4e   : > { %v815_v63 = vld [vmem:[%s5763_s5 + $0xb8] sm:$0xff]  ;;  %v812_v1 = vld [vmem:[%s5763_s5 + $0xa0] sm:$0xff]  ;;  %v785_v2 = vld [vmem:[%s5762_s4 + $0xc8] sm:$0xff] }
  0x4f   : > { %v782_v3 = vld [vmem:[%s5762_s4 + $0xb0] sm:$0xff]  ;;  %v817_v4 = vld [vmem:[%s5763_s5 + $0xc8] sm:$0xff]  ;;  %v787_v6 = vld [vmem:[%s5762_s4 + $0xd8] sm:$0xff] }
  0x50   : > { %3579 = vmatmul.mubr.bf16.vlgmr.msra.gmra.mrb[0].mxu0 %v3750_v5  ;;  %1283 = vperm.xlu1 %3746, %v797_v17   ;;  %v814_v5 = vld [vmem:[%s5763_s5 + $0xb0] sm:$0xff]  ;;  %v819_v8 = vld [vmem:[%s5763_s5 + $0xd8] sm:$0xff]  ;;  %v816_v9 = vld [vmem:[%s5763_s5 + $0xc0] sm:$0xff] }
  0x51   : > { %3582 = vmatprep.mubr.bf16.mxu0 %v3751_v7  ;;  %1278 = vperm.xlu0 %3745, %v796_v25   ;;  %v784_v7 = vld [vmem:[%s5762_s4 + $0xc0] sm:$0xff]  ;;  %v786_v11 = vld [vmem:[%s5762_s4 + $0xd0] sm:$0xff]  ;;  %v791_v14 = vld [vmem:[%s5762_s4 + $0xf8] sm:$0xff] }
  0x52   : > { %v818_v13 = vld [vmem:[%s5763_s5 + $0xd0] sm:$0xff]  ;;  %v788_v15 = vld [vmem:[%s5762_s4 + $0xe0] sm:$0xff]  ;;  %v2206_v25 = vld [vmem:[%s5765_s7 + $0x28] sm:$0xff] }
  0x53   : > { %v820_v17 = vld [vmem:[%s5763_s5 + $0xe0] sm:$0xff]  ;;  %v790_v19 = vld [vmem:[%s5762_s4 + $0xf0] sm:$0xff] }
  0x54   : > { %1101 = vperm.xlu1 %3746, %v767_v20   ;;  %v2202_v20 = vld [vmem:[%s5765_s7 + $0x8] sm:$0xff]  ;;  %v822_v21 = vld [vmem:[%s5763_s5 + $0xf0] sm:$0xff] }
  0x55   : > { %1096 = vperm.xlu0 %3745, %v766_v27   ;;  %v2213_v27 = vld [vmem:[%s5765_s7 + $0x60] sm:$0xff] }
  0x58   : > { %3583 = vmatmul.mubr.bf16.gmra.mrb[4].mxu0 %v3752_v10  ;;  %1293 = vperm.xlu1 %3746, %v799_v23   ;;  %v789_v10 = vld [vmem:[%s5762_s4 + $0xe8] sm:$0xff]  ;;  %v2204_v23 = vld [vmem:[%s5765_s7 + $0x18] sm:$0xff] }
  0x59   : > { %3586 = vmatprep.mubr.bf16.mxu0 %v3753_v12  ;;  %1288 = vperm.xlu0 %3745, %v798_v31   ;;  %v821_v12 = vld [vmem:[%s5763_s5 + $0xe8] sm:$0xff] }
  0x5c   : > { %1111 = vperm.xlu1 %3746, %v769_v26   ;;  %v2210_v26 = vld [vmem:[%s5765_s7 + $0x48] sm:$0xff] }
  0x5d   : > { %1106 = vperm.xlu0 %3745, %v768_v33  }
  0x60   : > { %3587 = vmatmul.mubr.bf16.gmra.mrb[8].mxu0 %v3754_v16  ;;  %1303 = vperm.xlu1 %3746, %v801_v29   ;;  %v823_v16 = vld [vmem:[%s5763_s5 + $0xf8] sm:$0xff]  ;;  %v2215_v29 = vld [vmem:[%s5765_s7 + $0x70] sm:$0xff] }
  0x61   : > { %3590 = vmatprep.mubr.bf16.mxu0 %v3755_v18  ;;  %1298 = vperm.xlu0 %3745, %v800_v37   ;;  %v2201_v18 = vld [vmem:[%s5765_s7] sm:$0xff] }
  0x64   : > { %1121 = vperm.xlu1 %3746, %v771_v32  }
  0x65   : > { %1116 = vperm.xlu0 %3745, %v770_v39  }
  0x68   : > { %3591 = vmatmul.mubr.bf16.gmra.mrb[12].mxu0 %v3756_v22  ;;  %1313 = vperm.xlu1 %3746, %v803_v35   ;;  %v2203_v22 = vld [vmem:[%s5765_s7 + $0x10] sm:$0xff] }
  0x69   : > { %3594 = vmatprep.mubr.bf16.mxu0 %v3757_v24  ;;  %1308 = vperm.xlu0 %3745, %v802_v43   ;;  %v2205_v24 = vld [vmem:[%s5765_s7 + $0x20] sm:$0xff] }
  0x6c   : > { %1131 = vperm.xlu1 %3746, %v773_v38  }
  0x6d   : > { %1126 = vperm.xlu0 %3745, %v772_v45  }
  0x70   : > { %3595 = vmatmul.mubr.bf16.gmra.mrb[16].mxu0 %v3758_v28  ;;  %1323 = vperm.xlu1 %3746, %v805_v41   ;;  %v2214_v28 = vld [vmem:[%s5765_s7 + $0x68] sm:$0xff] }
  0x71   : > { %3598 = vmatprep.mubr.bf16.mxu0 %v3759_v30  ;;  %1318 = vperm.xlu0 %3745, %v804_v48  }
  0x74   : > { %1141 = vperm.xlu1 %3746, %v775_v44  }
  0x75   : > { %1136 = vperm.xlu0 %3745, %v774_v50  }
  0x78   : > { %3599 = vmatmul.mubr.bf16.gmra.mrb[20].mxu0 %v3760_v34  ;;  %1333 = vperm.xlu1 %3746, %v807_v47  }
  0x79   : > { %3602 = vmatprep.mubr.bf16.mxu0 %v3761_v36  ;;  %1328 = vperm.xlu0 %3745, %v806_v52  }
  0x7c   : > { %1151 = vperm.xlu1 %3746, %v777_v49  }
  0x7d   : > { %1146 = vperm.xlu0 %3745, %v776_v54  }
  0x80   : > { %3603 = vmatmul.mubr.bf16.gmra.mrb[24].mxu0 %v3762_v40  ;;  %1343 = vperm.xlu1 %3746, %v809_v51  }
  0x81   : > { %3606 = vmatprep.mubr.bf16.mxu0 %v3763_v42  ;;  %1338 = vperm.xlu0 %3745, %v808_v56  }
  0x84   : > { %1161 = vperm.xlu1 %3746, %v779_v53  }
  0x85   : > { %1156 = vperm.xlu0 %3745, %v778_v58  }
  0x88   : > { %3607 = vmatmul.mubr.bf16.gmra.mrb[28].mxu0 %v3764_v46  ;;  %1353 = vperm.xlu1 %3746, %v811_v55  }
  0x89   : > { %1348 = vperm.xlu0 %3745, %v810_v60  }
  0x8c   : > { %1171 = vperm.xlu1 %3746, %v781_v57  }
  0x8d   : > { %1166 = vperm.xlu0 %3745, %v780_v62  }
  0x90   : > { %1363 = vperm.xlu1 %3746, %v813_v59  }
  0x91   : > { %1358 = vperm.xlu0 %3745, %v812_v1  }
  0x94   : > { %1181 = vperm.xlu1 %3746, %v783_v61  }
  0x95   : > { %1176 = vperm.xlu0 %3745, %v782_v3  }
  0x98   : > { %1373 = vperm.xlu1 %3746, %v815_v63  }
  0x99   : > { %1368 = vperm.xlu0 %3745, %v814_v5  }
  0x9c   : > { %1191 = vperm.xlu1 %3746, %v785_v2  }
  0x9d   : > { %1186 = vperm.xlu0 %3745, %v784_v7  }
  0xa0   : > { %1383 = vperm.xlu1 %3746, %v817_v4  }
  0xa1   : > { %1378 = vperm.xlu0 %3745, %v816_v9  }
  0xa4   : > { %1201 = vperm.xlu1 %3746, %v787_v6  }
  0xa5   : > { %1196 = vperm.xlu0 %3745, %v786_v11  }
  0xa8   : > { %1393 = vperm.xlu1 %3746, %v819_v8  }
  0xa9   : > { %1388 = vperm.xlu0 %3745, %v818_v13  }
  0xac   : > { %1211 = vperm.xlu1 %3746, %v789_v10  }
  0xad   : > { %1206 = vperm.xlu0 %3745, %v788_v15  }
  0xb0   : > { %1403 = vperm.xlu1 %3746, %v821_v12  }
  0xb1   : > { %1398 = vperm.xlu0 %3745, %v820_v17  }
  0xb4   : > { %1221 = vperm.xlu1 %3746, %v791_v14  }
  0xb5   : > { %1216 = vperm.xlu0 %3745, %v790_v19  }
  0xb8   : > { %1413 = vperm.xlu1 %3746, %v823_v16  }
  0xb9   : > { %1408 = vperm.xlu0 %3745, %v822_v21  }
  0xbc   : > { %2235 = vperm.xlu1 %3746, %v2201_v18  }
  0xc0   : > { %2240 = vperm.xlu1 %3746, %v2202_v20  }
  0xc4   : > { %2245 = vperm.xlu1 %3746, %v2203_v22  }
  0xc8   : > { %2250 = vperm.xlu1 %3746, %v2204_v23  }
  0xcc   : > { %2255 = vperm.xlu1 %3746, %v2205_v24  }
  0xd0   : > { %2260 = vperm.xlu1 %3746, %v2206_v25  }
  0xd4   : > { %2280 = vperm.xlu1 %3746, %v2210_v26  }
  0xd8   : > { %2295 = vperm.xlu1 %3746, %v2213_v27  }
  0xdc   : > { %2300 = vperm.xlu1 %3746, %v2214_v28  }
  0xe0   : > { %2305 = vperm.xlu1 %3746, %v2215_v29  }
 0x123   : > { %v4455_v30 = vpop.f32.mrb[0].mxu0 }
 0x124   : > { %v4457_v31 = vpop.f32.mrb[1].mxu0  ;;  %v828_v37 = vsel %vm824_vm0, %v4455_v30, 0.0 }
 0x125   : > { %v4459_v32 = vpop.f32.mrb[2].mxu0  ;;  %v825_v34 = vsel %vm824_vm0, %v4457_v31, 0.0 }
 0x126   : > { %v4461_v33 = vpop.f32.mrb[3].mxu0  ;;  %v830_v39 = vsel %vm824_vm0, %v4459_v32, 0.0 }
 0x127   : > { %v826_v35 = vsel %vm824_vm0, %v4461_v33, 0.0 }
 0x128   : > { %v827_v36 = vadd.f32 %v826_v35, %v825_v34 }
 0x12a   : > { %v829_v38 = vadd.f32 %v828_v37, %v827_v36 }
 0x12b   : > { %v4471_v40 = vpop.f32.mrb[4].mxu0 }
 0x12c   : > { %v4473_v41 = vpop.f32.mrb[5].mxu0  ;;  %v831_v42 = vadd.f32 %v830_v39, %v829_v38  ;;  %v836_v49 = vsel %vm824_vm0, %v4471_v40, 0.0 }
 0x12d   : > { %v832_v43 = vsel %vm824_vm0, %v4473_v41, 0.0  ;;  %v4477_v44 = vpop.f32.mrb[6].mxu0 }
 0x12e   : > { %v833_v45 = vadd.f32 %v832_v43, %v831_v42  ;;  %v4479_v46 = vpop.f32.mrb[7].mxu0  ;;  %v838_v51 = vsel %vm824_vm0, %v4477_v44, 0.0 }
 0x12f   : > { %v834_v47 = vsel %vm824_vm0, %v4479_v46, 0.0 }
 0x130   : > { %v835_v48 = vadd.f32 %v834_v47, %v833_v45 }
 0x132   : > { %v837_v50 = vadd.f32 %v836_v49, %v835_v48 }
 0x133   : > { %v4487_v52 = vpop.f32.mrb[8].mxu0 }
 0x134   : > { %v4489_v53 = vpop.f32.mrb[9].mxu0  ;;  %v839_v54 = vadd.f32 %v838_v51, %v837_v50  ;;  %v844_v61 = vsel %vm824_vm0, %v4487_v52, 0.0 }
 0x135   : > { %v840_v55 = vsel %vm824_vm0, %v4489_v53, 0.0  ;;  %v4493_v56 = vpop.f32.mrb[10].mxu0 }
 0x136   : > { %v841_v57 = vadd.f32 %v840_v55, %v839_v54  ;;  %v4495_v58 = vpop.f32.mrb[11].mxu0  ;;  %v846_v63 = vsel %vm824_vm0, %v4493_v56, 0.0 }
 0x137   : > { %v842_v59 = vsel %vm824_vm0, %v4495_v58, 0.0 }
 0x138   : > { %v843_v60 = vadd.f32 %v842_v59, %v841_v57 }
 0x13a   : > { %v845_v62 = vadd.f32 %v844_v61, %v843_v60 }
 0x13b   : > { %v4503_v1 = vpop.f32.mrb[12].mxu0 }
 0x13c   : > { %v4505_v2 = vpop.f32.mrb[13].mxu0  ;;  %v847_v3 = vadd.f32 %v846_v63, %v845_v62  ;;  %v852_v10 = vsel %vm824_vm0, %v4503_v1, 0.0 }
 0x13d   : > { %v848_v4 = vsel %vm824_vm0, %v4505_v2, 0.0  ;;  %v4509_v5 = vpop.f32.mrb[14].mxu0 }
 0x13e   : > { %v849_v6 = vadd.f32 %v848_v4, %v847_v3  ;;  %v4511_v7 = vpop.f32.mrb[15].mxu0  ;;  %v854_v12 = vsel %vm824_vm0, %v4509_v5, 0.0 }
 0x13f   : > { %v850_v8 = vsel %vm824_vm0, %v4511_v7, 0.0 }
 0x140   : > { %v851_v9 = vadd.f32 %v850_v8, %v849_v6 }
 0x142   : > { %v853_v11 = vadd.f32 %v852_v10, %v851_v9 }
 0x143   : > { %v4519_v13 = vpop.f32.mrb[16].mxu0 }
 0x144   : > { %v4521_v14 = vpop.f32.mrb[17].mxu0  ;;  %v855_v15 = vadd.f32 %v854_v12, %v853_v11  ;;  %v860_v22 = vsel %vm824_vm0, %v4519_v13, 0.0 }
 0x145   : > { %v856_v16 = vsel %vm824_vm0, %v4521_v14, 0.0  ;;  %v4525_v17 = vpop.f32.mrb[18].mxu0 }
 0x146   : > { %v857_v18 = vadd.f32 %v856_v16, %v855_v15  ;;  %v4527_v19 = vpop.f32.mrb[19].mxu0  ;;  %v862_v24 = vsel %vm824_vm0, %v4525_v17, 0.0 }
 0x147   : > { %v858_v20 = vsel %vm824_vm0, %v4527_v19, 0.0 }
 0x148   : > { %v859_v21 = vadd.f32 %v858_v20, %v857_v18 }
 0x14a   : > { %v861_v23 = vadd.f32 %v860_v22, %v859_v21 }
 0x14b   : > { %v4535_v25 = vpop.f32.mrb[20].mxu0 }
 0x14c   : > { %v4537_v26 = vpop.f32.mrb[21].mxu0  ;;  %v863_v27 = vadd.f32 %v862_v24, %v861_v23  ;;  %v868_v38 = vsel %vm824_vm0, %v4535_v25, 0.0 }
 0x14d   : > { %v864_v28 = vsel %vm824_vm0, %v4537_v26, 0.0  ;;  %v4541_v29 = vpop.f32.mrb[22].mxu0 }
 0x14e   : > { %v865_v34 = vadd.f32 %v864_v28, %v863_v27  ;;  %v716_v35 = vpop.f32.mrb[23].mxu0  ;;  %v870_v42 = vsel %vm824_vm0, %v4541_v29, 0.0 }
 0x14f   : > { %v866_v36 = vsel %vm824_vm0, %v716_v35, 0.0 }
 0x150   : > { %v867_v37 = vadd.f32 %v866_v36, %v865_v34 }
 0x152   : > { %v869_v39 = vadd.f32 %v868_v38, %v867_v37 }
 0x153   : > { %v3604_v43 = vpop.f32.mrb[24].mxu0 }
 0x154   : > { %v729_v45 = vpop.f32.mrb[25].mxu0  ;;  %v871_v47 = vadd.f32 %v870_v42, %v869_v39  ;;  %v876_v57 = vsel %vm824_vm0, %v3604_v43, 0.0 }
 0x155   : > { %v872_v48 = vsel %vm824_vm0, %v729_v45, 0.0  ;;  %v3605_v49 = vpop.f32.mrb[26].mxu0 }
 0x156   : > { %v873_v50 = vadd.f32 %v872_v48, %v871_v47  ;;  %v732_v51 = vpop.f32.mrb[27].mxu0  ;;  %v878_v60 = vsel %vm824_vm0, %v3605_v49, 0.0  ;;  %v4582_v47 = vpop.permute.xlu0 %1066 }
 0x157   : > { %v874_v54 = vsel %vm824_vm0, %v732_v51, 0.0 }
 0x158   : > { %v875_v55 = vadd.f32 %v874_v54, %v873_v50 }
 0x15a   : > { %v877_v59 = vadd.f32 %v876_v57, %v875_v55 }
 0x15b   : > { %v3608_v61 = vpop.f32.mrb[28].mxu0 }
 0x15c   : > { %v745_v62 = vpop.f32.mrb[29].mxu0  ;;  %v879_v63 = vadd.f32 %v878_v60, %v877_v59  ;;  %v884_v11 = vsel %vm824_vm0, %v3608_v61, 0.0 }
 0x15d   : > { %v880_v3 = vsel %vm824_vm0, %v745_v62, 0.0  ;;  %v3609_v4 = vpop.f32.mrb[30].mxu0 }
 0x15e   : > { %v881_v6 = vadd.f32 %v880_v3, %v879_v63  ;;  %v748_v8 = vpop.f32.mrb[31].mxu0  ;;  %v886_v15 = vsel %vm824_vm0, %v3609_v4, 0.0 }
 0x15f   : > { %v882_v9 = vsel %vm824_vm0, %v748_v8, 0.0 }
 0x160   : > { %v883_v10 = vadd.f32 %v882_v9, %v881_v6 }
 0x162   : > { %v885_v12 = vadd.f32 %v884_v11, %v883_v10 }
 0x164   : > { %v887_v16 = vadd.f32 %v886_v15, %v885_v12 }
 0x166   : > { %v888_v18 = vrot.slane %v887_v16, 4 }
 0x168   : > { %v889_v20 = vadd.f32 %v888_v18, %v887_v16 }
 0x16a   : > { %v890_v21 = vrot.slane %v889_v20, 2 }
 0x16c   : > { %v891_v22 = vadd.f32 %v890_v21, %v889_v20 }
 0x16e   : > { %v892_v23 = vrot.slane %v891_v22, 1 }
 0x170   : > { %v893_v24 = vadd.f32 %v892_v23, %v891_v22 }
 0x172   : > { %v895_v27 = vmul.f32 0.00390625, %v893_v24 }
 0x174   : > { %v4557_v28 = vsub.f32 %v4457_v31, %v895_v27  ;;  %v4560_v34 = vsub.f32 %v4461_v33, %v895_v27  ;;  %v4563_v36 = vsub.f32 %v4455_v30, %v895_v27  ;;  %v4566_v37 = vsub.f32 %v4459_v32, %v895_v27  ;;  %v4580_v33 = vpop.permute.xlu1 %1258 }
 0x175   : > { %v4569_v38 = vsub.f32 %v4473_v41, %v895_v27  ;;  %v4572_v39 = vsub.f32 %v4479_v46, %v895_v27  ;;  %v4575_v42 = vsub.f32 %v4471_v40, %v895_v27  ;;  %v4578_v31 = vsub.f32 %v4477_v44, %v895_v27 }
 0x176   : > { %v4585_v30 = vsub.f32 %v4489_v53, %v895_v27  ;;  %v4588_v32 = vsub.f32 %v4495_v58, %v895_v27  ;;  %v4591_v41 = vsub.f32 %v4487_v52, %v895_v27  ;;  %v4594_v46 = vsub.f32 %v4493_v56, %v895_v27 }
 0x177   : > { %v4597_v40 = vsub.f32 %v4505_v2, %v895_v27  ;;  %v4600_v44 = vsub.f32 %v4511_v7, %v895_v27  ;;  %v4603_v48 = vsub.f32 %v4503_v1, %v895_v27  ;;  %v4606_v53 = vsub.f32 %v4509_v5, %v895_v27 }
 0x178   : > { %v4609_v58 = vsub.f32 %v4521_v14, %v895_v27  ;;  %v4612_v52 = vsub.f32 %v4527_v19, %v895_v27  ;;  %v4615_v56 = vsub.f32 %v4519_v13, %v895_v27  ;;  %v4618_v2 = vsub.f32 %v4525_v17, %v895_v27 }
 0x179   : > { %v4621_v7 = vsub.f32 %v4537_v26, %v895_v27  ;;  %v4623_v1 = vsub.f32 %v716_v35, %v895_v27  ;;  %v4626_v5 = vsub.f32 %v4535_v25, %v895_v27  ;;  %v4629_v14 = vsub.f32 %v4541_v29, %v895_v27  ;;  %v4647_v25 = vpop.permute.xlu1 %1263  ;;  %v4649_v29 = vpop.permute.xlu0 %1071 }
 0x17a   : > { %5803 = vst [vmem:[#allocation11_spill] sm:$0xff] %v4615_v56  ;;  %v4631_v50 = vsub.f32 %v729_v45, %v895_v27  ;;  %v4633_v19 = vsub.f32 %v732_v51, %v895_v27  ;;  %v4635_v13 = vsub.f32 %v3604_v43, %v895_v27  ;;  %v4637_v54 = vsub.f32 %v3605_v49, %v895_v27 }
 0x17b   : > { %5804 = vst [vmem:[#allocation12_spill] sm:$0xff] %v4621_v7  ;;  %5805 = vst [vmem:[#allocation13_spill] sm:$0xff] %v4623_v1  ;;  %v4639_v17 = vsub.f32 %v745_v62, %v895_v27  ;;  %v4641_v26 = vsub.f32 %v748_v8, %v895_v27  ;;  %v4643_v35 = vsub.f32 %v3608_v61, %v895_v27 }
 0x17c   : > { %5806 = vst [vmem:[#allocation14_spill] sm:$0xff] %v4626_v5  ;;  %5807 = vst [vmem:[#allocation15_spill] sm:$0xff] %v4629_v14  ;;  %v4645_v55 = vsub.f32 %v3609_v4, %v895_v27  ;;  %v928_v45 = vmul.f32 %v4557_v28, %v4557_v28  ;;  %v929_v43 = vmul.f32 %v4560_v34, %v4560_v34 }
 0x17d   : > { %5808 = vst [vmem:[#allocation16_spill] sm:$0xff] %v4631_v50  ;;  %5809 = vst [vmem:[#allocation17_spill] sm:$0xff] %v4633_v19  ;;  %v4655_v49 = vpop.permute.xlu1 %1081  ;;  %v4657_v51 = vpop.permute.xlu0 %1076  ;;  %v930_v57 = vmul.f32 %v4563_v36, %v4563_v36  ;;  %v931_v59 = vmul.f32 %v4566_v37, %v4566_v37  ;;  %v932_v63 = vmul.f32 %v4569_v38, %v4569_v38 }
 0x17e   : > { %5810 = vst [vmem:[#allocation18_spill] sm:$0xff] %v4635_v13  ;;  %5811 = vst [vmem:[#allocation19_spill] sm:$0xff] %v4637_v54  ;;  %v960_v60 = vsel %vm824_vm0, %v928_v45, 0.0  ;;  %v961_v61 = vsel %vm824_vm0, %v929_v43, 0.0  ;;  %v933_v9 = vmul.f32 %v4572_v39, %v4572_v39  ;;  %v934_v12 = vmul.f32 %v4575_v42, %v4575_v42 }
 0x17f   : > { %5812 = vst [vmem:[#allocation20_spill] sm:$0xff] %v4639_v17  ;;  %5813 = vst [vmem:[#allocation21_spill] sm:$0xff] %v4641_v26  ;;  %v962_v62 = vadd.f32 %v961_v61, %v960_v60  ;;  %v963_v3 = vsel %vm824_vm0, %v930_v57, 0.0  ;;  %v965_v10 = vsel %vm824_vm0, %v931_v59, 0.0  ;;  %v967_v15 = vsel %vm824_vm0, %v932_v63, 0.0 }
 0x180   : > { %5814 = vst [vmem:[#allocation22_spill] sm:$0xff] %v4643_v35  ;;  %5815 = vst [vmem:[#allocation23_spill] sm:$0xff] %v4645_v55  ;;  %v935_v18 = vmul.f32 %v4578_v31, %v4578_v31  ;;  %v969_v20 = vsel %vm824_vm0, %v933_v9, 0.0  ;;  %v936_v24 = vmul.f32 %v4585_v30, %v4585_v30  ;;  %v971_v27 = vsel %vm824_vm0, %v934_v12, 0.0 }
 0x181   : > { %v964_v4 = vadd.f32 %v963_v3, %v962_v62  ;;  %v4668_v6 = vpop.permute.xlu1 %1273  ;;  %v4670_v8 = vpop.permute.xlu0 %1268  ;;  %v937_v43 = vmul.f32 %v4588_v32, %v4588_v32  ;;  %v938_v60 = vmul.f32 %v4591_v41, %v4591_v41 }
 0x182   : > { %v973_v57 = vsel %vm824_vm0, %v935_v18, 0.0  ;;  %v975_v61 = vsel %vm824_vm0, %v936_v24, 0.0 }
 0x183   : > { %v966_v11 = vadd.f32 %v965_v10, %v964_v4  ;;  %v939_v4 = vmul.f32 %v4594_v46, %v4594_v46  ;;  %v977_v9 = vsel %vm824_vm0, %v937_v43, 0.0  ;;  %v979_v12 = vsel %vm824_vm0, %v938_v60, 0.0 }
 0x185   : > { %v968_v16 = vadd.f32 %v967_v15, %v966_v11  ;;  %v4681_v22 = vpop.permute.xlu1 %1091  ;;  %v4683_v23 = vpop.permute.xlu0 %1086  ;;  %v940_v11 = vmul.f32 %v4597_v40, %v4597_v40  ;;  %v981_v18 = vsel %vm824_vm0, %v939_v4, 0.0 }
 0x187   : > { %v970_v21 = vadd.f32 %v969_v20, %v968_v16  ;;  %v941_v16 = vmul.f32 %v4600_v44, %v4600_v44 }
 0x189   : > { %v972_v45 = vadd.f32 %v971_v27, %v970_v21  ;;  %v4694_v63 = vpop.permute.xlu1 %1283  ;;  %v4696_v3 = vpop.permute.xlu0 %1278  ;;  %v942_v27 = vmul.f32 %v4603_v48, %v4603_v48 }
 0x18b   : > { %v974_v59 = vadd.f32 %v973_v57, %v972_v45  ;;  %v983_v45 = vsel %vm824_vm0, %v940_v11, 0.0  ;;  %v943_v57 = vmul.f32 %v4606_v53, %v4606_v53  ;;  %v945_v11 = vmul.f32 %v4612_v52, %v4612_v52 }
 0x18d   : > { %v976_v62 = vadd.f32 %v975_v61, %v974_v59  ;;  %v4707_v21 = vpop.permute.xlu1 %1101  ;;  %v4709_v24 = vpop.permute.xlu0 %1096  ;;  %v985_v59 = vsel %vm824_vm0, %v941_v16, 0.0  ;;  %v944_v61 = vmul.f32 %v4609_v58, %v4609_v58  ;;  %v946_v16 = vmul.f32 %v4615_v56, %v4615_v56 }
 0x18f   : > { %v978_v10 = vadd.f32 %v977_v9, %v976_v62  ;;  %v987_v62 = vsel %vm824_vm0, %v942_v27, 0.0  ;;  %v947_v27 = vmul.f32 %v4618_v2, %v4618_v2 }
 0x191   : > { %v980_v15 = vadd.f32 %v979_v12, %v978_v10  ;;  %v4720_v9 = vpop.permute.xlu1 %1293  ;;  %v4722_v10 = vpop.permute.xlu0 %1288  ;;  %v989_v12 = vsel %vm824_vm0, %v943_v57, 0.0  ;;  %v948_v57 = vmul.f32 %v4621_v7, %v4621_v7 }
 0x193   : > { %v982_v20 = vadd.f32 %v981_v18, %v980_v15  ;;  %v991_v18 = vsel %vm824_vm0, %v944_v61, 0.0  ;;  %v949_v61 = vmul.f32 %v4623_v1, %v4623_v1 }
 0x195   : > { %v984_v43 = vadd.f32 %v983_v45, %v982_v20  ;;  %v993_v45 = vsel %vm824_vm0, %v945_v11, 0.0  ;;  %v950_v11 = vmul.f32 %v4626_v5, %v4626_v5 }
 0x197   : > { %v986_v60 = vadd.f32 %v985_v59, %v984_v43  ;;  %v4733_v59 = vpop.permute.xlu1 %1111 }
 0x199   : > { %v988_v4 = vadd.f32 %v987_v62, %v986_v60  ;;  %v4735_v60 = vpop.permute.xlu0 %1106  ;;  %v995_v62 = vsel %vm824_vm0, %v946_v16, 0.0  ;;  %v951_v16 = vmul.f32 %v4629_v14, %v4629_v14 }
 0x19b   : > { %v990_v15 = vadd.f32 %v989_v12, %v988_v4  ;;  %v997_v12 = vsel %vm824_vm0, %v947_v27, 0.0  ;;  %v952_v27 = vmul.f32 %v4631_v50, %v4631_v50  ;;  %v3767_v50 = vld [vmem:[%s5764_s6 + $0x4] ss:$8 sps:$4 sm:$0xff]  }
 0x19c   : > { %1880 = vmatprep.mubr.bf16.mxu1 %v3767_v50 }
 0x19d   : > { %v992_v20 = vadd.f32 %v991_v18, %v990_v15  ;;  %v999_v18 = vsel %vm824_vm0, %v948_v57, 0.0  ;;  %v4748_v0 = vpop.permute.xlu0 %1298  ;;  %v953_v57 = vmul.f32 %v4633_v19, %v4633_v19 }
 0x19f   : > { %v994_v43 = vadd.f32 %v993_v45, %v992_v20  ;;  %v4746_v45 = vpop.permute.xlu1 %1303 }
 0x1a1   : > { %v996_v4 = vadd.f32 %v995_v62, %v994_v43  ;;  %v1001_v43 = vsel %vm824_vm0, %v949_v61, 0.0  ;;  %v4761_v7 = vpop.permute.xlu0 %1116  ;;  %v954_v61 = vmul.f32 %v4635_v13, %v4635_v13 }
 0x1a3   : > { %v998_v15 = vadd.f32 %v997_v12, %v996_v4  ;;  %v1003_v4 = vsel %vm824_vm0, %v950_v11, 0.0  ;;  %v4759_v5 = vpop.permute.xlu1 %1121  ;;  %v955_v11 = vmul.f32 %v4637_v54, %v4637_v54 }
 0x1a5   : > { %v1000_v20 = vadd.f32 %v999_v18, %v998_v15  ;;  %v1005_v15 = vsel %vm824_vm0, %v951_v16, 0.0  ;;  %v956_v16 = vmul.f32 %v4639_v17, %v4639_v17 }
 0x1a7   : > { %v1002_v62 = vadd.f32 %v1001_v43, %v1000_v20  ;;  %v1007_v20 = vsel %vm824_vm0, %v952_v27, 0.0  ;;  %v4775_v13 = vpop.permute.xlu1 %1313  ;;  %v4777_v27 = vpop.permute.xlu0 %1308 }
 0x1a9   : > { %v1004_v12 = vadd.f32 %v1003_v4, %v1002_v62  ;;  %v1009_v62 = vsel %vm824_vm0, %v953_v57, 0.0  ;;  %v1013_v57 = vsel %vm824_vm0, %v955_v11, 0.0 }
 0x1ab   : > { %v1006_v18 = vadd.f32 %v1005_v15, %v1004_v12  ;;  %v1011_v12 = vsel %vm824_vm0, %v954_v61, 0.0  ;;  %v1015_v61 = vsel %vm824_vm0, %v956_v16, 0.0  ;;  %v4788_v54 = vpop.permute.xlu1 %1131  ;;  %v4790_v19 = vpop.permute.xlu0 %1126 }
 0x1ad   : > { %v1008_v43 = vadd.f32 %v1007_v20, %v1006_v18  ;;  %v957_v18 = vmul.f32 %v4641_v26, %v4641_v26 }
 0x1af   : > { %v1010_v4 = vadd.f32 %v1009_v62, %v1008_v43  ;;  %v958_v43 = vmul.f32 %v4643_v35, %v4643_v35  ;;  %v4794_v26 = vpop.permute.xlu1 %1323  ;;  %v4796_v16 = vpop.permute.xlu0 %1318 }
 0x1b1   : > { %v1012_v15 = vadd.f32 %v1011_v12, %v1010_v4  ;;  %v959_v4 = vmul.f32 %v4645_v55, %v4645_v55  ;;  %v1017_v12 = vsel %vm824_vm0, %v957_v18, 0.0  ;;  %v1019_v11 = vsel %vm824_vm0, %v958_v43, 0.0 }
 0x1b3   : > { %v1014_v20 = vadd.f32 %v1013_v57, %v1012_v15  ;;  %v1021_v50 = vsel %vm824_vm0, %v959_v4, 0.0  ;;  %v4800_v18 = vpop.permute.xlu0 %1136 }
 0x1b5   : > { %v1016_v62 = vadd.f32 %v1015_v61, %v1014_v20  ;;  %v4798_v61 = vpop.permute.xlu1 %1141 }
 0x1b7   : > { %v1018_v17 = vadd.f32 %v1017_v12, %v1016_v62  ;;  %v4804_v14 = vpop.permute.xlu0 %1328 }
 0x1b8   : > { %5817 = vst [vmem:[#allocation25_spill] sm:$0xff] %v4804_v14 }
 0x1b9   : > { %v1020_v15 = vadd.f32 %v1019_v11, %v1018_v17  ;;  %v4802_v55 = vpop.permute.xlu1 %1333 }
 0x1ba   : > { %5816 = vst [vmem:[#allocation24_spill] sm:$0xff] %v4802_v55 }
 0x1bb   : > { %v1022_v57 = vadd.f32 %v1021_v50, %v1020_v15  ;;  %v4808_v4 = vpop.permute.xlu0 %1146 }
 0x1bd   : > { %v1023_v35 = vrot.slane %v1022_v57, 4  ;;  %v4806_v43 = vpop.permute.xlu1 %1151 }
 0x1bf   : > { %v1024_v20 = vadd.f32 %v1023_v35, %v1022_v57  ;;  %v4812_v35 = vpop.permute.xlu0 %1338 }
 0x1c1   : > { %v1025_v62 = vrot.slane %v1024_v20, 2  ;;  %v4810_v50 = vpop.permute.xlu1 %1343 }
 0x1c3   : > { %v1026_v12 = vadd.f32 %v1025_v62, %v1024_v20  ;;  %v4816_v20 = vpop.permute.xlu0 %1156 }
 0x1c4   : > { %5818 = vst [vmem:[#allocation26_spill] sm:$0xff] %v4816_v20 }
 0x1c5   : > { %v1027_v17 = vrot.slane %v1026_v12, 1  ;;  %v4814_v1 = vpop.permute.xlu1 %1161 }
 0x1c7   : > { %v1028_v11 = vadd.f32 %v1027_v17, %v1026_v12  ;;  %v4820_v55 = vpop.permute.xlu0 %1348 }
 0x1c8   : > { %5820 = vst [vmem:[#allocation28_spill] sm:$0xff] %v4820_v55 }
 0x1c9   : > { %v1029_v15 = vmul.f32 0.00390625, %v1028_v11  ;;  %v4818_v62 = vpop.permute.xlu1 %1353 }
 0x1ca   : > { %5819 = vst [vmem:[#allocation27_spill] sm:$0xff] %v4818_v62 }
 0x1cb   : > { %v1030_v57 = vadd.f32 1e-06, %v1029_v15  ;;  %v4826_v12 = vpop.permute.xlu0 %1166 }
 0x1cc   : > { %5822 = vst [vmem:[#allocation30_spill] sm:$0xff] %v4826_v12 }
 0x1cd   : > { %3957 = vrsqrt.f32 %v1030_v57  ;;  %v4824_v56 = vpop.permute.xlu1 %1171 }
 0x1ce   : > { %5821 = vst [vmem:[#allocation29_spill] sm:$0xff] %v4824_v56 }
 0x1cf   : > { %v4841_v12 = vpop.permute.xlu0 %1358 }
 0x1d0   : > { %5823 = vst [vmem:[#allocation31_spill] sm:$0xff] %v4841_v12 }
 0x1d1   : > { %v4837_v55 = vpop.permute.xlu1 %1363 }
 0x1d7   : > { %v4822_v14 = vpop.eup %3957 }
 0x1d8   : > { %v1032_v17 = vmul.f32 %v4822_v14, %v4557_v28  ;;  %v1033_v11 = vmul.f32 %v4822_v14, %v4560_v34  ;;  %v1034_v15 = vmul.f32 %v4822_v14, %v4563_v36  ;;  %v1035_v57 = vmul.f32 %v4822_v14, %v4566_v37 }
 0x1d9   : > { %v1036_v56 = vmul.f32 %v4822_v14, %v4569_v38  ;;  %v1037_v28 = vmul.f32 %v4822_v14, %v4572_v39  ;;  %v1039_v38 = vmul.f32 %v4822_v14, %v4578_v31  ;;  %v1041_v31 = vmul.f32 %v4822_v14, %v4588_v32 }
 0x1da   : > { %v1224_v62 = vmul.f32 %v4582_v47, %v1032_v17  ;;  %v1226_v34 = vmul.f32 %v4657_v51, %v1034_v15  ;;  %v1227_v20 = vmul.f32 %v4655_v49, %v1035_v57  ;;  %v1225_v36 = vmul.f32 %v4649_v29, %v1033_v11  ;;  %v4858_v29 = vpop.permute.xlu1 %1181 }
 0x1db   : > { %v1038_v17 = vmul.f32 %v4822_v14, %v4575_v42  ;;  %v1228_v12 = vmul.f32 %v4683_v23, %v1036_v56  ;;  %v1229_v39 = vmul.f32 %v4681_v22, %v1037_v28  ;;  %v1040_v42 = vmul.f32 %v4822_v14, %v4585_v30 }
 0x1dc   : > { %v1416_v37 = vadd.f32 %v4580_v33, %v1224_v62  ;;  %v1417_v47 = vadd.f32 %v4647_v25, %v1225_v36  ;;  %v1418_v51 = vadd.f32 %v4670_v8, %v1226_v34  ;;  %v1419_v49 = vadd.f32 %v4668_v6, %v1227_v20  ;;  %v4860_v33 = vpop.permute.xlu0 %1176 }
 0x1dd   : > { %v1230_v56 = vmul.f32 %v4709_v24, %v1038_v17  ;;  %v5824_v25 = vmov 0   ;;  %v1231_v8 = vmul.f32 %v4707_v21, %v1039_v38  ;;  %v1420_v22 = vadd.f32 %v4696_v3, %v1228_v12 }
 0x1de   : > { %v1448_v15 = vpack.c.bf16 %v1417_v47, %v1416_v37  ;;  %v1449_v6 = vpack.c.bf16 %v1419_v49, %v1418_v51  ;;  %v1421_v23 = vadd.f32 %v4694_v63, %v1229_v39  ;;  %v4871_v20 = vpop.permute.xlu1 %1373  ;;  %v1042_v30 = vmul.f32 %v4822_v14, %v4591_v41  ;;  %v5826_v39 = vld [vmem:[#allocation25_spill] sm:$0xff]  ;;  %v5827_v51 = vld [vmem:[#allocation24_spill] sm:$0xff] }
 0x1df   : > { %v1043_v32 = vmul.f32 %v4822_v14, %v4594_v46  ;;  %v1232_v24 = vmul.f32 %v4735_v60, %v1040_v42  ;;  %v1233_v3 = vmul.f32 %v4733_v59, %v1041_v31  ;;  %v1422_v21 = vadd.f32 %v4722_v10, %v1230_v56  ;;  %v5828_v42 = vld [vmem:[#allocation13_spill] sm:$0xff]  ;;  %v5829_v56 = vld [vmem:[#allocation26_spill] sm:$0xff] }
 0x1e0   : > { %1849 = vmatpush1.bf16.msra.mxu1 %v1448_v15  ;;  %v4878_v62 = vpop.permute.xlu0 %1368  ;;  %v1423_v63 = vadd.f32 %v4720_v9, %v1231_v8  ;;  %v1450_v12 = vpack.c.bf16 %v1421_v23, %v1420_v22  ;;  %v1044_v41 = vmul.f32 %v4822_v14, %v4597_v40  ;;  %v1045_v46 = vmul.f32 %v4822_v14, %v4600_v44 }
 0x1e1   : > { %1850 = vmatprep.subr.bf16.mxu1 %v5824_v25  ;;  %v1234_v60 = vmul.f32 %v4761_v7, %v1042_v30  ;;  %v1235_v11 = vmul.f32 %v4759_v5, %v1043_v32  ;;  %v1424_v59 = vadd.f32 %v4748_v0, %v1232_v24  ;;  %v1425_v10 = vadd.f32 %v4746_v45, %v1233_v3  ;;  %v5831_v32 = vld [vmem:[#allocation15_spill] sm:$0xff]  ;;  %v5832_v3 = vld [vmem:[#allocation29_spill] sm:$0xff] }
 0x1e2   : > { %v1451_v57 = vpack.c.bf16 %v1423_v63, %v1422_v21  ;;  %v4893_v9 = vpop.permute.xlu1 %1191  ;;  %v1046_v40 = vmul.f32 %v4822_v14, %v4603_v48  ;;  %v1047_v44 = vmul.f32 %v4822_v14, %v4606_v53  ;;  %v1236_v7 = vmul.f32 %v4790_v19, %v1044_v41 }
 0x1e3   : > { %v1237_v0 = vmul.f32 %v4788_v54, %v1045_v46  ;;  %v1426_v5 = vadd.f32 %v4777_v27, %v1234_v60  ;;  %v1427_v45 = vadd.f32 %v4775_v13, %v1235_v11  ;;  %v1452_v34 = vpack.c.bf16 %v1425_v10, %v1424_v59  ;;  %v5835_v46 = vld [vmem:[#allocation30_spill] sm:$0xff]  ;;  %v5837_v10 = vld [vmem:[#allocation17_spill] sm:$0xff] }
 0x1e4   : > { %1851 = vmatpush1.bf16.msra.mxu1 %v1449_v6  ;;  %v4895_v28 = vpop.permute.xlu0 %1186  ;;  %v1048_v48 = vmul.f32 %v4822_v14, %v4609_v58  ;;  %v1049_v53 = vmul.f32 %v4822_v14, %v4612_v52  ;;  %v1238_v19 = vmul.f32 %v4800_v18, %v1046_v40  ;;  %v1239_v54 = vmul.f32 %v4798_v61, %v1047_v44  ;;  %v5825_v18 = vld [vmem:[#allocation11_spill] sm:$0xff]  ;;  %v5830_v6 = vld [vmem:[#allocation12_spill] sm:$0xff]  ;;  %v5836_v11 = vld [vmem:[#allocation14_spill] sm:$0xff] }
 0x1e5   : > { %1852 = vmatprep.subr.bf16.mxu1 %v5824_v25  ;;  %v1428_v13 = vadd.f32 %v4796_v16, %v1236_v7  ;;  %v1429_v27 = vadd.f32 %v4794_v26, %v1237_v0  ;;  %v1453_v47 = vpack.c.bf16 %v1427_v45, %v1426_v5  ;;  %v1051_v58 = vmul.f32 %v4822_v14, %v4618_v2  ;;  %v5838_v0 = vld [vmem:[#allocation31_spill] sm:$0xff] }
 0x1e6   : > { %v4906_v36 = vpop.permute.xlu1 %1383  ;;  %v1240_v17 = vmul.f32 %v4808_v4, %v1048_v48  ;;  %v1241_v52 = vmul.f32 %v4806_v43, %v1049_v53  ;;  %v1050_v38 = vmul.f32 %v4822_v14, %v5825_v18  ;;  %v1430_v61 = vadd.f32 %v5826_v39, %v1238_v19 }
 0x1e7   : > { %v1431_v16 = vadd.f32 %v5827_v51, %v1239_v54  ;;  %v1454_v15 = vpack.c.bf16 %v1429_v27, %v1428_v13  ;;  %v1053_v2 = vmul.f32 %v4822_v14, %v5828_v42  ;;  %v1243_v31 = vmul.f32 %v4814_v1, %v1051_v58  ;;  %v5834_v1 = vld [vmem:[#allocation27_spill] sm:$0xff]  ;;  %v5841_v58 = vld [vmem:[#allocation18_spill] sm:$0xff] }
 0x1e8   : > { %1853 = vmatpush1.bf16.msra.mxu1 %v1450_v12  ;;  %v4913_v37 = vpop.permute.xlu0 %1378  ;;  %v1432_v4 = vadd.f32 %v4812_v35, %v1240_v17  ;;  %v1433_v43 = vadd.f32 %v4810_v50, %v1241_v52  ;;  %v1242_v8 = vmul.f32 %v5829_v56, %v1050_v38  ;;  %v1052_v23 = vmul.f32 %v4822_v14, %v5830_v6  ;;  %v5833_v50 = vld [vmem:[#allocation28_spill] sm:$0xff]  ;;  %v5840_v54 = vld [vmem:[#allocation19_spill] sm:$0xff]  ;;  %v5842_v52 = vld [vmem:[#allocation21_spill] sm:$0xff] }
 0x1e9   : > { %1854 = vmatprep.subr.bf16.mxu1 %v5824_v25  ;;  %v1455_v22 = vpack.c.bf16 %v1431_v16, %v1430_v61  ;;  %v1055_v24 = vmul.f32 %v4822_v14, %v5831_v32  ;;  %v1245_v21 = vmul.f32 %v5832_v3, %v1053_v2  ;;  %v1435_v41 = vadd.f32 %v5834_v1, %v1243_v31  ;;  %v5843_v16 = vld [vmem:[#allocation20_spill] sm:$0xff]  ;;  %v5844_v2 = vld [vmem:[#allocation23_spill] sm:$0xff]  ;;  %v5845_v31 = vld [vmem:[#allocation22_spill] sm:$0xff] }
 0x1ea   : > { %v1202_v26 = vpop.permute.xlu1 %1201  ;;  %v1456_v35 = vpack.c.bf16 %v1433_v43, %v1432_v4  ;;  %v1434_v12 = vadd.f32 %v5833_v50, %v1242_v8  ;;  %v1244_v60 = vmul.f32 %v5835_v46, %v1052_v23  ;;  %v1054_v59 = vmul.f32 %v4822_v14, %v5836_v11  ;;  %v3768_v50 = vld [vmem:[%s5764_s6 + $0x14] ss:$8 sps:$4 sm:$0xff]   ;;  %v3771_v1 = vld [vmem:[%s5764_s6 + $0x24] ss:$8 sps:$4 sm:$0xff]  }
 0x1eb   : > { %v1247_v40 = vmul.f32 %v4858_v29, %v1055_v24  ;;  %v1437_v44 = vadd.f32 %v4837_v55, %v1245_v21  ;;  %v1059_v13 = vmul.f32 %v4822_v14, %v5840_v54  ;;  %v1058_v17 = vmul.f32 %v4822_v14, %v5841_v58  ;;  %v3774_v46 = vld [vmem:[%s5764_s6 + $0x34] ss:$8 sps:$4 sm:$0xff]   ;;  %v3777_v11 = vld [vmem:[%s5764_s6 + $0x44] ss:$8 sps:$4 sm:$0xff]  }
 0x1ec   : > { %1855 = vmatpush1.bf16.msra.mxu1 %v1451_v57  ;;  %v1197_v49 = vpop.permute.xlu0 %1196  ;;  %v1057_v57 = vmul.f32 %v4822_v14, %v5837_v10  ;;  %v1457_v7 = vpack.c.bf16 %v1435_v41, %v1434_v12  ;;  %v1436_v5 = vadd.f32 %v5838_v0, %v1244_v60  ;;  %v1246_v45 = vmul.f32 %v4860_v33, %v1054_v59  ;;  %v3770_v12 = vld [vmem:[%s5764_s6 + $0x10] ss:$8 sps:$4 sm:$0xff]   ;;  %v3773_v41 = vld [vmem:[%s5764_s6 + $0x20] ss:$8 sps:$4 sm:$0xff]   ;;  %v3780_v10 = vld [vmem:[%s5764_s6 + $0x54] ss:$8 sps:$4 sm:$0xff]  }
 0x1ed   : > { %1856 = vmatprep.subr.bf16.mxu1 %v5824_v25  ;;  %v1439_v55 = vadd.f32 %v4871_v20, %v1247_v40  ;;  %v1061_v18 = vmul.f32 %v4822_v14, %v5842_v52  ;;  %v1251_v38 = vmul.f32 %v1202_v26, %v1059_v13  ;;  %v1063_v4 = vmul.f32 %v4822_v14, %v5844_v2  ;;  %v3776_v60 = vld [vmem:[%s5764_s6 + $0x30] ss:$8 sps:$4 sm:$0xff]   ;;  %v3779_v59 = vld [vmem:[%s5764_s6 + $0x40] ss:$8 sps:$4 sm:$0xff]   ;;  %v3783_v40 = vld [vmem:[%s5764_s6 + $0x64] ss:$8 sps:$4 sm:$0xff]  }
 0x1ee   : > { %v1394_v30 = vpop.permute.xlu1 %1393  ;;  %v1249_v29 = vmul.f32 %v4893_v9, %v1057_v57  ;;  %v1458_v27 = vpack.c.bf16 %v1437_v44, %v1436_v5  ;;  %v1062_v56 = vmul.f32 %v4822_v14, %v5845_v31  ;;  %v3782_v57 = vld [vmem:[%s5764_s6 + $0x50] ss:$8 sps:$4 sm:$0xff]   ;;  %v3785_v44 = vld [vmem:[%s5764_s6 + $0x60] ss:$8 sps:$4 sm:$0xff]   ;;  %v3789_v5 = vld [vmem:[%s5764_s6 + $0x84] ss:$8 sps:$4 sm:$0xff]  }
 0x1ef   : > { %v1443_v42 = vadd.f32 %v1394_v30, %v1251_v38  ;;  %v3788_v0 = vld [vmem:[%s5764_s6 + $0x70] ss:$8 sps:$4 sm:$0xff]   ;;  %v3798_v54 = vld [vmem:[%s5764_s6 + $0xb4] ss:$8 sps:$4 sm:$0xff]   ;;  %v3807_v58 = vld [vmem:[%s5764_s6 + $0xe4] ss:$8 sps:$4 sm:$0xff]  }
 0x1f0   : > { %1857 = vmatpush1.bf16.msra.mxu1 %v1452_v34  ;;  %v1389_v63 = vpop.permute.xlu0 %1388  ;;  %v5839_v34 = vld [vmem:[#allocation16_spill] sm:$0xff]  ;;  %v1441_v9 = vadd.f32 %v4906_v36, %v1249_v29  ;;  %v3800_v13 = vld [vmem:[%s5764_s6 + $0xb0] ss:$8 sps:$4 sm:$0xff]   ;;  %v3810_v52 = vld [vmem:[%s5764_s6 + $0xf4] ss:$8 sps:$4 sm:$0xff]  }
 0x1f1   : > { %1858 = vmatprep.subr.bf16.mxu1 %v5824_v25  ;;  %v1056_v48 = vmul.f32 %v4822_v14, %v5839_v34  ;;  %v3792_v34 = vld [vmem:[%s5764_s6 + $0x94] ss:$8 sps:$4 sm:$0xff]   ;;  %v3801_v29 = vld [vmem:[%s5764_s6 + $0xc4] ss:$8 sps:$4 sm:$0xff]   ;;  %v3830_v2 = vld [vmem:[%s5764_s6 + $0x150] ss:$8 sps:$4 sm:$0xff]  }
 0x1f2   : > { %v1212_v53 = vpop.permute.xlu1 %1211  ;;  %v3813_v38 = vld [vmem:[%s5764_s6 + $0x104] ss:$8 sps:$4 sm:$0xff]  }
 0x1f3   : > { %v1248_v33 = vmul.f32 %v4895_v28, %v1056_v48  ;;  %v1060_v28 = vmul.f32 %v4822_v14, %v5843_v16  ;;  %v3794_v48 = vld [vmem:[%s5764_s6 + $0x90] ss:$8 sps:$4 sm:$0xff]  }
 0x1f4   : > { %1859 = vmatpush1.bf16.msra.mxu1 %v1453_v47  ;;  %v1207_v19 = vpop.permute.xlu0 %1206  ;;  %v1438_v47 = vadd.f32 %v4878_v62, %v1246_v45  ;;  %v1250_v62 = vmul.f32 %v1197_v49, %v1058_v17  ;;  %v3791_v45 = vld [vmem:[%s5764_s6 + $0x80] ss:$8 sps:$4 sm:$0xff]   ;;  %v3824_v16 = vld [vmem:[%s5764_s6 + $0x130] ss:$8 sps:$4 sm:$0xff]  }
 0x1f5   : > { %1860 = vmatprep.subr.bf16.mxu1 %v5824_v25  ;;  %v1440_v51 = vadd.f32 %v4913_v37, %v1248_v33  ;;  %v1252_v43 = vmul.f32 %v1207_v19, %v1060_v28  ;;  %v3797_v19 = vld [vmem:[%s5764_s6 + $0xa0] ss:$8 sps:$4 sm:$0xff]   ;;  %v3806_v33 = vld [vmem:[%s5764_s6 + $0xd0] ss:$8 sps:$4 sm:$0xff]   ;;  %v3825_v28 = vld [vmem:[%s5764_s6 + $0x144] ss:$8 sps:$4 sm:$0xff]  }
 0x1f6   : > { %v1404_v39 = vpop.permute.xlu1 %1403  ;;  %v1459_v20 = vpack.c.bf16 %v1439_v55, %v1438_v47  ;;  %v1442_v36 = vadd.f32 %v1389_v63, %v1250_v62  ;;  %v3765_v63 = vld [vmem:[%s5764_s6] ss:$8 sps:$4 sm:$0xff]   ;;  %v4069_v55 = vmov 0.0   ;;  %v3804_v47 = vld [vmem:[%s5764_s6 + $0xd4] ss:$8 sps:$4 sm:$0xff]  }
 0x1f7   : > { %v1460_v26 = vpack.c.bf16 %v1441_v9, %v1440_v51  ;;  %3610 = vmatprep.subr.bf16.mxu0 %v4069_v55  ;;  %v3809_v17 = vld [vmem:[%s5764_s6 + $0xe0] ss:$8 sps:$4 sm:$0xff]   ;;  %v3816_v9 = vld [vmem:[%s5764_s6 + $0x114] ss:$8 sps:$4 sm:$0xff]   ;;  %3626 = vmatprep.mubr.msk.bf16.mxu0 %vm4070_vm1, %v4069_v55 }
 0x1f8   : > { %1861 = vmatpush1.bf16.msra.mxu1 %v1454_v15  ;;  %v1399_v61 = vpop.permute.xlu0 %1398  ;;  %v1253_v15 = vmul.f32 %v1212_v53, %v1061_v18  ;;  %v1461_v6 = vpack.c.bf16 %v1443_v42, %v1442_v36  ;;  %v3795_v53 = vld [vmem:[%s5764_s6 + $0xa4] ss:$8 sps:$4 sm:$0xff]   ;;  %v3812_v18 = vld [vmem:[%s5764_s6 + $0xf0] ss:$8 sps:$4 sm:$0xff]   ;;  %v3821_v51 = vld [vmem:[%s5764_s6 + $0x120] ss:$8 sps:$4 sm:$0xff]  }
 0x1f9   : > { %1862 = vmatprep.subr.bf16.mxu1 %v5824_v25  ;;  %v1444_v23 = vadd.f32 %v1399_v61, %v1252_v43  ;;  %v3818_v61 = vld [vmem:[%s5764_s6 + $0x110] ss:$8 sps:$4 sm:$0xff]   ;;  %v3822_v62 = vld [vmem:[%s5764_s6 + $0x134] ss:$8 sps:$4 sm:$0xff]  }
 0x1fa   : > { %v1222_v8 = vpop.permute.xlu1 %1221  ;;  %v1445_v49 = vadd.f32 %v1404_v39, %v1253_v15  ;;  %v3815_v39 = vld [vmem:[%s5764_s6 + $0x100] ss:$8 sps:$4 sm:$0xff]   ;;  %v3828_v42 = vld [vmem:[%s5764_s6 + $0x154] ss:$8 sps:$4 sm:$0xff]   ;;  %v3836_v43 = vld [vmem:[%s5764_s6 + $0x170] ss:$8 sps:$4 sm:$0xff]  }
 0x1fb   : > { %v3827_v15 = vld [vmem:[%s5764_s6 + $0x140] ss:$8 sps:$4 sm:$0xff]   ;;  %v3834_v36 = vld [vmem:[%s5764_s6 + $0x174] ss:$8 sps:$4 sm:$0xff]  }
 0x1fc   : > { %1863 = vmatpush1.bf16.msra.mxu1 %v1455_v22  ;;  %v1217_v37 = vpop.permute.xlu0 %1216  ;;  %v1255_v22 = vmul.f32 %v1222_v8, %v1063_v4  ;;  %v1462_v21 = vpack.c.bf16 %v1445_v49, %v1444_v23  ;;  %v3831_v4 = vld [vmem:[%s5764_s6 + $0x164] ss:$8 sps:$4 sm:$0xff]  }
 0x1fd   : > { %1864 = vmatprep.subr.bf16.mxu1 %v5824_v25  ;;  %v1254_v30 = vmul.f32 %v1217_v37, %v1062_v56  ;;  %v2137_v56 = vld [vmem:[%s5759_s1] sm:$0xff]  ;;  %v2138_v8 = vld [vmem:[%s5759_s1 + $0x8] sm:$0xff] }
 0x1fe   : > { %v1414_v32 = vpop.permute.xlu1 %1413 }
 0x1ff   : > { %v1447_v3 = vadd.f32 %v1414_v32, %v1255_v22 }
 0x200   : > { %1865 = vmatpush1.bf16.msra.mxu1 %v1456_v35  ;;  %v1409_v24 = vpop.permute.xlu0 %1408 }
 0x201   : > { %1866 = vmatprep.subr.bf16.mxu1 %v5824_v25  ;;  %v1446_v35 = vadd.f32 %v1409_v24, %v1254_v30  ;;  %v2139_v24 = vld [vmem:[%s5759_s1 + $0x10] sm:$0xff] }
 0x203   : > { %v1463_v14 = vpack.c.bf16 %v1447_v3, %v1446_v35  ;;  %v2140_v3 = vld [vmem:[%s5759_s1 + $0x18] sm:$0xff] }
 0x204   : > { %1867 = vmatpush1.bf16.msra.mxu1 %v1457_v7  ;;  %v3786_v7 = vld [vmem:[%s5764_s6 + $0x74] ss:$8 sps:$4 sm:$0xff]  }
 0x205   : > { %1868 = vmatprep.subr.bf16.mxu1 %v5824_v25 }
 0x208   : > { %1869 = vmatpush1.bf16.msra.mxu1 %v1458_v27  ;;  %v3803_v27 = vld [vmem:[%s5764_s6 + $0xc0] ss:$8 sps:$4 sm:$0xff]  }
 0x209   : > { %1870 = vmatprep.subr.bf16.mxu1 %v5824_v25 }
 0x20c   : > { %1871 = vmatpush1.bf16.msra.mxu1 %v1459_v20  ;;  %v3819_v20 = vld [vmem:[%s5764_s6 + $0x124] ss:$8 sps:$4 sm:$0xff]  }
 0x20d   : > { %1872 = vmatprep.subr.bf16.mxu1 %v5824_v25 }
 0x210   : > { %1873 = vmatpush1.bf16.msra.mxu1 %v1460_v26  ;;  %v3833_v26 = vld [vmem:[%s5764_s6 + $0x160] ss:$8 sps:$4 sm:$0xff]  }
 0x211   : > { %1874 = vmatprep.subr.bf16.mxu1 %v5824_v25 }
 0x214   : > { %1875 = vmatpush1.bf16.msra.mxu1 %v1461_v6 }
 0x215   : > { %1876 = vmatprep.subr.bf16.mxu1 %v5824_v25 }
 0x218   : > { %1877 = vmatpush1.bf16.msra.mxu1 %v1462_v21 }
 0x219   : > { %1878 = vmatprep.subr.bf16.mxu1 %v5824_v25 }
 0x21c   : > { %1879 = vmatpush1.bf16.msra.mxu1 %v1463_v14 }
 0x21f   : > { %1881 = vmatmul.mubr.bf16.vlgmr.msra.gmra.mrb[0].mxu1 %v3765_v63 }
 0x220   : > { %1888 = vmatprep.mubr.bf16.mxu1 %v3768_v50 }
 0x227   : > { %1889 = vmatmul.mubr.bf16.gmra.mrb[4].mxu1 %v3770_v12 }
 0x228   : > { %1896 = vmatprep.mubr.bf16.mxu1 %v3771_v1 }
 0x22f   : > { %1897 = vmatmul.mubr.bf16.gmra.mrb[8].mxu1 %v3773_v41  ;;  %v2141_v41 = vld [vmem:[%s5759_s1 + $0x20] sm:$0xff] }
 0x230   : > { %1904 = vmatprep.mubr.bf16.mxu1 %v3774_v46  ;;  %v2142_v46 = vld [vmem:[%s5759_s1 + $0x28] sm:$0xff] }
 0x237   : > { %1905 = vmatmul.mubr.bf16.gmra.mrb[12].mxu1 %v3776_v60 }
 0x238   : > { %1912 = vmatprep.mubr.bf16.mxu1 %v3777_v11 }
 0x23f   : > { %1913 = vmatmul.mubr.bf16.gmra.mrb[16].mxu1 %v3779_v59 }
 0x240   : > { %1920 = vmatprep.mubr.bf16.mxu1 %v3780_v10 }
 0x247   : > { %1921 = vmatmul.mubr.bf16.gmra.mrb[20].mxu1 %v3782_v57 }
 0x248   : > { %1928 = vmatprep.mubr.bf16.mxu1 %v3783_v40 }
 0x24f   : > { %1929 = vmatmul.mubr.bf16.gmra.mrb[24].mxu1 %v3785_v44 }
 0x250   : > { %1936 = vmatprep.mubr.bf16.mxu1 %v3786_v7  ;;  %v2143_v7 = vld [vmem:[%s5759_s1 + $0x30] sm:$0xff] }
 0x257   : > { %1937 = vmatmul.mubr.bf16.gmra.mrb[28].mxu1 %v3788_v0  ;;  %v2144_v0 = vld [vmem:[%s5759_s1 + $0x38] sm:$0xff] }
 0x258   : > { %1944 = vmatprep.mubr.bf16.mxu1 %v3789_v5 }
 0x25f   : > { %1945 = vmatmul.mubr.bf16.gmra.mrb[32].mxu1 %v3791_v45 }
 0x260   : > { %1952 = vmatprep.mubr.bf16.mxu1 %v3792_v34 }
 0x267   : > { %1953 = vmatmul.mubr.bf16.gmra.mrb[36].mxu1 %v3794_v48 }
 0x268   : > { %1960 = vmatprep.mubr.bf16.mxu1 %v3795_v53 }
 0x26f   : > { %1961 = vmatmul.mubr.bf16.gmra.mrb[40].mxu1 %v3797_v19 }
 0x270   : > { %1968 = vmatprep.mubr.bf16.mxu1 %v3798_v54 }
 0x277   : > { %1969 = vmatmul.mubr.bf16.gmra.mrb[44].mxu1 %v3800_v13  ;;  %v2145_v13 = vld [vmem:[%s5759_s1 + $0x40] sm:$0xff] }
 0x278   : > { %1976 = vmatprep.mubr.bf16.mxu1 %v3801_v29  ;;  %v2146_v29 = vld [vmem:[%s5759_s1 + $0x48] sm:$0xff] }
 0x27f   : > { %1977 = vmatmul.mubr.bf16.gmra.mrb[48].mxu1 %v3803_v27 }
 0x280   : > { %1984 = vmatprep.mubr.bf16.mxu1 %v3804_v47 }
 0x287   : > { %1985 = vmatmul.mubr.bf16.gmra.mrb[52].mxu1 %v3806_v33 }
 0x288   : > { %1992 = vmatprep.mubr.bf16.mxu1 %v3807_v58 }
 0x28f   : > { %1993 = vmatmul.mubr.bf16.gmra.mrb[56].mxu1 %v3809_v17 }
 0x290   : > { %2000 = vmatprep.mubr.bf16.mxu1 %v3810_v52 }
 0x297   : > { %2001 = vmatmul.mubr.bf16.gmra.mrb[60].mxu1 %v3812_v18 }
 0x298   : > { %2008 = vmatprep.mubr.bf16.mxu1 %v3813_v38  ;;  %v2147_v38 = vld [vmem:[%s5759_s1 + $0x50] sm:$0xff] }
 0x29f   : > { %2009 = vmatmul.mubr.bf16.gmra.mrb[64].mxu1 %v3815_v39  ;;  %v2148_v39 = vld [vmem:[%s5759_s1 + $0x58] sm:$0xff] }
 0x2a0   : > { %2016 = vmatprep.mubr.bf16.mxu1 %v3816_v9 }
 0x2a7   : > { %2017 = vmatmul.mubr.bf16.gmra.mrb[68].mxu1 %v3818_v61 }
 0x2a8   : > { %2024 = vmatprep.mubr.bf16.mxu1 %v3819_v20 }
 0x2af   : > { %2025 = vmatmul.mubr.bf16.gmra.mrb[72].mxu1 %v3821_v51 }
 0x2b0   : > { %2032 = vmatprep.mubr.bf16.mxu1 %v3822_v62 }
 0x2b7   : > { %2033 = vmatmul.mubr.bf16.gmra.mrb[76].mxu1 %v3824_v16 }
 0x2b8   : > { %2040 = vmatprep.mubr.bf16.mxu1 %v3825_v28 }
 0x2bf   : > { %2041 = vmatmul.mubr.bf16.gmra.mrb[80].mxu1 %v3827_v15  ;;  %v2149_v15 = vld [vmem:[%s5759_s1 + $0x60] sm:$0xff] }
 0x2c0   : > { %2048 = vmatprep.mubr.bf16.mxu1 %v3828_v42  ;;  %v2150_v42 = vld [vmem:[%s5759_s1 + $0x68] sm:$0xff] }
 0x2c7   : > { %2049 = vmatmul.mubr.bf16.gmra.mrb[84].mxu1 %v3830_v2 }
 0x2c8   : > { %2056 = vmatprep.mubr.bf16.mxu1 %v3831_v4 }
 0x2cf   : > { %2057 = vmatmul.mubr.bf16.gmra.mrb[88].mxu1 %v3833_v26 }
 0x2d0   : > { %2064 = vmatprep.mubr.bf16.mxu1 %v3834_v36 }
 0x2d7   : > { %2065 = vmatmul.mubr.bf16.gmra.mrb[92].mxu1 %v3836_v43 }
 0x2f2   : > { %v1882_v31 = vpop.f32.mrb[0].mxu1 }
 0x2f3   : > { %v1884_v37 = vpop.f32.mrb[1].mxu1  ;;  %v2169_v22 = vadd.f32 %v2137_v56, %v1882_v31 }
 0x2f4   : > { %v1885_v49 = vpop.f32.mrb[2].mxu1  ;;  %v2152_v37 = vld [vmem:[%s5759_s1 + $0x78] sm:$0xff] }
 0x2f5   : > { %v2170_v6 = vadd.f32 %v2138_v8, %v1885_v49  ;;  %v1887_v23 = vpop.f32.mrb[3].mxu1  ;;  %v2151_v8 = vld [vmem:[%s5759_s1 + $0x70] sm:$0xff] }
 0x2f7   : > { %v2425_v30 = vpack.c.bf16 %v2170_v6, %v2169_v22  ;;  %v3837_v22 = vld [vmem:[%s5764_s6 + $0x184] ss:$8 sps:$4 sm:$0xff]   ;;  %v3839_v6 = vld [vmem:[%s5764_s6 + $0x180] ss:$8 sps:$4 sm:$0xff]  }
 0x2f8   : > { %2072 = vmatprep.mubr.bf16.mxu1 %v3837_v22 }
 0x2f9   : > { %3611 = vmatpush3.bf16.msra.mxu0 %v2425_v30  ;;  %2073 = vmatmul.mubr.bf16.gmra.mrb[96].mxu1 %v3839_v6  ;;  %v2165_v6 = vld [vmem:[%s5759_s1 + $0xe0] sm:$0xff] }
 0x2fa   : > { %v1890_v32 = vpop.f32.mrb[4].mxu1  ;;  %3612 = vmatprep.subr.bf16.mxu0 %v4069_v55 }
 0x2fb   : > { %v1892_v21 = vpop.f32.mrb[5].mxu1  ;;  %v2171_v14 = vadd.f32 %v2139_v24, %v1890_v32 }
 0x2fc   : > { %v1893_v35 = vpop.f32.mrb[6].mxu1  ;;  %v2457_v21 = vld [vmem:[%s5760_s2] sm:$0xf] }
 0x2fd   : > { %v2172_v63 = vadd.f32 %v2140_v3, %v1893_v35  ;;  %v1895_v50 = vpop.f32.mrb[7].mxu1 }
 0x2ff   : > { %v2426_v12 = vpack.c.bf16 %v2172_v63, %v2171_v14  ;;  %v2153_v14 = vld [vmem:[%s5759_s1 + $0x80] sm:$0xff]  ;;  %v2154_v63 = vld [vmem:[%s5759_s1 + $0x88] sm:$0xff] }
 0x301   : > { %3613 = vmatpush3.bf16.msra.mxu0 %v2426_v12 }
 0x302   : > { %v1898_v1 = vpop.f32.mrb[8].mxu1  ;;  %3614 = vmatprep.subr.bf16.mxu0 %v4069_v55 }
 0x303   : > { %v1900_v60 = vpop.f32.mrb[9].mxu1  ;;  %v2173_v59 = vadd.f32 %v2141_v41, %v1898_v1 }
 0x304   : > { %v1901_v11 = vpop.f32.mrb[10].mxu1 }
 0x305   : > { %v2174_v10 = vadd.f32 %v2142_v46, %v1901_v11  ;;  %v1903_v57 = vpop.f32.mrb[11].mxu1 }
 0x307   : > { %v2427_v40 = vpack.c.bf16 %v2174_v10, %v2173_v59  ;;  %v2155_v59 = vld [vmem:[%s5759_s1 + $0x90] sm:$0xff]  ;;  %v2156_v10 = vld [vmem:[%s5759_s1 + $0x98] sm:$0xff] }
 0x309   : > { %3615 = vmatpush3.bf16.msra.mxu0 %v2427_v40 }
 0x30a   : > { %v1906_v44 = vpop.f32.mrb[12].mxu1  ;;  %3616 = vmatprep.subr.bf16.mxu0 %v4069_v55 }
 0x30b   : > { %v1908_v5 = vpop.f32.mrb[13].mxu1  ;;  %v2175_v34 = vadd.f32 %v2143_v7, %v1906_v44 }
 0x30c   : > { %v1909_v45 = vpop.f32.mrb[14].mxu1 }
 0x30d   : > { %v2176_v48 = vadd.f32 %v2144_v0, %v1909_v45  ;;  %v1911_v53 = vpop.f32.mrb[15].mxu1 }
 0x30f   : > { %v2428_v19 = vpack.c.bf16 %v2176_v48, %v2175_v34  ;;  %v2157_v34 = vld [vmem:[%s5759_s1 + $0xa0] sm:$0xff]  ;;  %v2158_v48 = vld [vmem:[%s5759_s1 + $0xa8] sm:$0xff] }
 0x311   : > { %3617 = vmatpush3.bf16.msra.mxu0 %v2428_v19 }
 0x312   : > { %v1914_v54 = vpop.f32.mrb[16].mxu1  ;;  %3618 = vmatprep.subr.bf16.mxu0 %v4069_v55 }
 0x313   : > { %v1916_v27 = vpop.f32.mrb[17].mxu1  ;;  %v2177_v33 = vadd.f32 %v2145_v13, %v1914_v54 }
 0x314   : > { %v1917_v47 = vpop.f32.mrb[18].mxu1 }
 0x315   : > { %v2178_v58 = vadd.f32 %v2146_v29, %v1917_v47  ;;  %v1919_v17 = vpop.f32.mrb[19].mxu1 }
 0x317   : > { %v2429_v52 = vpack.c.bf16 %v2178_v58, %v2177_v33  ;;  %v2159_v33 = vld [vmem:[%s5759_s1 + $0xb0] sm:$0xff]  ;;  %v2160_v58 = vld [vmem:[%s5759_s1 + $0xb8] sm:$0xff] }
 0x319   : > { %3619 = vmatpush3.bf16.msra.mxu0 %v2429_v52 }
 0x31a   : > { %v1922_v18 = vpop.f32.mrb[20].mxu1  ;;  %3620 = vmatprep.subr.bf16.mxu0 %v4069_v55 }
 0x31b   : > { %v1924_v9 = vpop.f32.mrb[21].mxu1  ;;  %v2179_v20 = vadd.f32 %v2147_v38, %v1922_v18 }
 0x31c   : > { %v1925_v61 = vpop.f32.mrb[22].mxu1 }
 0x31d   : > { %v2180_v51 = vadd.f32 %v2148_v39, %v1925_v61  ;;  %v1927_v62 = vpop.f32.mrb[23].mxu1 }
 0x31f   : > { %v2430_v16 = vpack.c.bf16 %v2180_v51, %v2179_v20  ;;  %v2161_v20 = vld [vmem:[%s5759_s1 + $0xc0] sm:$0xff]  ;;  %v2162_v51 = vld [vmem:[%s5759_s1 + $0xc8] sm:$0xff] }
 0x321   : > { %3621 = vmatpush3.bf16.msra.mxu0 %v2430_v16 }
 0x322   : > { %v1930_v28 = vpop.f32.mrb[24].mxu1  ;;  %3622 = vmatprep.subr.bf16.mxu0 %v4069_v55 }
 0x323   : > { %v1932_v2 = vpop.f32.mrb[25].mxu1  ;;  %v2181_v26 = vadd.f32 %v2149_v15, %v1930_v28 }
 0x324   : > { %v1933_v4 = vpop.f32.mrb[26].mxu1 }
 0x325   : > { %v2182_v36 = vadd.f32 %v2150_v42, %v1933_v4  ;;  %v1935_v43 = vpop.f32.mrb[27].mxu1 }
 0x327   : > { %v2431_v31 = vpack.c.bf16 %v2182_v36, %v2181_v26  ;;  %v2163_v26 = vld [vmem:[%s5759_s1 + $0xd0] sm:$0xff]  ;;  %v2164_v36 = vld [vmem:[%s5759_s1 + $0xd8] sm:$0xff] }
 0x329   : > { %3623 = vmatpush3.bf16.msra.mxu0 %v2431_v31 }
 0x32a   : > { %v1938_v56 = vpop.f32.mrb[28].mxu1  ;;  %3624 = vmatprep.subr.bf16.mxu0 %v4069_v55 }
 0x32b   : > { %v1940_v49 = vpop.f32.mrb[29].mxu1  ;;  %v2183_v30 = vadd.f32 %v2151_v8, %v1938_v56 }
 0x32c   : > { %v1941_v23 = vpop.f32.mrb[30].mxu1 }
 0x32d   : > { %v2184_v32 = vadd.f32 %v2152_v37, %v1941_v23  ;;  %v1943_v24 = vpop.f32.mrb[31].mxu1  ;;  %v2166_v23 = vld [vmem:[%s5759_s1 + $0xe8] sm:$0xff] }
 0x32f   : > { %v2432_v3 = vpack.c.bf16 %v2184_v32, %v2183_v30 }
 0x331   : > { %3625 = vmatpush3.bf16.msra.mxu0 %v2432_v3 }
 0x332   : > { %v1946_v35 = vpop.f32.mrb[32].mxu1  ;;  %3630 = vmatprep.subr.bf16.mxu0 %v4069_v55 }
 0x333   : > { %v1948_v50 = vpop.f32.mrb[33].mxu1  ;;  %v2185_v1 = vadd.f32 %v2153_v14, %v1946_v35  ;;  %v2236_v35 = vpop.permute.xlu1 %2235 }
 0x334   : > { %3627 = vmatmul.mubr.bf16.vlgmr.msra.gmra.mrb[32].mxu0 %v2457_v21  ;;  %v1949_v12 = vpop.f32.mrb[34].mxu1  ;;  %v2167_v50 = vld [vmem:[%s5759_s1 + $0xf0] sm:$0xff] }
 0x335   : > { %v2186_v41 = vadd.f32 %v2154_v63, %v1949_v12  ;;  %v1951_v46 = vpop.f32.mrb[35].mxu1  ;;  %3646 = vmatprep.mubr.msk.bf16.mxu0 %vm4070_vm1, %v4069_v55  ;;  %v2168_v12 = vld [vmem:[%s5759_s1 + $0xf8] sm:$0xff] }
 0x337   : > { %v2433_v60 = vpack.c.bf16 %v2186_v41, %v2185_v1  ;;  %v2241_v41 = vpop.permute.xlu1 %2240 }
 0x339   : > { %3631 = vmatpush3.bf16.msra.mxu0 %v2433_v60 }
 0x33a   : > { %v1954_v11 = vpop.f32.mrb[36].mxu1  ;;  %3632 = vmatprep.subr.bf16.mxu0 %v4069_v55 }
 0x33b   : > { %v1956_v57 = vpop.f32.mrb[37].mxu1  ;;  %v2187_v44 = vadd.f32 %v2155_v59, %v1954_v11 }
 0x33c   : > { %v1957_v40 = vpop.f32.mrb[38].mxu1  ;;  %v2458_v57 = vld [vmem:[%s5760_s2 + $0x4] sm:$0xf] }
 0x33d   : > { %v2188_v7 = vadd.f32 %v2156_v10, %v1957_v40  ;;  %v1959_v0 = vpop.f32.mrb[39].mxu1  ;;  %v2246_v40 = vpop.permute.xlu1 %2245 }
 0x33f   : > { %v2434_v5 = vpack.c.bf16 %v2188_v7, %v2187_v44 }
 0x341   : > { %3633 = vmatpush3.bf16.msra.mxu0 %v2434_v5 }
 0x342   : > { %v1962_v45 = vpop.f32.mrb[40].mxu1  ;;  %3634 = vmatprep.subr.bf16.mxu0 %v4069_v55 }
 0x343   : > { %v1964_v53 = vpop.f32.mrb[41].mxu1  ;;  %v2189_v54 = vadd.f32 %v2157_v34, %v1962_v45 }
 0x344   : > { %v1965_v19 = vpop.f32.mrb[42].mxu1  ;;  %v2251_v53 = vpop.permute.xlu1 %2250 }
 0x345   : > { %v2190_v13 = vadd.f32 %v2158_v48, %v1965_v19  ;;  %v1967_v29 = vpop.f32.mrb[43].mxu1 }
 0x347   : > { %v2435_v27 = vpack.c.bf16 %v2190_v13, %v2189_v54 }
 0x349   : > { %3635 = vmatpush3.bf16.msra.mxu0 %v2435_v27 }
 0x34a   : > { %v1970_v47 = vpop.f32.mrb[44].mxu1  ;;  %3636 = vmatprep.subr.bf16.mxu0 %v4069_v55 }
 0x34b   : > { %v1972_v17 = vpop.f32.mrb[45].mxu1  ;;  %v2191_v18 = vadd.f32 %v2159_v33, %v1970_v47 }
 0x34c   : > { %v1973_v52 = vpop.f32.mrb[46].mxu1 }
 0x34d   : > { %v2192_v38 = vadd.f32 %v2160_v58, %v1973_v52  ;;  %v1975_v39 = vpop.f32.mrb[47].mxu1  ;;  %v2256_v58 = vpop.permute.xlu1 %2255 }
 0x34f   : > { %v2436_v9 = vpack.c.bf16 %v2192_v38, %v2191_v18 }
 0x351   : > { %3637 = vmatpush3.bf16.msra.mxu0 %v2436_v9  ;;  %v2261_v39 = vpop.permute.xlu1 %2260 }
 0x352   : > { %v1978_v61 = vpop.f32.mrb[48].mxu1  ;;  %3638 = vmatprep.subr.bf16.mxu0 %v4069_v55 }
 0x353   : > { %v1980_v62 = vpop.f32.mrb[49].mxu1  ;;  %v2193_v28 = vadd.f32 %v2161_v20, %v1978_v61 }
 0x354   : > { %v1981_v16 = vpop.f32.mrb[50].mxu1 }
 0x355   : > { %v2194_v15 = vadd.f32 %v2162_v51, %v1981_v16  ;;  %v1983_v42 = vpop.f32.mrb[51].mxu1 }
 0x357   : > { %v2437_v2 = vpack.c.bf16 %v2194_v15, %v2193_v28  ;;  %v3840_v28 = vld [vmem:[%s5764_s6 + $0x194] ss:$8 sps:$4 sm:$0xff]   ;;  %v3842_v15 = vld [vmem:[%s5764_s6 + $0x190] ss:$8 sps:$4 sm:$0xff]  }
 0x358   : > { %2080 = vmatprep.mubr.bf16.mxu1 %v3840_v28 }
 0x359   : > { %3639 = vmatpush3.bf16.msra.mxu0 %v2437_v2  ;;  %v3843_v2 = vld [vmem:[%s5764_s6 + $0x1a4] ss:$8 sps:$4 sm:$0xff]   ;;  %2081 = vmatmul.mubr.bf16.gmra.mrb[100].mxu1 %v3842_v15 }
 0x35a   : > { %v1986_v4 = vpop.f32.mrb[52].mxu1  ;;  %3640 = vmatprep.subr.bf16.mxu0 %v4069_v55  ;;  %2088 = vmatprep.mubr.bf16.mxu1 %v3843_v2 }
 0x35b   : > { %v1988_v43 = vpop.f32.mrb[53].mxu1  ;;  %v2195_v56 = vadd.f32 %v2163_v26, %v1986_v4 }
 0x35c   : > { %v1989_v31 = vpop.f32.mrb[54].mxu1  ;;  %v3845_v43 = vld [vmem:[%s5764_s6 + $0x1a0] ss:$8 sps:$4 sm:$0xff]  }
 0x35d   : > { %v2196_v8 = vadd.f32 %v2164_v36, %v1989_v31  ;;  %v1991_v37 = vpop.f32.mrb[55].mxu1  ;;  %v3846_v31 = vld [vmem:[%s5764_s6 + $0x1b4] ss:$8 sps:$4 sm:$0xff]  }
 0x35f   : > { %v2438_v49 = vpack.c.bf16 %v2196_v8, %v2195_v56 }
 0x361   : > { %3641 = vmatpush3.bf16.msra.mxu0 %v2438_v49  ;;  %2089 = vmatmul.mubr.bf16.gmra.mrb[104].mxu1 %v3845_v43 }
 0x362   : > { %v1994_v22 = vpop.f32.mrb[56].mxu1  ;;  %3642 = vmatprep.subr.bf16.mxu0 %v4069_v55  ;;  %2096 = vmatprep.mubr.bf16.mxu1 %v3846_v31 }
 0x363   : > { %v1996_v30 = vpop.f32.mrb[57].mxu1  ;;  %v2197_v24 = vadd.f32 %v2165_v6, %v1994_v22  ;;  %v5280_v22 = vpop.permute.xlu1 %2280  ;;  %v3848_v6 = vld [vmem:[%s5764_s6 + $0x1b0] ss:$8 sps:$4 sm:$0xff]  }
 0x364   : > { %v1997_v32 = vpop.f32.mrb[58].mxu1 }
 0x365   : > { %v2198_v3 = vadd.f32 %v2166_v23, %v1997_v32  ;;  %v1999_v21 = vpop.f32.mrb[59].mxu1 }
 0x366   : > { %v3849_v21 = vld [vmem:[%s5764_s6 + $0x1c4] ss:$8 sps:$4 sm:$0xff]  }
 0x367   : > { %v2439_v14 = vpack.c.bf16 %v2198_v3, %v2197_v24  ;;  %v2296_v3 = vpop.permute.xlu1 %2295 }
 0x369   : > { %3643 = vmatpush3.bf16.msra.mxu0 %v2439_v14  ;;  %2097 = vmatmul.mubr.bf16.gmra.mrb[108].mxu1 %v3848_v6 }
 0x36a   : > { %v2002_v63 = vpop.f32.mrb[60].mxu1  ;;  %3644 = vmatprep.subr.bf16.mxu0 %v4069_v55  ;;  %2104 = vmatprep.mubr.bf16.mxu1 %v3849_v21  ;;  %v2224_v21 = vld [vmem:[%s5765_s7 + $0xb8] sm:$0xff] }
 0x36b   : > { %v2004_v1 = vpop.f32.mrb[61].mxu1  ;;  %v2199_v60 = vadd.f32 %v2167_v50, %v2002_v63  ;;  %v2301_v50 = vpop.permute.xlu1 %2300 }
 0x36c   : > { %v2005_v46 = vpop.f32.mrb[62].mxu1 }
 0x36d   : > { %v2200_v11 = vadd.f32 %v2168_v12, %v2005_v46  ;;  %v2007_v59 = vpop.f32.mrb[63].mxu1 }
 0x36e   : > { %v3854_v59 = vld [vmem:[%s5764_s6 + $0x1d0] ss:$8 sps:$4 sm:$0xff]  }
 0x36f   : > { %v2440_v10 = vpack.c.bf16 %v2200_v11, %v2199_v60  ;;  %v3852_v11 = vld [vmem:[%s5764_s6 + $0x1d4] ss:$8 sps:$4 sm:$0xff]  }
 0x371   : > { %3645 = vmatpush3.bf16.msra.mxu0 %v2440_v10 }
 0x372   : > { %v2010_v44 = vpop.f32.mrb[64].mxu1  ;;  %3650 = vmatprep.subr.bf16.mxu0 %v4069_v55 }
 0x373   : > { %v2012_v7 = vpop.f32.mrb[65].mxu1  ;;  %v2393_v5 = vadd.f32 %v2236_v35, %v2010_v44  ;;  %v3851_v35 = vld [vmem:[%s5764_s6 + $0x1c0] ss:$8 sps:$4 sm:$0xff]  }
 0x374   : > { %v2013_v0 = vpop.f32.mrb[66].mxu1  ;;  %3647 = vmatmul.mubr.bf16.vlgmr.msra.gmra.mrb[36].mxu0 %v2458_v57  ;;  %2105 = vmatmul.mubr.bf16.gmra.mrb[112].mxu1 %v3851_v35  ;;  %v3857_v44 = vld [vmem:[%s5764_s6 + $0x1e0] ss:$8 sps:$4 sm:$0xff]   ;;  %v3858_v7 = vld [vmem:[%s5764_s6 + $0x1f4] ss:$8 sps:$4 sm:$0xff]  }
 0x375   : > { %v2394_v45 = vadd.f32 %v2241_v41, %v2013_v0  ;;  %v2015_v34 = vpop.f32.mrb[67].mxu1  ;;  %3666 = vmatprep.mubr.msk.bf16.mxu0 %vm4070_vm1, %v4069_v55  ;;  %2112 = vmatprep.mubr.bf16.mxu1 %v3852_v11  ;;  %v3860_v0 = vld [vmem:[%s5764_s6 + $0x1f0] ss:$8 sps:$4 sm:$0xff]  }
 0x377   : > { %v2441_v48 = vpack.c.bf16 %v2394_v45, %v2393_v5 }
 0x379   : > { %v2567_v19 = vsel %vm824_vm0, %v2441_v48, 0 }
 0x37a   : > { %v2018_v54 = vpop.f32.mrb[68].mxu1  ;;  %3651 = vmatpush3.bf16.xpose.msra.mxu0 %v2567_v19  ;;  %v2207_v19 = vld [vmem:[%s5765_s7 + $0x30] sm:$0xff] }
 0x37b   : > { %v2020_v13 = vpop.f32.mrb[69].mxu1  ;;  %3652 = vmatprep.subr.bf16.mxu0 %v4069_v55  ;;  %v2395_v27 = vadd.f32 %v2246_v40, %v2018_v54  ;;  %v3855_v40 = vld [vmem:[%s5764_s6 + $0x1e4] ss:$8 sps:$4 sm:$0xff]   ;;  %v2208_v54 = vld [vmem:[%s5765_s7 + $0x38] sm:$0xff] }
 0x37c   : > { %v2021_v29 = vpop.f32.mrb[70].mxu1  ;;  %2113 = vmatmul.mubr.bf16.gmra.mrb[116].mxu1 %v3854_v59  ;;  %v2209_v13 = vld [vmem:[%s5765_s7 + $0x40] sm:$0xff] }
 0x37d   : > { %v2396_v47 = vadd.f32 %v2251_v53, %v2021_v29  ;;  %v2023_v33 = vpop.f32.mrb[71].mxu1  ;;  %2120 = vmatprep.mubr.bf16.mxu1 %v3855_v40  ;;  %v2211_v29 = vld [vmem:[%s5765_s7 + $0x50] sm:$0xff] }
 0x37f   : > { %v2442_v17 = vpack.c.bf16 %v2396_v47, %v2395_v27  ;;  %v2212_v27 = vld [vmem:[%s5765_s7 + $0x58] sm:$0xff] }
 0x381   : > { %v2570_v52 = vsel %vm824_vm0, %v2442_v17, 0 }
 0x382   : > { %v2026_v18 = vpop.f32.mrb[72].mxu1  ;;  %3653 = vmatpush3.bf16.xpose.msra.mxu0 %v2570_v52 }
 0x383   : > { %v2028_v38 = vpop.f32.mrb[73].mxu1  ;;  %3654 = vmatprep.subr.bf16.mxu0 %v4069_v55  ;;  %v2397_v61 = vadd.f32 %v2256_v58, %v2026_v18  ;;  %v2216_v18 = vld [vmem:[%s5765_s7 + $0x78] sm:$0xff] }
 0x384   : > { %v2029_v9 = vpop.f32.mrb[74].mxu1  ;;  %2121 = vmatmul.mubr.bf16.gmra.mrb[120].mxu1 %v3857_v44  ;;  %v2217_v38 = vld [vmem:[%s5765_s7 + $0x80] sm:$0xff] }
 0x385   : > { %v2398_v20 = vadd.f32 %v2261_v39, %v2029_v9  ;;  %v2031_v51 = vpop.f32.mrb[75].mxu1  ;;  %2128 = vmatprep.mubr.bf16.mxu1 %v3858_v7 }
 0x387   : > { %v2443_v62 = vpack.c.bf16 %v2398_v20, %v2397_v61  ;;  %v2218_v20 = vld [vmem:[%s5765_s7 + $0x88] sm:$0xff] }
 0x389   : > { %v2573_v16 = vsel %vm824_vm0, %v2443_v62, 0 }
 0x38a   : > { %3655 = vmatpush3.bf16.xpose.msra.mxu0 %v2573_v16  ;;  %v5262_v42 = vpop.f32.mrb[76].mxu1  ;;  %v2220_v16 = vld [vmem:[%s5765_s7 + $0x98] sm:$0xff] }
 0x38b   : > { %v2036_v4 = vpop.f32.mrb[77].mxu1  ;;  %3656 = vmatprep.subr.bf16.mxu0 %v4069_v55 }
 0x38c   : > { %v5268_v26 = vpop.f32.mrb[78].mxu1  ;;  %2129 = vmatmul.mubr.bf16.gmra.mrb[124].mxu1 %v3860_v0  ;;  %v2221_v4 = vld [vmem:[%s5765_s7 + $0xa0] sm:$0xff] }
 0x38d   : > { %v2039_v36 = vpop.f32.mrb[79].mxu1 }
 0x392   : > { %v5276_v56 = vpop.f32.mrb[80].mxu1 }
 0x393   : > { %v2044_v8 = vpop.f32.mrb[81].mxu1 }
 0x394   : > { %v5278_v37 = vpop.f32.mrb[82].mxu1  ;;  %v2222_v8 = vld [vmem:[%s5765_s7 + $0xa8] sm:$0xff] }
 0x395   : > { %v2047_v49 = vpop.f32.mrb[83].mxu1 }
 0x39a   : > { %v5285_v23 = vpop.f32.mrb[84].mxu1 }
 0x39b   : > { %v2052_v30 = vpop.f32.mrb[85].mxu1 }
 0x39c   : > { %v5287_v32 = vpop.f32.mrb[86].mxu1  ;;  %v2223_v30 = vld [vmem:[%s5765_s7 + $0xb0] sm:$0xff] }
 0x39d   : > { %v2055_v24 = vpop.f32.mrb[87].mxu1 }
 0x3a2   : > { %v2058_v14 = vpop.f32.mrb[88].mxu1 }
 0x3a3   : > { %v2060_v63 = vpop.f32.mrb[89].mxu1  ;;  %v5295_v1 = vadd.f32 %v2296_v3, %v2058_v14 }
 0x3a4   : > { %v2061_v12 = vpop.f32.mrb[90].mxu1  ;;  %v2225_v63 = vld [vmem:[%s5765_s7 + $0xc0] sm:$0xff] }
 0x3a5   : > { %v5297_v41 = vadd.f32 %v2301_v50, %v2061_v12  ;;  %v2063_v46 = vpop.f32.mrb[91].mxu1 }
 0x3a6   : > { %v2227_v46 = vld [vmem:[%s5765_s7 + $0xd0] sm:$0xff] }
 0x3a7   : > { %v2447_v60 = vpack.c.bf16 %v5297_v41, %v5295_v1  ;;  %v2230_v41 = vld [vmem:[%s5765_s7 + $0xe8] sm:$0xff] }
 0x3aa   : > { %v5307_v10 = vpop.f32.mrb[92].mxu1 }
 0x3ab   : > { %v2068_v57 = vpop.f32.mrb[93].mxu1 }
 0x3ac   : > { %v5350_v39 = vpop.f32.mrb[94].mxu1 }
 0x3ad   : > { %v2071_v9 = vpop.f32.mrb[95].mxu1 }
 0x3cc   : > { %v5352_v61 = vpop.f32.mrb[96].mxu1 }
 0x3cd   : > { %v2076_v51 = vpop.f32.mrb[97].mxu1 }
 0x3ce   : > { %v5357_v62 = vpop.f32.mrb[98].mxu1 }
 0x3cf   : > { %v2079_v28 = vpop.f32.mrb[99].mxu1 }
 0x407   : > { %v5321_v5 = vpop.f32.mrb[32].mxu0 }
 0x408   : > { %v2539_v45 = vsel %vm824_vm0, %v5321_v5, -inf  ;;  %v3628_v34 = vpop.f32.mrb[33].mxu0 }
 0x409   : > { %2540 = vmax.xlane.f32.xlu0 %v2539_v45  ;;  %v2496_v48 = vpop.f32.mrb[34].mxu0 }
 0x40a   : > { %v3629_v53 = vpop.f32.mrb[35].mxu0 }
 0x41f   : > { %2265 = vperm.xlu0 %3745, %v2207_v19  }
 0x423   : > { %2270 = vperm.xlu0 %3745, %v2208_v54  }
 0x427   : > { %2275 = vperm.xlu0 %3745, %v2209_v13  }
 0x42b   : > { %2285 = vperm.xlu0 %3745, %v2211_v29  }
 0x42c   : > { %v5362_v15 = vpop.f32.mrb[100].mxu1 }
 0x42d   : > { %v2084_v2 = vpop.f32.mrb[101].mxu1 }
 0x42e   : > { %v5367_v36 = vpop.f32.mrb[102].mxu1 }
 0x42f   : > { %2290 = vperm.xlu0 %3745, %v2212_v27   ;;  %v2087_v43 = vpop.f32.mrb[103].mxu1 }
 0x434   : > { %v5369_v31 = vpop.f32.mrb[104].mxu1 }
 0x435   : > { %v2092_v49 = vpop.f32.mrb[105].mxu1 }
 0x436   : > { %v5374_v6 = vpop.f32.mrb[106].mxu1  ;;  %v2306_v49 = vpop.permute.xlu1 %2305 }
 0x437   : > { %v2095_v24 = vpop.f32.mrb[107].mxu1 }
 0x43c   : > { %v5379_v3 = vpop.f32.mrb[108].mxu1 }
 0x43d   : > { %v2100_v35 = vpop.f32.mrb[109].mxu1 }
 0x43e   : > { %v5384_v14 = vpop.f32.mrb[110].mxu1 }
 0x43f   : > { %v2103_v50 = vpop.f32.mrb[111].mxu1 }
 0x447   : > { %v5340_v47 = vpop.f32.mrb[36].mxu0  ;;  %v5389_v12 = vpop.f32.mrb[112].mxu1 }
 0x448   : > { %v2542_v33 = vsel %vm824_vm0, %v5340_v47, -inf  ;;  %v3648_v58 = vpop.f32.mrb[37].mxu0  ;;  %v2108_v11 = vpop.f32.mrb[113].mxu1 }
 0x449   : > { %2543 = vmax.xlane.f32.xlu1 %v2542_v33  ;;  %v2536_v17 = vpop.f32.mrb[38].mxu0  ;;  %v5394_v59 = vpop.f32.mrb[114].mxu1  ;;  %v2402_v33 = vadd.f32 %v5280_v22, %v5278_v37  ;;  %v2219_v37 = vld [vmem:[%s5765_s7 + $0x90] sm:$0xff]  ;;  %v2226_v22 = vld [vmem:[%s5765_s7 + $0xc8] sm:$0xff]  ;;  %v2407_v11 = vadd.f32 %v2306_v49, %v5307_v10 }
 0x44a   : > { %v3649_v52 = vpop.f32.mrb[39].mxu0  ;;  %v2111_v57 = vpop.f32.mrb[115].mxu1 }
 0x44f   : > { %v5396_v40 = vpop.f32.mrb[116].mxu1 }
 0x450   : > { %v2116_v44 = vpop.f32.mrb[117].mxu1 }
 0x45a   : > { %2310 = vperm.xlu1 %3746, %v2216_v18  }
 0x45e   : > { %2315 = vperm.xlu1 %3746, %v2217_v38  }
 0x462   : > { %2320 = vperm.xlu1 %3746, %v2218_v20   ;;  %v5430_v20 = vpop.f32.mrb[118].mxu1 }
 0x463   : > { %v2119_v51 = vpop.f32.mrb[119].mxu1 }
 0x464   : > { %v5435_v28 = vpop.f32.mrb[120].mxu1 }
 0x465   : > { %v2124_v1 = vpop.f32.mrb[121].mxu1 }
 0x466   : > { %2330 = vperm.xlu1 %3746, %v2220_v16   ;;  %v2229_v16 = vld [vmem:[%s5765_s7 + $0xe0] sm:$0xff] }
 0x46a   : > { %2335 = vperm.xlu1 %3746, %v2221_v4   ;;  %v2231_v4 = vld [vmem:[%s5765_s7 + $0xf0] sm:$0xff] }
 0x46e   : > { %2340 = vperm.xlu1 %3746, %v2222_v8  }
 0x472   : > { %2345 = vperm.xlu1 %3746, %v2223_v30   ;;  %v2232_v30 = vld [vmem:[%s5765_s7 + $0xf8] sm:$0xff] }
 0x476   : > { %2350 = vperm.xlu1 %3746, %v2224_v21  }
 0x47a   : > { %2355 = vperm.xlu1 %3746, %v2225_v63  }
 0x47e   : > { %2365 = vperm.xlu1 %3746, %v2227_v46  }
 0x496   : > { %v2541_v7 = vpop.xlane.xlu0 %2540 }
 0x497   : > { %v2545_v0 = vsub.f32 %v5321_v5, %v2541_v7 }
 0x499   : > { %v2547_v45 = vmul.f32 1.442695, %v2545_v0 }
 0x49b   : > { %3959 = vpow2.f32 %v2547_v45 }
 0x49e   : > { %v2266_v34 = vpop.permute.xlu0 %2265 }
 0x49f   : > { %v2399_v53 = vadd.f32 %v2266_v34, %v5262_v42 }
 0x4a2   : > { %v2271_v48 = vpop.permute.xlu0 %2270 }
 0x4a3   : > { %v2400_v19 = vadd.f32 %v2271_v48, %v5268_v26 }
 0x4a5   : > { %v5401_v54 = vpop.eup %3959  ;;  %v2444_v13 = vpack.c.bf16 %v2400_v19, %v2399_v53 }
 0x4a6   : > { %v2276_v29 = vpop.permute.xlu0 %2275  ;;  %v2551_v27 = vsel %vm824_vm0, %v5401_v54, 0.0 }
 0x4a7   : > { %v2401_v5 = vadd.f32 %v2276_v29, %v5276_v56  ;;  %2552 = vadd.xlane.f32.xlu0 %v2551_v27  ;;  %v2576_v58 = vsel %vm824_vm0, %v2444_v13, 0 }
 0x4a8   : > { %3657 = vmatpush3.bf16.xpose.msra.mxu0 %v2576_v58 }
 0x4a9   : > { %v2445_v17 = vpack.c.bf16 %v2402_v33, %v2401_v5  ;;  %3658 = vmatprep.subr.bf16.mxu0 %v4069_v55 }
 0x4aa   : > { %v2286_v42 = vpop.permute.xlu0 %2285 }
 0x4ab   : > { %v2403_v52 = vadd.f32 %v2286_v42, %v5285_v23  ;;  %v2579_v38 = vsel %vm824_vm0, %v2445_v17, 0  ;;  %v2585_v23 = vsel %vm824_vm0, %v2447_v60, 0  ;;  %v5440_v60 = vpop.f32.mrb[122].mxu1 }
 0x4ac   : > { %v2127_v2 = vpop.f32.mrb[123].mxu1 }
 0x4ad   : > { %v5445_v43 = vpop.f32.mrb[124].mxu1 }
 0x4ae   : > { %v2291_v26 = vpop.permute.xlu0 %2290  ;;  %v2132_v8 = vpop.f32.mrb[125].mxu1 }
 0x4af   : > { %v2404_v18 = vadd.f32 %v2291_v26, %v5287_v32  ;;  %v2228_v32 = vld [vmem:[%s5765_s7 + $0xd8] sm:$0xff]  ;;  %v5450_v24 = vpop.f32.mrb[126].mxu1 }
 0x4b0   : > { %3659 = vmatpush3.bf16.xpose.msra.mxu0 %v2579_v38  ;;  %v2135_v21 = vpop.f32.mrb[127].mxu1 }
 0x4b1   : > { %v2446_v9 = vpack.c.bf16 %v2404_v18, %v2403_v52  ;;  %3660 = vmatprep.subr.bf16.mxu0 %v4069_v55 }
 0x4b3   : > { %v2582_v56 = vsel %vm824_vm0, %v2446_v9, 0 }
 0x4b8   : > { %3661 = vmatpush3.bf16.xpose.msra.mxu0 %v2582_v56 }
 0x4b9   : > { %3662 = vmatprep.subr.bf16.mxu0 %v4069_v55 }
 0x4bd   : > { %2325 = vperm.xlu0 %3745, %v2219_v37  }
 0x4c0   : > { %3663 = vmatpush3.bf16.xpose.msra.mxu0 %v2585_v23 }
 0x4c1   : > { %2360 = vperm.xlu0 %3745, %v2226_v22   ;;  %3664 = vmatprep.subr.bf16.mxu0 %v4069_v55 }
 0x4c5   : > { %2370 = vperm.xlu0 %3745, %v2228_v32  }
 0x4c9   : > { %2375 = vperm.xlu0 %3745, %v2229_v16  }
 0x4cd   : > { %2380 = vperm.xlu0 %3745, %v2230_v41  }
 0x4d1   : > { %2385 = vperm.xlu0 %3745, %v2231_v4  }
 0x4d5   : > { %2390 = vperm.xlu0 %3745, %v2232_v30  }
 0x4d6   : > { %v2544_v35 = vpop.xlane.xlu1 %2543 }
 0x4d7   : > { %v2546_v63 = vsub.f32 %v5340_v47, %v2544_v35  ;;  %v3863_v35 = vld [vmem:[%s5766_s8 + $0x4] ss:$8 sps:$4 sm:$0xff]  }
 0x4d9   : > { %v2549_v50 = vmul.f32 1.442695, %v2546_v63 }
 0x4da   : > { %v2311_v46 = vpop.permute.xlu1 %2310 }
 0x4db   : > { %3961 = vpow2.f32 %v2549_v50  ;;  %v2408_v57 = vadd.f32 %v2311_v46, %v5350_v39 }
 0x4dd   : > { %v2448_v44 = vpack.c.bf16 %v2408_v57, %v2407_v11  ;;  %v3861_v11 = vld [vmem:[%s5766_s8] ss:$8 sps:$4 sm:$0xff]  }
 0x4de   : > { %v2316_v7 = vpop.permute.xlu1 %2315 }
 0x4df   : > { %v2588_v0 = vsel %vm824_vm0, %v2448_v44, 0  ;;  %v2409_v34 = vadd.f32 %v2316_v7, %v5352_v61  ;;  %v3864_v44 = vld [vmem:[%s5766_s8 + $0x10] ss:$8 sps:$4 sm:$0xff]   ;;  %v3869_v7 = vld [vmem:[%s5766_s8 + $0x24] ss:$8 sps:$4 sm:$0xff]  }
 0x4e0   : > { %3665 = vmatpush3.bf16.xpose.msra.mxu0 %v2588_v0  ;;  %v3867_v0 = vld [vmem:[%s5766_s8 + $0x20] ss:$8 sps:$4 sm:$0xff]  }
 0x4e1   : > { %3670 = vmatprep.subr.bf16.mxu0 %v4069_v55 }
 0x4e2   : > { %v2321_v45 = vpop.permute.xlu1 %2320 }
 0x4e3   : > { %v2410_v48 = vadd.f32 %v2321_v45, %v5357_v62  ;;  %v3872_v45 = vld [vmem:[%s5766_s8 + $0x34] ss:$8 sps:$4 sm:$0xff]  }
 0x4e5   : > { %v5459_v47 = vpop.eup %3961  ;;  %v2449_v53 = vpack.c.bf16 %v2410_v48, %v2409_v34  ;;  %v3870_v34 = vld [vmem:[%s5766_s8 + $0x30] ss:$8 sps:$4 sm:$0xff]   ;;  %v3875_v48 = vld [vmem:[%s5766_s8 + $0x44] ss:$8 sps:$4 sm:$0xff]  }
 0x4e6   : > { %v2331_v19 = vpop.permute.xlu1 %2330  ;;  %v2554_v10 = vsel %vm824_vm0, %v5459_v47, 0.0 }
 0x4e7   : > { %2555 = vadd.xlane.f32.xlu1 %v2554_v10  ;;  %v2412_v18 = vadd.f32 %v2331_v19, %v5367_v36  ;;  %v2634_v51 = vsel %vm824_vm0, %v2449_v53, 0  ;;  %v3878_v53 = vld [vmem:[%s5766_s8 + $0x54] ss:$8 sps:$4 sm:$0xff]   ;;  %v3876_v19 = vld [vmem:[%s5766_s8 + $0x50] ss:$8 sps:$4 sm:$0xff]  }
 0x4e8   : > { %v3881_v10 = vld [vmem:[%s5766_s8 + $0x64] ss:$8 sps:$4 sm:$0xff]  }
 0x4ea   : > { %v2336_v39 = vpop.permute.xlu1 %2335 }
 0x4eb   : > { %v2413_v29 = vadd.f32 %v2336_v39, %v5369_v31  ;;  %v3879_v39 = vld [vmem:[%s5766_s8 + $0x60] ss:$8 sps:$4 sm:$0xff]  }
 0x4ee   : > { %v2341_v13 = vpop.permute.xlu1 %2340 }
 0x4ef   : > { %v2414_v27 = vadd.f32 %v2341_v13, %v5374_v6  ;;  %v3884_v13 = vld [vmem:[%s5766_s8 + $0x74] ss:$8 sps:$4 sm:$0xff]  }
 0x4f1   : > { %v2451_v33 = vpack.c.bf16 %v2414_v27, %v2413_v29  ;;  %v3882_v29 = vld [vmem:[%s5766_s8 + $0x70] ss:$8 sps:$4 sm:$0xff]   ;;  %v3887_v27 = vld [vmem:[%s5766_s8 + $0x84] ss:$8 sps:$4 sm:$0xff]  }
 0x4f2   : > { %v2346_v5 = vpop.permute.xlu1 %2345 }
 0x4f3   : > { %v2415_v61 = vadd.f32 %v2346_v5, %v5379_v3  ;;  %v2640_v4 = vsel %vm824_vm0, %v2451_v33, 0  ;;  %v3885_v5 = vld [vmem:[%s5766_s8 + $0x80] ss:$8 sps:$4 sm:$0xff]  }
 0x4f6   : > { %v2351_v58 = vpop.permute.xlu1 %2350 }
 0x4f7   : > { %v2416_v62 = vadd.f32 %v2351_v58, %v5384_v14 }
 0x4f9   : > { %v2452_v17 = vpack.c.bf16 %v2416_v62, %v2415_v61  ;;  %v3890_v62 = vld [vmem:[%s5766_s8 + $0x94] ss:$8 sps:$4 sm:$0xff]  }
 0x4fa   : > { %v2356_v26 = vpop.permute.xlu1 %2355 }
 0x4fb   : > { %v2417_v37 = vadd.f32 %v2356_v26, %v5389_v12  ;;  %v3888_v26 = vld [vmem:[%s5766_s8 + $0x90] ss:$8 sps:$4 sm:$0xff]  }
 0x4fe   : > { %v2366_v22 = vpop.permute.xlu1 %2365 }
 0x4ff   : > { %v2419_v36 = vadd.f32 %v2366_v22, %v5396_v40  ;;  %v3908_v22 = vld [vmem:[%s5766_s8 + $0xf4] ss:$8 sps:$4 sm:$0xff]  }
 0x534   : > { %v2553_v42 = vpop.xlane.xlu0 %2552 }
 0x535   : > { %3963 = vrcp.f32 %v2553_v42 }
 0x53c   : > { %v2326_v52 = vpop.permute.xlu0 %2325 }
 0x53d   : > { %v2411_v38 = vadd.f32 %v2326_v52, %v5362_v15  ;;  %v3893_v52 = vld [vmem:[%s5766_s8 + $0xa4] ss:$8 sps:$4 sm:$0xff]  }
 0x53f   : > { %v3964_v9 = vpop.eup %3963  ;;  %v2450_v31 = vpack.c.bf16 %v2412_v18, %v2411_v38  ;;  %v3891_v18 = vld [vmem:[%s5766_s8 + $0xa0] ss:$8 sps:$4 sm:$0xff]   ;;  %v3896_v38 = vld [vmem:[%s5766_s8 + $0xb4] ss:$8 sps:$4 sm:$0xff]  }
 0x540   : > { %v2559_v6 = vmul.f32 %v3964_v9, %v5401_v54  ;;  %v2361_v56 = vpop.permute.xlu0 %2360  ;;  %v3899_v9 = vld [vmem:[%s5766_s8 + $0xc4] ss:$8 sps:$4 sm:$0xff]  }
 0x541   : > { %v2418_v3 = vadd.f32 %v2361_v56, %v5394_v59  ;;  %v2637_v16 = vsel %vm824_vm0, %v2450_v31, 0  ;;  %v3897_v31 = vld [vmem:[%s5766_s8 + $0xc0] ss:$8 sps:$4 sm:$0xff]   ;;  %v3900_v56 = vld [vmem:[%s5766_s8 + $0xd0] ss:$8 sps:$4 sm:$0xff]  }
 0x542   : > { %v2561_v14 = vpack.c.bf16 %v2559_v6, %v2559_v6  ;;  %v3902_v6 = vld [vmem:[%s5766_s8 + $0xd4] ss:$8 sps:$4 sm:$0xff]  }
 0x543   : > { %v2453_v23 = vpack.c.bf16 %v2418_v3, %v2417_v37  ;;  %v3905_v37 = vld [vmem:[%s5766_s8 + $0xe4] ss:$8 sps:$4 sm:$0xff]   ;;  %v3903_v3 = vld [vmem:[%s5766_s8 + $0xe0] ss:$8 sps:$4 sm:$0xff]  }
 0x544   : > { %v2371_v32 = vpop.permute.xlu0 %2370  ;;  %3667 = vmatmul.mubr.msk.bf16.vlgmr.msra.gmra.mrb[40].mxu0 %vm824_vm0, %v2561_v14  ;;  %v3906_v14 = vld [vmem:[%s5766_s8 + $0xf0] ss:$8 sps:$4 sm:$0xff]  }
 0x545   : > { %v2420_v15 = vadd.f32 %v2371_v32, %v5430_v20  ;;  %3671 = vmatpush3.bf16.xpose.msra.mxu0 %v2634_v51  ;;  %3686 = vmatprep.mubr.msk.bf16.mxu0 %vm4070_vm1, %v4069_v55 }
 0x546   : > { %3672 = vmatprep.subr.bf16.mxu0 %v4069_v55 }
 0x547   : > { %v2454_v12 = vpack.c.bf16 %v2420_v15, %v2419_v36 }
 0x548   : > { %v2376_v59 = vpop.permute.xlu0 %2375 }
 0x549   : > { %v2421_v1 = vadd.f32 %v2376_v59, %v5435_v28  ;;  %v2643_v28 = vsel %vm824_vm0, %v2452_v17, 0  ;;  %v2649_v21 = vsel %vm824_vm0, %v2454_v12, 0  ;;  %v3909_v12 = vld [vmem:[%s5770_s12] ss:$8 sps:$4 sm:$0xff]   ;;  %v3911_v59 = vld [vmem:[%s5770_s12 + $0x4] ss:$8 sps:$4 sm:$0xff]  }
 0x54a   : > { %3227 = vmatprep.subr.bf16.mxu1 %v3911_v59 }
 0x54b   : > { %3228 = vmatpush1.bf16.msra.mxu1 %v3909_v12 }
 0x54c   : > { %v2381_v54 = vpop.permute.xlu0 %2380 }
 0x54d   : > { %v2422_v41 = vadd.f32 %v2381_v54, %v5440_v60  ;;  %3673 = vmatpush3.bf16.xpose.msra.mxu0 %v2637_v16  ;;  %v2646_v60 = vsel %vm824_vm0, %v2453_v23, 0  ;;  %v3914_v54 = vld [vmem:[%s5770_s12 + $0x14] ss:$8 sps:$4 sm:$0xff]   ;;  %v3912_v16 = vld [vmem:[%s5770_s12 + $0x10] ss:$8 sps:$4 sm:$0xff]  }
 0x54e   : > { %3674 = vmatprep.subr.bf16.mxu0 %v4069_v55  ;;  %3229 = vmatprep.subr.bf16.mxu1 %v3914_v54 }
 0x54f   : > { %v2455_v40 = vpack.c.bf16 %v2422_v41, %v2421_v1  ;;  %v3917_v1 = vld [vmem:[%s5770_s12 + $0x24] ss:$8 sps:$4 sm:$0xff]   ;;  %3230 = vmatpush1.bf16.msra.mxu1 %v3912_v16  ;;  %v3915_v41 = vld [vmem:[%s5770_s12 + $0x20] ss:$8 sps:$4 sm:$0xff]  }
 0x550   : > { %v2386_v20 = vpop.permute.xlu0 %2385  ;;  %3231 = vmatprep.subr.bf16.mxu1 %v3917_v1 }
 0x551   : > { %v2423_v8 = vadd.f32 %v2386_v20, %v5445_v43  ;;  %v3918_v20 = vld [vmem:[%s5770_s12 + $0x30] ss:$8 sps:$4 sm:$0xff]  }
 0x553   : > { %3232 = vmatpush1.bf16.msra.mxu1 %v3915_v41 }
 0x554   : > { %v2391_v2 = vpop.permute.xlu0 %2390 }
 0x555   : > { %v2424_v49 = vadd.f32 %v2391_v2, %v5450_v24  ;;  %3675 = vmatpush3.bf16.xpose.msra.mxu0 %v2640_v4  ;;  %v2652_v24 = vsel %vm824_vm0, %v2455_v40, 0  ;;  %v3920_v40 = vld [vmem:[%s5770_s12 + $0x34] ss:$8 sps:$4 sm:$0xff]   ;;  %v3923_v2 = vld [vmem:[%s5770_s12 + $0x44] ss:$8 sps:$4 sm:$0xff]  }
 0x556   : > { %3676 = vmatprep.subr.bf16.mxu0 %v4069_v55  ;;  %3233 = vmatprep.subr.bf16.mxu1 %v3920_v40  ;;  %v3921_v4 = vld [vmem:[%s5770_s12 + $0x40] ss:$8 sps:$4 sm:$0xff]  }
 0x557   : > { %v2456_v30 = vpack.c.bf16 %v2424_v49, %v2423_v8  ;;  %3234 = vmatpush1.bf16.msra.mxu1 %v3918_v20 }
 0x558   : > { %3235 = vmatprep.subr.bf16.mxu1 %v3923_v2 }
 0x559   : > { %v2655_v63 = vsel %vm824_vm0, %v2456_v30, 0 }
 0x55b   : > { %3236 = vmatpush1.bf16.msra.mxu1 %v3921_v4 }
 0x55d   : > { %3677 = vmatpush3.bf16.xpose.msra.mxu0 %v2643_v28 }
 0x55e   : > { %3678 = vmatprep.subr.bf16.mxu0 %v4069_v55 }
 0x565   : > { %3679 = vmatpush3.bf16.xpose.msra.mxu0 %v2646_v60  ;;  %v2977_v60 = vlaneseq }
 0x566   : > { %3680 = vmatprep.subr.bf16.mxu0 %v4069_v55 }
 0x56d   : > { %3681 = vmatpush3.bf16.xpose.msra.mxu0 %v2649_v21  ;;  %v2978_v21 = vshrl.u32 %v2977_v60, 7 }
 0x56e   : > { %3682 = vmatprep.subr.bf16.mxu0 %v4069_v55 }
 0x574   : > { %v2556_v43 = vpop.xlane.xlu1 %2555 }
 0x575   : > { %3965 = vrcp.f32 %v2556_v43  ;;  %3683 = vmatpush3.bf16.xpose.msra.mxu0 %v2652_v24  ;;  %v5626_v43 = vsub.s32 0, %v2978_v21  ;;  %v2975_v24 = vld [vmem:[%s5767_s9] sm:$0x3] }
 0x576   : > { %3684 = vmatprep.subr.bf16.mxu0 %v4069_v55  ;;  %v3866_v55 = vld [vmem:[%s5766_s8 + $0x14] ss:$8 sps:$4 sm:$0xff]  }
 0x57d   : > { %3685 = vmatpush3.bf16.xpose.msra.mxu0 %v2655_v63  ;;  %v2980_v63 = vrot.slane %v2975_v24, %v5626_v43 }
 0x57e   : > { %2811 = vmatprep.subr.bf16.mxu0 %v3863_v35  ;;  %v5631_v35 = vsub.s32 1, %v2978_v21 }
 0x57f   : > { %v3966_v50 = vpop.eup %3965 }
 0x580   : > { %v2560_v46 = vmul.f32 %v3966_v50, %v5459_v47  ;;  %v3873_v47 = vld [vmem:[%s5766_s8 + $0x40] ss:$8 sps:$4 sm:$0xff]  }
 0x582   : > { %v2562_v57 = vpack.c.bf16 %v2560_v46, %v2560_v46  ;;  %v2984_v46 = vrot.slane %v2975_v24, %v5631_v35 }
 0x584   : > { %3687 = vmatmul.mubr.msk.bf16.vlgmr.msra.gmra.mrb[44].mxu0 %vm824_vm0, %v2562_v57 }
 0x585   : > { %2812 = vmatpush1.bf16.msra.mxu0 %v3861_v11  ;;  %2843 = vmatprep.mubr.bf16.mxu0 %v5824_v25 }
 0x586   : > { %2813 = vmatprep.subr.bf16.mxu0 %v3866_v55 }
 0x589   : > { %2814 = vmatpush1.bf16.msra.mxu0 %v3864_v44 }
 0x58a   : > { %2815 = vmatprep.subr.bf16.mxu0 %v3869_v7 }
 0x58d   : > { %2816 = vmatpush1.bf16.msra.mxu0 %v3867_v0 }
 0x58e   : > { %2817 = vmatprep.subr.bf16.mxu0 %v3872_v45 }
 0x591   : > { %2818 = vmatpush1.bf16.msra.mxu0 %v3870_v34 }
 0x592   : > { %2819 = vmatprep.subr.bf16.mxu0 %v3875_v48  ;;  %v3924_v48 = vld [vmem:[%s5770_s12 + $0x50] ss:$8 sps:$4 sm:$0xff]  }
 0x595   : > { %2820 = vmatpush1.bf16.msra.mxu0 %v3873_v47  ;;  %v3926_v47 = vld [vmem:[%s5770_s12 + $0x54] ss:$8 sps:$4 sm:$0xff]  }
 0x596   : > { %2821 = vmatprep.subr.bf16.mxu0 %v3878_v53  ;;  %3237 = vmatprep.subr.bf16.mxu1 %v3926_v47  ;;  %v3927_v53 = vld [vmem:[%s5770_s12 + $0x60] ss:$8 sps:$4 sm:$0xff]  }
 0x597   : > { %3238 = vmatpush1.bf16.msra.mxu1 %v3924_v48 }
 0x599   : > { %2822 = vmatpush1.bf16.msra.mxu0 %v3876_v19  ;;  %v3929_v19 = vld [vmem:[%s5770_s12 + $0x64] ss:$8 sps:$4 sm:$0xff]  }
 0x59a   : > { %2823 = vmatprep.subr.bf16.mxu0 %v3881_v10  ;;  %v3932_v10 = vld [vmem:[%s5770_s12 + $0x74] ss:$8 sps:$4 sm:$0xff]   ;;  %3239 = vmatprep.subr.bf16.mxu1 %v3929_v19 }
 0x59b   : > { %3240 = vmatpush1.bf16.msra.mxu1 %v3927_v53 }
 0x59c   : > { %3241 = vmatprep.subr.bf16.mxu1 %v3932_v10 }
 0x59d   : > { %2824 = vmatpush1.bf16.msra.mxu0 %v3879_v39  ;;  %v3930_v39 = vld [vmem:[%s5770_s12 + $0x70] ss:$8 sps:$4 sm:$0xff]  }
 0x59e   : > { %2825 = vmatprep.subr.bf16.mxu0 %v3884_v13  ;;  %v3935_v13 = vld [vmem:[%s5770_s12 + $0x84] ss:$8 sps:$4 sm:$0xff]  }
 0x59f   : > { %3242 = vmatpush1.bf16.msra.mxu1 %v3930_v39 }
 0x5a0   : > { %3243 = vmatprep.subr.bf16.mxu1 %v3935_v13 }
 0x5a1   : > { %2826 = vmatpush1.bf16.msra.mxu0 %v3882_v29  ;;  %v3933_v29 = vld [vmem:[%s5770_s12 + $0x80] ss:$8 sps:$4 sm:$0xff]  }
 0x5a2   : > { %2932 = vmatprep.subr.bf16.mxu0 %v3887_v27  ;;  %v3938_v27 = vld [vmem:[%s5770_s12 + $0x94] ss:$8 sps:$4 sm:$0xff]  }
 0x5a3   : > { %3244 = vmatpush1.bf16.msra.mxu1 %v3933_v29 }
 0x5a4   : > { %3245 = vmatprep.subr.bf16.mxu1 %v3938_v27 }
 0x617   : > { %v2624_v33 = vpop.f32.mrb[40].mxu0 }
 0x618   : > { %v2697_v58 = vpack.c.bf16 %v2624_v33, %v2624_v33  ;;  %v3668_v61 = vpop.f32.mrb[41].mxu0  ;;  %v3936_v33 = vld [vmem:[%s5770_s12 + $0x90] ss:$8 sps:$4 sm:$0xff]  }
 0x619   : > { %v2627_v17 = vpop.f32.mrb[42].mxu0  ;;  %3246 = vmatpush1.bf16.msra.mxu1 %v3936_v33  ;;  %v3944_v61 = vld [vmem:[%s5770_s12 + $0xb4] ss:$8 sps:$4 sm:$0xff]  }
 0x61a   : > { %v3669_v42 = vpop.f32.mrb[43].mxu0  ;;  %2844 = vmatmul.mubr.bf16.vlgmr.msra.gmra.mrb[48].mxu0 %v2697_v58  ;;  %v3939_v58 = vld [vmem:[%s5770_s12 + $0xa0] ss:$8 sps:$4 sm:$0xff]   ;;  %v3947_v17 = vld [vmem:[%s5770_s12 + $0xc4] ss:$8 sps:$4 sm:$0xff]  }
 0x61b   : > { %2933 = vmatpush1.bf16.msra.mxu0 %v3885_v5  ;;  %2964 = vmatprep.mubr.bf16.mxu0 %v5824_v25  ;;  %v3894_v25 = vld [vmem:[%s5766_s8 + $0xb0] ss:$8 sps:$4 sm:$0xff]   ;;  %v3941_v5 = vld [vmem:[%s5770_s12 + $0xa4] ss:$8 sps:$4 sm:$0xff]   ;;  %v3945_v42 = vld [vmem:[%s5770_s12 + $0xc0] ss:$8 sps:$4 sm:$0xff]  }
 0x61c   : > { %2934 = vmatprep.subr.bf16.mxu0 %v3890_v62  ;;  %3247 = vmatprep.subr.bf16.mxu1 %v3941_v5  ;;  %v3942_v62 = vld [vmem:[%s5770_s12 + $0xb0] ss:$8 sps:$4 sm:$0xff]  }
 0x61d   : > { %3248 = vmatpush1.bf16.msra.mxu1 %v3939_v58 }
 0x61e   : > { %3249 = vmatprep.subr.bf16.mxu1 %v3944_v61 }
 0x61f   : > { %2935 = vmatpush1.bf16.msra.mxu0 %v3888_v26  ;;  %v3950_v26 = vld [vmem:[%s5770_s12 + $0xd4] ss:$8 sps:$4 sm:$0xff]  }
 0x620   : > { %2936 = vmatprep.subr.bf16.mxu0 %v3893_v52  ;;  %v3948_v52 = vld [vmem:[%s5770_s12 + $0xd0] ss:$8 sps:$4 sm:$0xff]  }
 0x621   : > { %3250 = vmatpush1.bf16.msra.mxu1 %v3942_v62 }
 0x622   : > { %3251 = vmatprep.subr.bf16.mxu1 %v3947_v17 }
 0x623   : > { %2937 = vmatpush1.bf16.msra.mxu0 %v3891_v18  ;;  %v3953_v18 = vld [vmem:[%s5770_s12 + $0xe4] ss:$8 sps:$4 sm:$0xff]  }
 0x624   : > { %2938 = vmatprep.subr.bf16.mxu0 %v3896_v38  ;;  %v3951_v38 = vld [vmem:[%s5770_s12 + $0xe0] ss:$8 sps:$4 sm:$0xff]  }
 0x625   : > { %3252 = vmatpush1.bf16.msra.mxu1 %v3945_v42 }
 0x626   : > { %3253 = vmatprep.subr.bf16.mxu1 %v3950_v26 }
 0x627   : > { %2939 = vmatpush1.bf16.msra.mxu0 %v3894_v25 }
 0x628   : > { %2940 = vmatprep.subr.bf16.mxu0 %v3899_v9 }
 0x629   : > { %3254 = vmatpush1.bf16.msra.mxu1 %v3948_v52 }
 0x62a   : > { %3255 = vmatprep.subr.bf16.mxu1 %v3953_v18 }
 0x62b   : > { %2941 = vmatpush1.bf16.msra.mxu0 %v3897_v31 }
 0x62c   : > { %2942 = vmatprep.subr.bf16.mxu0 %v3902_v6 }
 0x62d   : > { %3256 = vmatpush1.bf16.msra.mxu1 %v3951_v38 }
 0x62f   : > { %2943 = vmatpush1.bf16.msra.mxu0 %v3900_v56 }
 0x630   : > { %2944 = vmatprep.subr.bf16.mxu0 %v3905_v37 }
 0x633   : > { %2945 = vmatpush1.bf16.msra.mxu0 %v3903_v3 }
 0x634   : > { %2946 = vmatprep.subr.bf16.mxu0 %v3908_v22  ;;  %v3954_v22 = vld [vmem:[%s5770_s12 + $0xf0] ss:$8 sps:$4 sm:$0xff]  }
 0x637   : > { %2947 = vmatpush1.bf16.msra.mxu0 %v3906_v14  ;;  %v3956_v14 = vld [vmem:[%s5770_s12 + $0xf4] ss:$8 sps:$4 sm:$0xff]  }
 0x638   : > { %3257 = vmatprep.subr.bf16.mxu1 %v3956_v14 }
 0x639   : > { %3258 = vmatpush1.bf16.msra.mxu1 %v3954_v22 }
 0x657   : > { %v2691_v23 = vpop.f32.mrb[44].mxu0 }
 0x658   : > { %v2698_v32 = vpack.c.bf16 %v2691_v23, %v2691_v23  ;;  %v3688_v51 = vpop.f32.mrb[45].mxu0 }
 0x659   : > { %v2694_v36 = vpop.f32.mrb[46].mxu0 }
 0x65a   : > { %v3689_v15 = vpop.f32.mrb[47].mxu0  ;;  %2965 = vmatmul.mubr.bf16.vlgmr.msra.gmra.mrb[52].mxu0 %v2698_v32  ;;  %v2989_v36 = vld [vmem:[%s5768_s10] sm:$0x3] }
 0x65b   : > { %v2990_v15 = vld [vmem:[%s5769_s11] sm:$0x3]  ;;  %v3011_v12 = vrot.slane %v2989_v36, %v5626_v43  ;;  %v3015_v59 = vrot.slane %v2989_v36, %v5631_v35 }
 0x65c   : > { %v3024_v41 = vrot.slane %v2990_v15, %v5626_v43  ;;  %v3028_v40 = vrot.slane %v2990_v15, %v5631_v35 }
 0x6ed   : > { %v2845_v8 = vpop.f32.mrb[48].mxu0 }
 0x6ee   : > { %v2847_v49 = vpop.f32.mrb[49].mxu0 }
 0x6ef   : > { %v2849_v30 = vpop.f32.mrb[50].mxu0 }
 0x6f0   : > { %v2850_v28 = vpop.f32.mrb[51].mxu0 }
 0x72d   : > { %v2966_v50 = vpop.f32.mrb[52].mxu0 }
 0x72e   : > { %v2973_v11 = vadd.f32 %v2966_v50, %v2845_v8  ;;  %v2968_v57 = vpop.f32.mrb[53].mxu0 }
 0x72f   : > { %v2974_v55 = vadd.f32 %v2968_v57, %v2847_v49  ;;  %v2970_v44 = vpop.f32.mrb[54].mxu0 }
 0x730   : > { %v2987_v7 = vadd.f32 %v2980_v63, %v2973_v11  ;;  %v2971_v0 = vpop.f32.mrb[55].mxu0 }
 0x731   : > { %v2988_v45 = vadd.f32 %v2984_v46, %v2974_v55 }
 0x733   : > { %v2991_v34 = vadd.f32 %v2988_v45, %v2987_v7 }
 0x735   : > { %2992 = vadd.xlane.f32.xlu0 %v2991_v34 }
 0x7c2   : > { %v2993_v25 = vpop.xlane.xlu0 %2992 }
 0x7c3   : > { %v2994_v9 = vmul.f32 0.00390625, %v2993_v25 }
 0x7c5   : > { %v2995_v31 = vsub.f32 %v2987_v7, %v2994_v9  ;;  %v2996_v6 = vsub.f32 %v2988_v45, %v2994_v9 }
 0x7c7   : > { %v2997_v56 = vmul.f32 %v2995_v31, %v2995_v31  ;;  %v2998_v37 = vmul.f32 %v2996_v6, %v2996_v6 }
 0x7c9   : > { %v2999_v3 = vadd.f32 %v2998_v37, %v2997_v56 }
 0x7cb   : > { %3000 = vadd.xlane.f32.xlu1 %v2999_v3 }
 0x858   : > { %v3001_v23 = vpop.xlane.xlu1 %3000 }
 0x859   : > { %v3002_v32 = vmul.f32 0.00390625, %v3001_v23 }
 0x85b   : > { %v3003_v51 = vadd.f32 1e-06, %v3002_v32 }
 0x85d   : > { %3967 = vrsqrt.f32 %v3003_v51 }
 0x867   : > { %v3968_v54 = vpop.eup %3967 }
 0x868   : > { %v3005_v16 = vmul.f32 %v3968_v54, %v2995_v31  ;;  %v3006_v1 = vmul.f32 %v3968_v54, %v2996_v6 }
 0x86a   : > { %v3018_v20 = vmul.f32 %v3011_v12, %v3005_v16  ;;  %v3019_v2 = vmul.f32 %v3015_v59, %v3006_v1 }
 0x86c   : > { %v3031_v4 = vadd.f32 %v3024_v41, %v3018_v20  ;;  %v3032_v8 = vadd.f32 %v3028_v40, %v3019_v2 }
 0x86e   : > { %v3033_v49 = vpack.c.bf16 %v3031_v4, %v3031_v4  ;;  %v3034_v30 = vpack.c.bf16 %v3032_v8, %v3032_v8 }
 0x870   : > { %3259 = vmatprep.mubr.bf16.mxu1 %v3034_v30 }
 0x871   : > { %3260 = vmatmul.mubr.bf16.vlgmr.msra.gmra.mrb[128].mxu1 %v3033_v49 }
 0x944   : > { %v3261_v28 = vpop.f32.mrb[128].mxu1 }
 0x945   : > { %3268 = vst [vmem:[%s448_s14] sm:$0xff] %v3261_v28  ;;  %v3263_v60 = vpop.f32.mrb[129].mxu1 }
 0x946   : > { %3269 = vst [vmem:[%s448_s14 + $0x8] sm:$0xff] %v3263_v60  ;;  %v3265_v21 = vpop.f32.mrb[130].mxu1 }
 0x947   : > { %v3266_v43 = vpop.f32.mrb[131].mxu1 }
 0x948   : > { %4010 = shalt.err (!%p4007_p7)
}
 0x949   : > { %s4011_s16 = scalar_lea.hbm %s5718_s21, 256  ;;  %s4015_s23 = scalar_lea.hbm %s5771_s13, 512 }
 0x94a   : > { %p4012_p8 = scmp.ne.s32.totalorder %s5718_s21, %s4011_s16  ;;  %p4016_p1 = scmp.lt.u32.totalorder %s5718_s21, %s5771_s13 }
 0x94b   : > { %p4017_p0 = scmp.lt.u32.totalorder %s4015_s23, %s4011_s16  ;;  %p4019_p6 = scmp.lt.u32.totalorder %s4011_s16, %s5718_s21 }
 0x94c   : > { %p4013_p11 = pnand %p4012_p8, %p5846_p9 }
 0x94d   : > { %p4018_p5 = por %p4017_p0, %p4016_p1 }
 0x94e   : > { %p4014_p13 = pneg %p4013_p11 }
 0x94f   : > { %p4020_p10 = por %p4019_p6, %p4018_p5 }
 0x951   : > { %p4021_p12 = pnand %p4020_p10, %p4014_p13 }
 0x953   : > { %4024 = shalt.err (!%p4021_p12)
}
 0x954   : > { %3694 = dma.vmem_to_hbm [thread:$0]  (%p5846_p9), %s5713_s20, 256, %s5718_s21, %s3271_s17  }
 0x955 PF: > { %p3706_p2 = scmp.ge.s32.totalorder %s4063_s28, 2  ;;  %s3297_s24 = sand.u32 1, %s4051_s25  }
 0x956   : > { %p5847_p3 = scmp.ne.s32.totalorder %s5797_s19, 0  ;;  %s3298_s30 = scalar_lea.sflag [#allocation4], %s3297_s24 }
 0x958   : > { %p3701_p4 = pnand %p3706_p2, %p5847_p3 }
 0x95a   : > { %4046 = dma.done.wait (!%p3701_p4), %s3298_s30, 256  }
 0x95b   : > { %4048 = vsyncadd (!%p3701_p4), %s3298_s30, 4294967040  ;;  %s5848_s28 = sld [smem:[#allocation9_spill]]  ;;  %s5849_s27 = sld [smem:[#allocation8_spill]] }
 0x95c   : > { %s5850_s16 = sld [smem:[#allocation10_spill]]  ;;  %s5851_s25 = smov %s4055_s26 }
 0x961   : > { %p24_p7 = scmp.ge.s32.totalorder %s5848_s28, 4   ;;  %s5852_s26 = smov %s5849_s27 }
 0x962   : > { %s5853_s27 = smov %s5850_s16 }
 0x963   :  { %26 = sbr.rel (!%p24_p7) target bundleno = 4 (0x4), region = 112 }
 0x96a   :  { %3303 = vsyncpa [#allocation3], 1 }
 0x96b   :  { %3305 = vsyncpa [#allocation3 + $0x1], 1 }
 0x96c   :  { %3306 = vsyncpa [#allocation4], 1 }
 0x96d   :  { %3308 = vsyncpa [#allocation4 + $0x1], 1 }

</bundles_post_ra>
